<compile_context>
chip_gen: v7x
topology: tpu7x:2x2x1
jax: 0.10.0
libtpu: 0.0.40
codegen_flags: <defaults>
</compile_context>

<pallas_src>
import functools

import jax
import jax.numpy as jnp
from jax.experimental import pallas as pl
from jax.experimental.pallas import tpu as pltpu


def _mlp_kernel(x_ref, w1_ref, b1_ref, w2_ref, b2_ref, w3_ref, b3_ref,
                w4_ref, b4_ref, o_ref, *, layer1_on_mxu, compute_dtype,
                epilogue_dtype):
    cd, ep = compute_dtype, epilogue_dtype

    # ---- layer 1 ---------------------------------------------------------
    if layer1_on_mxu:
        # (block_b, 8) @ (8, 256): K zero-padded in the wrapper (never
        # multiplies garbage lanes); frees the binding VALU slot.
        acc = jnp.dot(x_ref[...], w1_ref[...],
                      preferred_element_type=jnp.float32)
    else:
        # v5e path: two f32 broadcast multiply-adds on the VPU (a K=2 matmul
        # would waste the v5e MXU, and its VPU has no bf16).
        xf = x_ref[...].astype(jnp.float32)
        w1 = w1_ref[...].astype(jnp.float32)
        acc = xf[:, 0:1] * w1[0:1, :] + xf[:, 1:2] * w1[1:2, :]
    h = jnp.maximum(acc.astype(ep) + b1_ref[...], 0.0).astype(cd)

    # ---- layers 2/3: 256x256 MXU matmuls, f32 accumulate, ep epilogues ----
    acc = jnp.dot(h, w2_ref[...], preferred_element_type=jnp.float32)
    h = jnp.maximum(acc.astype(ep) + b2_ref[...], 0.0).astype(cd)

    acc = jnp.dot(h, w3_ref[...], preferred_element_type=jnp.float32)
    h = jnp.maximum(acc.astype(ep) + b3_ref[...], 0.0).astype(cd)

    # ---- layer 4: 256x128 (zero-padded from 3 cols), tanh-sigmoid (EUP) ---
    acc = jnp.dot(h, w4_ref[...], preferred_element_type=jnp.float32)
    logits = acc.astype(ep) + b4_ref[...]
    sig = 0.5 * (jnp.tanh(0.5 * logits) + 1.0)   # == sigmoid(logits), stable
    o_ref[...] = sig.astype(o_ref.dtype)


def _round_up(n, m):
    return ((n + m - 1) // m) * m


def _pick_block_b(batch):
    # >=2 grid steps when possible (feeds both v7x TensorCores), multiple of
    # 256, capped so double-buffered tiles stay tiny vs. VMEM.
    return max(256, min(2048, _round_up(pl.cdiv(batch, 2), 256)))


@functools.partial(
    jax.jit,
    static_argnames=("block_b", "compute_dtype", "epilogue_dtype",
                     "layer1_on_mxu"))
def mlp_forward(x, params, block_b=None, compute_dtype=jnp.bfloat16,
                epilogue_dtype=jnp.bfloat16, layer1_on_mxu=True):
    """Fused MLP forward pass.

    Defaults target v6e/v7x (bf16 MXU operands + bf16 epilogues, layer 1 on
    the MXU).  On v5e use epilogue_dtype=jnp.float32, layer1_on_mxu=False.
    For a near-exact reference path use compute_dtype=epilogue_dtype=float32
    (MXU f32 is multi-pass bf16 at default precision, hence "near"-exact).
    """
    cd, ep = compute_dtype, epilogue_dtype
    w1, b1 = params["w1"], params["b1"]
    w2, b2 = params["w2"], params["b2"]
    w3, b3 = params["w3"], params["b3"]
    w4, b4 = params["w4"], params["b4"]

    B, D_in = x.shape
    hidden = w2.shape[0]
    D_out = w4.shape[1]
    D_out_pad = 128                      # lane-dense output tile (unmasked vst)

    if block_b is None:
        block_b = _pick_block_b(B)
    grid_b = pl.cdiv(B, block_b)
    B_pad = grid_b * block_b

    # ---- input / layer-1 operands -----------------------------------------
    if layer1_on_mxu:
        K1 = 8
        x_in = jnp.pad(x.astype(cd), ((0, B_pad - B), (0, K1 - D_in)))
        w1_in = jnp.pad(w1.astype(cd), ((0, K1 - D_in), (0, 0)))
    else:
        K1 = D_in
        x_in = jnp.pad(x, ((0, B_pad - B), (0, 0)))
        w1_in = w1                       # f32, consumed by the VPU path

    # ---- epilogue-dtype biases, MXU-dtype hidden/output weights ------------
    b1e = b1.astype(ep)
    w2c, b2e = w2.astype(cd), b2.astype(ep)
    w3c, b3e = w3.astype(cd), b3.astype(ep)
    w4p = jnp.pad(w4.astype(cd), ((0, 0), (0, D_out_pad - D_out)))
    b4p = jnp.pad(b4.astype(ep), ((0, 0), (0, D_out_pad - D_out)))

    kernel = functools.partial(_mlp_kernel, layer1_on_mxu=layer1_on_mxu,
                               compute_dtype=cd, epilogue_dtype=ep)

    full = lambda a: pl.BlockSpec(a.shape, lambda i: (0, 0))
    nbytes = lambda a: a.size * a.dtype.itemsize
    flops = 2 * B_pad * (K1 * hidden + 2 * hidden * hidden
                         + hidden * D_out_pad)
    bytes_accessed = (nbytes(x_in) + nbytes(w1_in) + nbytes(b1e)
                      + nbytes(w2c) + nbytes(b2e) + nbytes(w3c) + nbytes(b3e)
                      + nbytes(w4p) + nbytes(b4p)
                      + B_pad * D_out_pad * jnp.dtype(ep).itemsize)

    out = pl.pallas_call(
        kernel,
        out_shape=jax.ShapeDtypeStruct((B_pad, D_out_pad), ep),
        grid_spec=pltpu.PrefetchScalarGridSpec(
            num_scalar_prefetch=0,
            grid=(grid_b,),
            in_specs=[
                pl.BlockSpec((block_b, K1), lambda i: (i, 0)),   # x tile
                full(w1_in), full(b1e),
                full(w2c), full(b2e),
                full(w3c), full(b3e),
                full(w4p), full(b4p),
            ],
            out_specs=pl.BlockSpec((block_b, D_out_pad), lambda i: (i, 0)),
        ),
        compiler_params=pltpu.CompilerParams(
            dimension_semantics=("parallel",),   # batch tiles -> both v7x TCs
            vmem_limit_bytes=32 << 20,
        ),
        cost_estimate=pl.CostEstimate(
            flops=flops,
            transcendentals=B_pad * D_out_pad,   # one tanh per output lane
            bytes_accessed=bytes_accessed),
    )(x_in, w1_in, b1e, w2c, b2e, w3c, b3e, w4p, b4p)

    # Padded batch rows and the 125 zero output columns are never meaningful;
    # slice them away and cast the tiny result back to the input dtype.
    return out[:B, :D_out].astype(x.dtype)


def init_params(key, d_in=2, hidden=256, d_out=3):
    """Deterministic init mimicking PyTorch nn.Linear (U(-1/sqrt(fan_in), +))."""
    def linear(key, fan_in, fan_out):
        kw, kb = jax.random.split(key)
        bound = 1.0 / jnp.sqrt(fan_in)
        w = jax.random.uniform(kw, (fan_in, fan_out), jnp.float32, -bound, bound)
        b = jax.random.uniform(kb, (1, fan_out), jnp.float32, -bound, bound)
        return w, b

    k1, k2, k3, k4 = jax.random.split(key, 4)
    w1, b1 = linear(k1, d_in, hidden)
    w2, b2 = linear(k2, hidden, hidden)
    w3, b3 = linear(k3, hidden, hidden)
    w4, b4 = linear(k4, hidden, d_out)
    return dict(w1=w1, b1=b1, w2=w2, b2=b2, w3=w3, b3=b3, w4=w4, b4=b4)


def mlp_reference(x, p):
    h = jnp.maximum(x @ p["w1"] + p["b1"], 0.0)
    h = jnp.maximum(h @ p["w2"] + p["b2"], 0.0)
    h = jnp.maximum(h @ p["w3"] + p["b3"], 0.0)
    return jax.nn.sigmoid(h @ p["w4"] + p["b4"])


if __name__ == "__main__":
    key = jax.random.PRNGKey(0)
    kx, kp = jax.random.split(key)

    # (B, 2) pixel-coordinate inputs; Flatten is the identity here.  B is not
    # a multiple of 256, so the auto block_b (512) gives a 2-step grid and
    # exercises the padded-tail path.
    B, D_IN = 1000, 2
    x = jax.random.uniform(kx, (B, D_IN), jnp.float32)
    params = init_params(kp, d_in=D_IN, hidden=256, d_out=3)

    ref = mlp_reference(x, params)

    # Near-exact precision path (f32 everywhere) -- tight check.
    out_f32 = jax.block_until_ready(
        mlp_forward(x, params, compute_dtype=jnp.float32,
                    epilogue_dtype=jnp.float32))
    assert out_f32.shape == (B, 3)
    assert jnp.allclose(out_f32, ref, atol=1e-4, rtol=1e-4), "f32 mismatch"

    # Default v6e/v7x path: bf16 MXU, bf16 epilogues, layer 1 on the MXU.
    out_bf16 = jax.block_until_ready(mlp_forward(x, params))
    assert out_bf16.shape == (B, 3)
    assert float(jnp.max(jnp.abs(out_bf16 - ref))) < 5e-2, "bf16 mismatch"

    # v5e-style path: bf16 MXU weights, f32 epilogues, layer 1 on the VPU.
    out_v5e = jax.block_until_ready(
        mlp_forward(x, params, epilogue_dtype=jnp.float32,
                    layer1_on_mxu=False))
    assert out_v5e.shape == (B, 3)
    assert float(jnp.max(jnp.abs(out_v5e - ref))) < 5e-2, "v5e-path mismatch"

    print("KERNEL_OK")
</pallas_src>

<mosaic_0001>
module attributes {stable_mosaic.version = 11 : i64} {
  func.func @_mlp_kernel(%arg0: i32, %arg1: memref<512x8xf32, #tpu.memory_space<vmem>>, %arg2: memref<8x256xf32, #tpu.memory_space<vmem>>, %arg3: memref<1x256xf32, #tpu.memory_space<vmem>>, %arg4: memref<256x256xf32, #tpu.memory_space<vmem>>, %arg5: memref<1x256xf32, #tpu.memory_space<vmem>>, %arg6: memref<256x256xf32, #tpu.memory_space<vmem>>, %arg7: memref<1x256xf32, #tpu.memory_space<vmem>>, %arg8: memref<256x128xf32, #tpu.memory_space<vmem>>, %arg9: memref<1x128xf32, #tpu.memory_space<vmem>>, %arg10: memref<512x128xf32, #tpu.memory_space<vmem>>) attributes {dimension_semantics = [#tpu.dimension_semantics<parallel>], iteration_bounds = array<i64: 2>, scalar_prefetch = 0 : i64, scratch_operands = 0 : i64, tpu.core_type = #tpu.core_type<tc>, window_params = [{transform_indices = @transform_0, window_bounds = array<i64: 512, 8>}, {pipeline_mode = #tpu.pipeline_mode<synchronous>, transform_indices = @transform_1, window_bounds = array<i64: 8, 256>}, {pipeline_mode = #tpu.pipeline_mode<synchronous>, transform_indices = @transform_2, window_bounds = array<i64: 1, 256>}, {pipeline_mode = #tpu.pipeline_mode<synchronous>, transform_indices = @transform_3, window_bounds = array<i64: 256, 256>}, {pipeline_mode = #tpu.pipeline_mode<synchronous>, transform_indices = @transform_4, window_bounds = array<i64: 1, 256>}, {pipeline_mode = #tpu.pipeline_mode<synchronous>, transform_indices = @transform_5, window_bounds = array<i64: 256, 256>}, {pipeline_mode = #tpu.pipeline_mode<synchronous>, transform_indices = @transform_6, window_bounds = array<i64: 1, 256>}, {pipeline_mode = #tpu.pipeline_mode<synchronous>, transform_indices = @transform_7, window_bounds = array<i64: 256, 128>}, {pipeline_mode = #tpu.pipeline_mode<synchronous>, transform_indices = @transform_8, window_bounds = array<i64: 1, 128>}, {transform_indices = @transform_9, window_bounds = array<i64: 512, 128>}]} {
    %c0 = arith.constant 0 : index
    %c0_0 = arith.constant 0 : index
    %0 = vector.load %arg1[%c0, %c0_0] : memref<512x8xf32, #tpu.memory_space<vmem>>, vector<512x8xf32>
    %c0_1 = arith.constant 0 : index
    %c0_2 = arith.constant 0 : index
    %1 = vector.load %arg2[%c0_1, %c0_2] : memref<8x256xf32, #tpu.memory_space<vmem>>, vector<8x256xf32>
    %cst = arith.constant dense<0.000000e+00> : vector<512x256xf32>
    %2 = tpu.matmul %0, %1, %cst {dimension_numbers = #tpu.dot_dimension_numbers<[1], [0], [0], [1], [0, 0, 1, 1], [], []>} : vector<512x8xf32>, vector<8x256xf32>, vector<512x256xf32> -> vector<512x256xf32>
    %c0_3 = arith.constant 0 : index
    %c0_4 = arith.constant 0 : index
    %3 = vector.load %arg3[%c0_3, %c0_4] : memref<1x256xf32, #tpu.memory_space<vmem>>, vector<1x256xf32>
    %4 = vector.broadcast %3 : vector<1x256xf32> to vector<512x256xf32>
    %5 = arith.addf %2, %4 : vector<512x256xf32>
    %cst_5 = arith.constant 0.000000e+00 : f32
    %6 = vector.broadcast %cst_5 : f32 to vector<512x256xf32>
    %7 = arith.maximumf %5, %6 : vector<512x256xf32>
    %c0_6 = arith.constant 0 : index
    %c0_7 = arith.constant 0 : index
    %8 = vector.load %arg4[%c0_6, %c0_7] : memref<256x256xf32, #tpu.memory_space<vmem>>, vector<256x256xf32>
    %cst_8 = arith.constant dense<0.000000e+00> : vector<512x256xf32>
    %9 = tpu.matmul %7, %8, %cst_8 {dimension_numbers = #tpu.dot_dimension_numbers<[1], [0], [0], [1], [0, 0, 1, 1], [], []>} : vector<512x256xf32>, vector<256x256xf32>, vector<512x256xf32> -> vector<512x256xf32>
    %c0_9 = arith.constant 0 : index
    %c0_10 = arith.constant 0 : index
    %10 = vector.load %arg5[%c0_9, %c0_10] : memref<1x256xf32, #tpu.memory_space<vmem>>, vector<1x256xf32>
    %11 = vector.broadcast %10 : vector<1x256xf32> to vector<512x256xf32>
    %12 = arith.addf %9, %11 : vector<512x256xf32>
    %cst_11 = arith.constant 0.000000e+00 : f32
    %13 = vector.broadcast %cst_11 : f32 to vector<512x256xf32>
    %14 = arith.maximumf %12, %13 : vector<512x256xf32>
    %c0_12 = arith.constant 0 : index
    %c0_13 = arith.constant 0 : index
    %15 = vector.load %arg6[%c0_12, %c0_13] : memref<256x256xf32, #tpu.memory_space<vmem>>, vector<256x256xf32>
    %cst_14 = arith.constant dense<0.000000e+00> : vector<512x256xf32>
    %16 = tpu.matmul %14, %15, %cst_14 {dimension_numbers = #tpu.dot_dimension_numbers<[1], [0], [0], [1], [0, 0, 1, 1], [], []>} : vector<512x256xf32>, vector<256x256xf32>, vector<512x256xf32> -> vector<512x256xf32>
    %c0_15 = arith.constant 0 : index
    %c0_16 = arith.constant 0 : index
    %17 = vector.load %arg7[%c0_15, %c0_16] : memref<1x256xf32, #tpu.memory_space<vmem>>, vector<1x256xf32>
    %18 = vector.broadcast %17 : vector<1x256xf32> to vector<512x256xf32>
    %19 = arith.addf %16, %18 : vector<512x256xf32>
    %cst_17 = arith.constant 0.000000e+00 : f32
    %20 = vector.broadcast %cst_17 : f32 to vector<512x256xf32>
    %21 = arith.maximumf %19, %20 : vector<512x256xf32>
    %c0_18 = arith.constant 0 : index
    %c0_19 = arith.constant 0 : index
    %22 = vector.load %arg8[%c0_18, %c0_19] : memref<256x128xf32, #tpu.memory_space<vmem>>, vector<256x128xf32>
    %cst_20 = arith.constant dense<0.000000e+00> : vector<512x128xf32>
    %23 = tpu.matmul %21, %22, %cst_20 {dimension_numbers = #tpu.dot_dimension_numbers<[1], [0], [0], [1], [0, 0, 1, 1], [], []>} : vector<512x256xf32>, vector<256x128xf32>, vector<512x128xf32> -> vector<512x128xf32>
    %c0_21 = arith.constant 0 : index
    %c0_22 = arith.constant 0 : index
    %24 = vector.load %arg9[%c0_21, %c0_22] : memref<1x128xf32, #tpu.memory_space<vmem>>, vector<1x128xf32>
    %25 = vector.broadcast %24 : vector<1x128xf32> to vector<512x128xf32>
    %26 = arith.addf %23, %25 : vector<512x128xf32>
    %cst_23 = arith.constant 5.000000e-01 : f32
    %27 = vector.broadcast %cst_23 : f32 to vector<512x128xf32>
    %28 = arith.mulf %27, %26 : vector<512x128xf32>
    %29 = math.tanh %28 : vector<512x128xf32>
    %cst_24 = arith.constant 1.000000e+00 : f32
    %30 = vector.broadcast %cst_24 : f32 to vector<512x128xf32>
    %31 = arith.addf %29, %30 : vector<512x128xf32>
    %cst_25 = arith.constant 5.000000e-01 : f32
    %32 = vector.broadcast %cst_25 : f32 to vector<512x128xf32>
    %33 = arith.mulf %32, %31 : vector<512x128xf32>
    %c0_26 = arith.constant 0 : index
    %c0_27 = arith.constant 0 : index
    %34 = vector.load %arg10[%c0_26, %c0_27] : memref<512x128xf32, #tpu.memory_space<vmem>>, vector<512x128xf32>
    tpu.vector_store %arg10[%c0_26, %c0_27], %33 {strides = array<i32>} : memref<512x128xf32, #tpu.memory_space<vmem>>, vector<512x128xf32>,
    return
  }
  func.func @transform_0(%arg0: i32) -> (i32, i32) {
    %c0_i32 = arith.constant 0 : i32
    %c0_i32_0 = arith.constant 0 : i32
    return %arg0, %c0_i32 : i32, i32
  }
  func.func @transform_1(%arg0: i32) -> (i32, i32) {
    %c0_i32 = arith.constant 0 : i32
    %c0_i32_0 = arith.constant 0 : i32
    %c0_i32_1 = arith.constant 0 : i32
    return %c0_i32, %c0_i32_0 : i32, i32
  }
  func.func @transform_2(%arg0: i32) -> (i32, i32) {
    %c0_i32 = arith.constant 0 : i32
    %c0_i32_0 = arith.constant 0 : i32
    %c0_i32_1 = arith.constant 0 : i32
    return %c0_i32, %c0_i32_0 : i32, i32
  }
  func.func @transform_3(%arg0: i32) -> (i32, i32) {
    %c0_i32 = arith.constant 0 : i32
    %c0_i32_0 = arith.constant 0 : i32
    %c0_i32_1 = arith.constant 0 : i32
    return %c0_i32, %c0_i32_0 : i32, i32
  }
  func.func @transform_4(%arg0: i32) -> (i32, i32) {
    %c0_i32 = arith.constant 0 : i32
    %c0_i32_0 = arith.constant 0 : i32
    %c0_i32_1 = arith.constant 0 : i32
    return %c0_i32, %c0_i32_0 : i32, i32
  }
  func.func @transform_5(%arg0: i32) -> (i32, i32) {
    %c0_i32 = arith.constant 0 : i32
    %c0_i32_0 = arith.constant 0 : i32
    %c0_i32_1 = arith.constant 0 : i32
    return %c0_i32, %c0_i32_0 : i32, i32
  }
  func.func @transform_6(%arg0: i32) -> (i32, i32) {
    %c0_i32 = arith.constant 0 : i32
    %c0_i32_0 = arith.constant 0 : i32
    %c0_i32_1 = arith.constant 0 : i32
    return %c0_i32, %c0_i32_0 : i32, i32
  }
  func.func @transform_7(%arg0: i32) -> (i32, i32) {
    %c0_i32 = arith.constant 0 : i32
    %c0_i32_0 = arith.constant 0 : i32
    %c0_i32_1 = arith.constant 0 : i32
    return %c0_i32, %c0_i32_0 : i32, i32
  }
  func.func @transform_8(%arg0: i32) -> (i32, i32) {
    %c0_i32 = arith.constant 0 : i32
    %c0_i32_0 = arith.constant 0 : i32
    %c0_i32_1 = arith.constant 0 : i32
    return %c0_i32, %c0_i32_0 : i32, i32
  }
  func.func @transform_9(%arg0: i32) -> (i32, i32) {
    %c0_i32 = arith.constant 0 : i32
    %c0_i32_0 = arith.constant 0 : i32
    return %arg0, %c0_i32 : i32, i32
  }
}

</mosaic_0001>

<bundles_post_ra>
// kernel: mlp_forward.1
= control target key start
LH: loop header
LB: loop body
LE: loop exit
PB: predicated region body
PF: predicated region fallthrough
CT: control target
= control target key end

     0   :  { %s3773_s30 = smov 0   ;;  %s5146_s0 = inlined_call_operand.vmem [shape: f32[1024,8], index: 0, kind: input, shape index: {}]   ;;  %s5147_s1 = inlined_call_operand.vmem [shape: f32[8,256], index: 1, kind: input, shape index: {}]   ;;  %s5148_s2 = inlined_call_operand.vmem [shape: f32[1,256], index: 2, kind: input, shape index: {}]   ;;  %s5149_s3 = inlined_call_operand.vmem [shape: f32[256,256], index: 3, kind: input, shape index: {}]   ;;  %s5150_s4 = inlined_call_operand.vmem [shape: f32[1,256], index: 4, kind: input, shape index: {}]   ;;  %s5151_s5 = inlined_call_operand.vmem [shape: f32[256,256], index: 5, kind: input, shape index: {}]   ;;  %s5152_s6 = inlined_call_operand.vmem [shape: f32[1,256], index: 6, kind: input, shape index: {}]   ;;  %s5153_s7 = inlined_call_operand.vmem [shape: f32[256,128], index: 7, kind: input, shape index: {}]   ;;  %s5154_s8 = inlined_call_operand.vmem [shape: f32[1,128], index: 8, kind: input, shape index: {}]   ;;  %s5155_s9 = inlined_call_operand.vmem [shape: f32[1024,128], index: 9, kind: output, shape index: {}]  }
   0x1 LB: > { %s3290_s10 = sadd.s32 4294967295, %s3719_s30   ;;  %p3294_p0 = scmp.ge.s32.totalorder %s3719_s30, 1  ;;  %s3719_s30 = sphi %s3773_s30, %s19_s30  }
   0x2   : > { %p288_p1 = scmp.lt.s32.totalorder %s3719_s30, 3 }
   0x4   : > { %p289_p2 = pnand %p3294_p0, %p288_p1 }
   0x5   : > { %v401_v0 = vld [vmem:[%s5147_s1 + $0x8] sm:$0xff] (!%p289_p2)  ;;  %v400_v1 = vld [vmem:[%s5147_s1] sm:$0xff] (!%p289_p2)  ;;  %s3295_s15 = sshll.u32 (!%p289_p2), %s3290_s10, 6  ;;  %v3721_v2 = vmov (!%p289_p2), 0.0   ;;  %vm414_vm0 = vcmask (!%p289_p2), 64512   ;;  %v1187_v11 = vld [vmem:[%s5149_s3 + $0x18] sm:$0xff] (!%p289_p2) }
   0x6   : > { %292 = sbr.rel (%p289_p2) target bundleno = 1155 (0x483), region = 56  ;;  %607 = vmatprep.subr.mxu0 (!%p289_p2), %v401_v0  ;;  %671 = vmatprep.mubr.f32.mxu0 (!%p289_p2), %v3721_v2  ;;  %p325_p3 = scmp.lt.s32.totalorder (!%p289_p2), %s3295_s15, 127  ;;  %v1185_v10 = vld [vmem:[%s5149_s3 + $0x8] sm:$0xff] (!%p289_p2)  ;;  %v1184_v13 = vld [vmem:[%s5149_s3] sm:$0xff] (!%p289_p2)  ;;  %v1186_v14 = vld [vmem:[%s5149_s3 + $0x10] sm:$0xff] (!%p289_p2) }
   0x7   : > { %608 = vmatpush1.msra.mxu0 (!%p289_p2), %v400_v1  ;;  %v3366_v12 = vpack.c.bf16 (!%p289_p2), %v1187_v11, %v1185_v10  ;;  %v3368_v16 = vpack.c.bf16 (!%p289_p2), %v1186_v14, %v1184_v13  ;;  %v1189_v17 = vld [vmem:[%s5149_s3 + $0x28] sm:$0xff] (!%p289_p2)  ;;  %v1191_v18 = vld [vmem:[%s5149_s3 + $0x38] sm:$0xff] (!%p289_p2)  ;;  %v1188_v20 = vld [vmem:[%s5149_s3 + $0x20] sm:$0xff] (!%p289_p2) }
   0x8   : > { %v3370_v19 = vpack.c.bf16 (!%p289_p2), %v1191_v18, %v1189_v17  ;;  %v1190_v21 = vld [vmem:[%s5149_s3 + $0x30] sm:$0xff] (!%p289_p2)  ;;  %v1193_v24 = vld [vmem:[%s5149_s3 + $0x48] sm:$0xff] (!%p289_p2)  ;;  %v1195_v25 = vld [vmem:[%s5149_s3 + $0x58] sm:$0xff] (!%p289_p2) }
   0x9   : > { %3367 = vmatprep.subr.bf16.mxu1 (!%p289_p2), %v3366_v12  ;;  %v3372_v23 = vpack.c.bf16 (!%p289_p2), %v1190_v21, %v1188_v20  ;;  %v3374_v26 = vpack.c.bf16 (!%p289_p2), %v1195_v25, %v1193_v24  ;;  %v1192_v27 = vld [vmem:[%s5149_s3 + $0x40] sm:$0xff] (!%p289_p2)  ;;  %v1194_v28 = vld [vmem:[%s5149_s3 + $0x50] sm:$0xff] (!%p289_p2)  ;;  %v1197_v31 = vld [vmem:[%s5149_s3 + $0x68] sm:$0xff] (!%p289_p2) }
   0xa   : > { %3369 = vmatpush1.bf16.msra.mxu1 (!%p289_p2), %v3368_v16  ;;  %v3376_v30 = vpack.c.bf16 (!%p289_p2), %v1194_v28, %v1192_v27  ;;  %v1199_v32 = vld [vmem:[%s5149_s3 + $0x78] sm:$0xff] (!%p289_p2)  ;;  %v1196_v34 = vld [vmem:[%s5149_s3 + $0x60] sm:$0xff] (!%p289_p2)  ;;  %v1198_v35 = vld [vmem:[%s5149_s3 + $0x70] sm:$0xff] (!%p289_p2) }
   0xb   : > { %3371 = vmatprep.subr.bf16.mxu1 (!%p289_p2), %v3370_v19  ;;  %v3378_v33 = vpack.c.bf16 (!%p289_p2), %v1199_v32, %v1197_v31  ;;  %v3380_v37 = vpack.c.bf16 (!%p289_p2), %v1198_v35, %v1196_v34  ;;  %v1201_v38 = vld [vmem:[%s5149_s3 + $0x88] sm:$0xff] (!%p289_p2)  ;;  %v1203_v39 = vld [vmem:[%s5149_s3 + $0x98] sm:$0xff] (!%p289_p2)  ;;  %v1200_v41 = vld [vmem:[%s5149_s3 + $0x80] sm:$0xff] (!%p289_p2) }
   0xc   : > { %v3382_v40 = vpack.c.bf16 (!%p289_p2), %v1203_v39, %v1201_v38  ;;  %v1202_v42 = vld [vmem:[%s5149_s3 + $0x90] sm:$0xff] (!%p289_p2)  ;;  %v1205_v45 = vld [vmem:[%s5149_s3 + $0xa8] sm:$0xff] (!%p289_p2)  ;;  %v1207_v46 = vld [vmem:[%s5149_s3 + $0xb8] sm:$0xff] (!%p289_p2) }
   0xd   : > { %s5157_s15 = smov (!%p325_p3, %s3295_s15), 127  ;;  %v3384_v44 = vpack.c.bf16 %v1202_v42, %v1200_v41  ;;  %v3386_v47 = vpack.c.bf16 %v1207_v46, %v1205_v45  ;;  %v1204_v48 = vld [vmem:[%s5149_s3 + $0xa0] sm:$0xff]  ;;  %v1206_v49 = vld [vmem:[%s5149_s3 + $0xb0] sm:$0xff]  ;;  %v1209_v52 = vld [vmem:[%s5149_s3 + $0xc8] sm:$0xff] }
   0xe   : > { %s3296_s16 = sshll.u32 %s5157_s15, 3  ;;  %3373 = vmatpush1.bf16.msra.mxu1 %v3372_v23  ;;  %v3388_v51 = vpack.c.bf16 %v1206_v49, %v1204_v48  ;;  %v1211_v53 = vld [vmem:[%s5149_s3 + $0xd8] sm:$0xff]  ;;  %v1208_v55 = vld [vmem:[%s5149_s3 + $0xc0] sm:$0xff]  ;;  %v1210_v56 = vld [vmem:[%s5149_s3 + $0xd0] sm:$0xff] }
   0xf   : > { %s3796_s19 = scalar_lea.vmem %s5146_s0, %s3296_s16  ;;  %3375 = vmatprep.subr.bf16.mxu1 %v3374_v26  ;;  %v3390_v54 = vpack.c.bf16 %v1211_v53, %v1209_v52  ;;  %v3392_v58 = vpack.c.bf16 %v1210_v56, %v1208_v55  ;;  %v1838_v59 = vld [vmem:[%s5151_s5 + $0x8] sm:$0xff]  ;;  %v1840_v60 = vld [vmem:[%s5151_s5 + $0x18] sm:$0xff]  ;;  %v1837_v0 = vld [vmem:[%s5151_s5] sm:$0xff]  ;;  %s5014_s21 = scalar_lea.vmem %s5155_s9, %s3296_s16 }
  0x10   : > { %v336_v3 = vld [vmem:[%s3796_s19] sm:$0xff]  ;;  %v337_v4 = vld [vmem:[%s3796_s19 + $0x8] sm:$0xff]  ;;  %v338_v5 = vld [vmem:[%s3796_s19 + $0x10] sm:$0xff]  ;;  %v3430_v61 = vpack.c.bf16 %v1840_v60, %v1838_v59 }
  0x11   : > { %3299 = vmatmul.mubr.msk.f32.vlgmr.msra.gmra.mrb[0].mxu0 %vm414_vm0, %v336_v3  ;;  %v339_v6 = vld [vmem:[%s3796_s19 + $0x18] sm:$0xff]  ;;  %v340_v7 = vld [vmem:[%s3796_s19 + $0x20] sm:$0xff]  ;;  %v341_v8 = vld [vmem:[%s3796_s19 + $0x28] sm:$0xff] }
  0x12   : > { %677 = vmatprep.mubr.f32.mxu0 %v3721_v2  ;;  %v342_v9 = vld [vmem:[%s3796_s19 + $0x30] sm:$0xff]  ;;  %v343_v15 = vld [vmem:[%s3796_s19 + $0x38] sm:$0xff]  ;;  %v344_v22 = vld [vmem:[%s3796_s19 + $0x40] sm:$0xff]  ;;  %3377 = vmatpush1.bf16.msra.mxu1 %v3376_v30 }
  0x13   : > { %v345_v29 = vld [vmem:[%s3796_s19 + $0x48] sm:$0xff]  ;;  %v346_v36 = vld [vmem:[%s3796_s19 + $0x50] sm:$0xff]  ;;  %3379 = vmatprep.subr.bf16.mxu1 %v3378_v33  ;;  %v347_v43 = vld [vmem:[%s3796_s19 + $0x58] sm:$0xff]  ;;  %3431 = vmatprep.subr.bf16.mxu0 %v3430_v61 }
  0x14   : > { %v348_v50 = vld [vmem:[%s3796_s19 + $0x60] sm:$0xff]  ;;  %v349_v57 = vld [vmem:[%s3796_s19 + $0x68] sm:$0xff]  ;;  %v1215_v63 = vld [vmem:[%s5149_s3 + $0xf8] sm:$0xff] }
  0x15   : > { %3300 = vmatmul.mubr.msk.f32.gmra.mrb[2].mxu0 %vm414_vm0, %v337_v4  ;;  %v1213_v62 = vld [vmem:[%s5149_s3 + $0xe8] sm:$0xff]  ;;  %v1839_v1 = vld [vmem:[%s5151_s5 + $0x10] sm:$0xff]  ;;  %v1212_v4 = vld [vmem:[%s5149_s3 + $0xe0] sm:$0xff] }
  0x16   : > { %683 = vmatprep.mubr.f32.mxu0 %v3721_v2  ;;  %3381 = vmatpush1.bf16.msra.mxu1 %v3380_v37  ;;  %v3394_v3 = vpack.c.bf16 %v1215_v63, %v1213_v62  ;;  %v1219_v10 = vld [vmem:[%s5149_s3 + $0x118] sm:$0xff]  ;;  %v1216_v12 = vld [vmem:[%s5149_s3 + $0x100] sm:$0xff]  ;;  %v1218_v13 = vld [vmem:[%s5149_s3 + $0x110] sm:$0xff] }
  0x17   : > { %3383 = vmatprep.subr.bf16.mxu1 %v3382_v40  ;;  %v351_v14 = vld [vmem:[%s3796_s19 + $0x78] sm:$0xff]  ;;  %v1221_v16 = vld [vmem:[%s5149_s3 + $0x128] sm:$0xff]  ;;  %v1220_v19 = vld [vmem:[%s5149_s3 + $0x120] sm:$0xff] }
  0x18   : > { %v1223_v17 = vld [vmem:[%s5149_s3 + $0x138] sm:$0xff]  ;;  %v1222_v20 = vld [vmem:[%s5149_s3 + $0x130] sm:$0xff]  ;;  %v352_v21 = vld [vmem:[%s3796_s19 + $0x80] sm:$0xff] }
  0x19   : > { %3301 = vmatmul.mubr.msk.f32.gmra.mrb[4].mxu0 %vm414_vm0, %v338_v5  ;;  %v350_v5 = vld [vmem:[%s3796_s19 + $0x70] sm:$0xff]  ;;  %v3402_v18 = vpack.c.bf16 %v1223_v17, %v1221_v16  ;;  %v1225_v23 = vld [vmem:[%s5149_s3 + $0x148] sm:$0xff]  ;;  %v1227_v24 = vld [vmem:[%s5149_s3 + $0x158] sm:$0xff] }
  0x1a   : > { %689 = vmatprep.mubr.f32.mxu0 %v3721_v2  ;;  %3385 = vmatpush1.bf16.msra.mxu1 %v3384_v44  ;;  %v3406_v25 = vpack.c.bf16 %v1227_v24, %v1225_v23  ;;  %v1224_v26 = vld [vmem:[%s5149_s3 + $0x140] sm:$0xff]  ;;  %v1226_v27 = vld [vmem:[%s5149_s3 + $0x150] sm:$0xff]  ;;  %v353_v28 = vld [vmem:[%s3796_s19 + $0x88] sm:$0xff] }
  0x1b   : > { %3387 = vmatprep.subr.bf16.mxu1 %v3386_v47  ;;  %v1842_v30 = vld [vmem:[%s5151_s5 + $0x28] sm:$0xff]  ;;  %v1844_v31 = vld [vmem:[%s5151_s5 + $0x38] sm:$0xff]  ;;  %v1841_v35 = vld [vmem:[%s5151_s5 + $0x20] sm:$0xff] }
  0x1c   : > { %v3434_v32 = vpack.c.bf16 %v1844_v31, %v1842_v30  ;;  %v1229_v33 = vld [vmem:[%s5149_s3 + $0x168] sm:$0xff]  ;;  %v1231_v34 = vld [vmem:[%s5149_s3 + $0x178] sm:$0xff]  ;;  %v1228_v38 = vld [vmem:[%s5149_s3 + $0x160] sm:$0xff] }
  0x1d   : > { %3302 = vmatmul.mubr.msk.f32.gmra.mrb[6].mxu0 %vm414_vm0, %v339_v6  ;;  %v3432_v6 = vpack.c.bf16 %v1839_v1, %v1837_v0  ;;  %v3410_v37 = vpack.c.bf16 %v1231_v34, %v1229_v33  ;;  %v354_v39 = vld [vmem:[%s3796_s19 + $0x90] sm:$0xff]  ;;  %v1235_v44 = vld [vmem:[%s5149_s3 + $0x198] sm:$0xff]  ;;  %v1232_v46 = vld [vmem:[%s5149_s3 + $0x180] sm:$0xff] }
  0x1e   : > { %695 = vmatprep.mubr.f32.mxu0 %v3721_v2  ;;  %3389 = vmatpush1.bf16.msra.mxu1 %v3388_v51  ;;  %v1230_v41 = vld [vmem:[%s5149_s3 + $0x170] sm:$0xff]  ;;  %v355_v48 = vld [vmem:[%s3796_s19 + $0x98] sm:$0xff]  ;;  %v1236_v53 = vld [vmem:[%s5149_s3 + $0x1a0] sm:$0xff] }
  0x1f   : > { %3391 = vmatprep.subr.bf16.mxu1 %v3390_v54  ;;  %3433 = vmatpush1.bf16.msra.mxu0 %v3432_v6  ;;  %v3412_v42 = vpack.c.bf16 %v1230_v41, %v1228_v38  ;;  %v1234_v47 = vld [vmem:[%s5149_s3 + $0x190] sm:$0xff]  ;;  %v1239_v51 = vld [vmem:[%s5149_s3 + $0x1b8] sm:$0xff]  ;;  %v356_v55 = vld [vmem:[%s3796_s19 + $0xa0] sm:$0xff] }
  0x20   : > { %3435 = vmatprep.subr.bf16.mxu0 %v3434_v32  ;;  %v3416_v49 = vpack.c.bf16 %v1234_v47, %v1232_v46  ;;  %v1238_v54 = vld [vmem:[%s5149_s3 + $0x1b0] sm:$0xff]  ;;  %v1240_v60 = vld [vmem:[%s5149_s3 + $0x1c0] sm:$0xff]  ;;  %v357_v62 = vld [vmem:[%s3796_s19 + $0xa8] sm:$0xff] }
  0x21   : > { %3303 = vmatmul.mubr.msk.f32.gmra.mrb[8].mxu0 %vm414_vm0, %v340_v7  ;;  %v1214_v7 = vld [vmem:[%s5149_s3 + $0xf0] sm:$0xff]  ;;  %v3420_v56 = vpack.c.bf16 %v1238_v54, %v1236_v53  ;;  %v1245_v1 = vld [vmem:[%s5149_s3 + $0x1e8] sm:$0xff]  ;;  %v1845_v6 = vld [vmem:[%s5151_s5 + $0x40] sm:$0xff] }
  0x22   : > { %701 = vmatprep.mubr.f32.mxu0 %v3721_v2  ;;  %3393 = vmatpush1.bf16.msra.mxu1 %v3392_v58  ;;  %v1243_v58 = vld [vmem:[%s5149_s3 + $0x1d8] sm:$0xff]  ;;  %v1242_v61 = vld [vmem:[%s5149_s3 + $0x1d0] sm:$0xff]  ;;  %v361_v16 = vld [vmem:[%s3796_s19 + $0xc8] sm:$0xff] }
  0x23   : > { %3395 = vmatprep.subr.bf16.mxu1 %v3394_v3  ;;  %v3424_v63 = vpack.c.bf16 %v1242_v61, %v1240_v60  ;;  %v358_v0 = vld [vmem:[%s3796_s19 + $0xb0] sm:$0xff]  ;;  %v1247_v3 = vld [vmem:[%s5149_s3 + $0x1f8] sm:$0xff]  ;;  %v1850_v17 = vld [vmem:[%s5151_s5 + $0x68] sm:$0xff] }
  0x24   : > { %v363_v24 = vld [vmem:[%s3796_s19 + $0xd8] sm:$0xff]  ;;  %v1853_v31 = vld [vmem:[%s5151_s5 + $0x80] sm:$0xff]  ;;  %v1855_v32 = vld [vmem:[%s5151_s5 + $0x90] sm:$0xff] }
  0x25   : > { %3304 = vmatmul.mubr.msk.f32.gmra.mrb[10].mxu0 %vm414_vm0, %v341_v8  ;;  %v3396_v8 = vpack.c.bf16 %v1214_v7, %v1212_v4  ;;  %v1846_v4 = vld [vmem:[%s5151_s5 + $0x48] sm:$0xff]  ;;  %v3426_v7 = vpack.c.bf16 %v1247_v3, %v1245_v1  ;;  %v3448_v33 = vpack.c.bf16 %v1855_v32, %v1853_v31  ;;  %v367_v34 = vld [vmem:[%s3796_s19 + $0xf8] sm:$0xff]  ;;  %v1857_v41 = vld [vmem:[%s5151_s5 + $0xa0] sm:$0xff] }
  0x26   : > { %707 = vmatprep.mubr.f32.mxu0 %v3721_v2  ;;  %v1858_v38 = vld [vmem:[%s5151_s5 + $0xa8] sm:$0xff]  ;;  %v374_v47 = vld [vmem:[%s3796_s19 + $0x130] sm:$0xff]  ;;  %v375_v54 = vld [vmem:[%s3796_s19 + $0x138] sm:$0xff] }
  0x27   : > { %3397 = vmatpush1.bf16.msra.mxu1 %v3396_v8  ;;  %v373_v46 = vld [vmem:[%s3796_s19 + $0x128] sm:$0xff]  ;;  %v1865_v61 = vld [vmem:[%s5151_s5 + $0xe0] sm:$0xff] }
  0x28   : > { %v380_v1 = vld [vmem:[%s3796_s19 + $0x160] sm:$0xff]  ;;  %v381_v3 = vld [vmem:[%s3796_s19 + $0x168] sm:$0xff] }
  0x29   : > { %3305 = vmatmul.mubr.msk.f32.gmra.mrb[12].mxu0 %vm414_vm0, %v342_v9  ;;  %v1217_v9 = vld [vmem:[%s5149_s3 + $0x108] sm:$0xff] }
  0x2a   : > { %713 = vmatprep.mubr.f32.mxu0 %v3721_v2  ;;  %v3398_v11 = vpack.c.bf16 %v1219_v10, %v1217_v9  ;;  %v1847_v9 = vld [vmem:[%s5151_s5 + $0x50] sm:$0xff]  ;;  %v1244_v10 = vld [vmem:[%s5149_s3 + $0x1e0] sm:$0xff] }
  0x2c   : > { %3399 = vmatprep.subr.bf16.mxu1 %v3398_v11  ;;  %v1246_v11 = vld [vmem:[%s5149_s3 + $0x1f0] sm:$0xff] }
  0x2d   : > { %3306 = vmatmul.mubr.msk.f32.gmra.mrb[14].mxu0 %vm414_vm0, %v343_v15  ;;  %v3400_v15 = vpack.c.bf16 %v1218_v13, %v1216_v12  ;;  %v3440_v12 = vpack.c.bf16 %v1847_v9, %v1845_v6  ;;  %v3428_v13 = vpack.c.bf16 %v1246_v11, %v1244_v10  ;;  %v1872_v6 = vld [vmem:[%s5151_s5 + $0x118] sm:$0xff]  ;;  %v1871_v9 = vld [vmem:[%s5151_s5 + $0x110] sm:$0xff] }
  0x2e   : > { %719 = vmatprep.mubr.f32.mxu0 %v3721_v2  ;;  %v383_v11 = vld [vmem:[%s3796_s19 + $0x178] sm:$0xff] }
  0x2f   : > { %3401 = vmatpush1.bf16.msra.mxu1 %v3400_v15  ;;  %v360_v15 = vld [vmem:[%s3796_s19 + $0xc0] sm:$0xff] }
  0x30   : > { %3403 = vmatprep.subr.bf16.mxu1 %v3402_v18  ;;  %v1852_v18 = vld [vmem:[%s5151_s5 + $0x78] sm:$0xff] }
  0x31   : > { %3307 = vmatmul.mubr.msk.f32.gmra.mrb[16].mxu0 %vm414_vm0, %v344_v22  ;;  %v3404_v22 = vpack.c.bf16 %v1222_v20, %v1220_v19  ;;  %v362_v19 = vld [vmem:[%s3796_s19 + $0xd0] sm:$0xff]  ;;  %v3442_v20 = vpack.c.bf16 %v1852_v18, %v1850_v17  ;;  %v1876_v17 = vld [vmem:[%s5151_s5 + $0x138] sm:$0xff] }
  0x32   : > { %725 = vmatprep.mubr.f32.mxu0 %v3721_v2 }
  0x33   : > { %3405 = vmatpush1.bf16.msra.mxu1 %v3404_v22  ;;  %v1851_v22 = vld [vmem:[%s5151_s5 + $0x70] sm:$0xff] }
  0x34   : > { %3407 = vmatprep.subr.bf16.mxu1 %v3406_v25  ;;  %v364_v25 = vld [vmem:[%s3796_s19 + $0xe0] sm:$0xff] }
  0x35   : > { %3308 = vmatmul.mubr.msk.f32.gmra.mrb[18].mxu0 %vm414_vm0, %v345_v29  ;;  %v3408_v29 = vpack.c.bf16 %v1226_v27, %v1224_v26  ;;  %v365_v26 = vld [vmem:[%s3796_s19 + $0xe8] sm:$0xff]  ;;  %v366_v27 = vld [vmem:[%s3796_s19 + $0xf0] sm:$0xff] }
  0x36   : > { %731 = vmatprep.mubr.f32.mxu0 %v3721_v2 }
  0x37   : > { %3409 = vmatpush1.bf16.msra.mxu1 %v3408_v29  ;;  %v1856_v29 = vld [vmem:[%s5151_s5 + $0x98] sm:$0xff] }
  0x38   : > { %3411 = vmatprep.subr.bf16.mxu1 %v3410_v37  ;;  %v370_v37 = vld [vmem:[%s3796_s19 + $0x110] sm:$0xff] }
  0x39   : > { %3309 = vmatmul.mubr.msk.f32.gmra.mrb[20].mxu0 %vm414_vm0, %v346_v36  ;;  %v1843_v36 = vld [vmem:[%s5151_s5 + $0x30] sm:$0xff] }
  0x3a   : > { %737 = vmatprep.mubr.f32.mxu0 %v3721_v2  ;;  %v3436_v40 = vpack.c.bf16 %v1843_v36, %v1841_v35  ;;  %v368_v35 = vld [vmem:[%s3796_s19 + $0x100] sm:$0xff]  ;;  %v369_v36 = vld [vmem:[%s3796_s19 + $0x108] sm:$0xff] }
  0x3b   : > { %3413 = vmatpush1.bf16.msra.mxu1 %v3412_v42  ;;  %v1859_v42 = vld [vmem:[%s5151_s5 + $0xb0] sm:$0xff] }
  0x3c   : > { %3437 = vmatpush1.bf16.msra.mxu0 %v3436_v40 }
  0x3d   : > { %3310 = vmatmul.mubr.msk.f32.gmra.mrb[22].mxu0 %vm414_vm0, %v347_v43  ;;  %v1233_v43 = vld [vmem:[%s5149_s3 + $0x188] sm:$0xff] }
  0x3e   : > { %743 = vmatprep.mubr.f32.mxu0 %v3721_v2  ;;  %v3414_v45 = vpack.c.bf16 %v1235_v44, %v1233_v43  ;;  %v3452_v43 = vpack.c.bf16 %v1859_v42, %v1857_v41  ;;  %v371_v44 = vld [vmem:[%s3796_s19 + $0x118] sm:$0xff]  ;;  %v1877_v41 = vld [vmem:[%s5151_s5 + $0x140] sm:$0xff]  ;;  %v1879_v42 = vld [vmem:[%s5151_s5 + $0x150] sm:$0xff] }
  0x40   : > { %3415 = vmatprep.subr.bf16.mxu1 %v3414_v45  ;;  %v372_v45 = vld [vmem:[%s3796_s19 + $0x120] sm:$0xff] }
  0x41   : > { %3311 = vmatmul.mubr.msk.f32.gmra.mrb[24].mxu0 %vm414_vm0, %v348_v50  ;;  %v1237_v50 = vld [vmem:[%s5149_s3 + $0x1a8] sm:$0xff]  ;;  %3417 = vmatpush1.bf16.msra.mxu1 %v3416_v49  ;;  %v1864_v49 = vld [vmem:[%s5151_s5 + $0xd8] sm:$0xff] }
  0x42   : > { %749 = vmatprep.mubr.f32.mxu0 %v3721_v2  ;;  %v3418_v52 = vpack.c.bf16 %v1239_v51, %v1237_v50  ;;  %v1861_v51 = vld [vmem:[%s5151_s5 + $0xc0] sm:$0xff] }
  0x44   : > { %3419 = vmatprep.subr.bf16.mxu1 %v3418_v52  ;;  %v1863_v52 = vld [vmem:[%s5151_s5 + $0xd0] sm:$0xff] }
  0x45   : > { %3312 = vmatmul.mubr.msk.f32.gmra.mrb[26].mxu0 %vm414_vm0, %v349_v57  ;;  %v1241_v57 = vld [vmem:[%s5149_s3 + $0x1c8] sm:$0xff]  ;;  %3421 = vmatpush1.bf16.msra.mxu1 %v3420_v56  ;;  %v3456_v53 = vpack.c.bf16 %v1863_v52, %v1861_v51 }
  0x46   : > { %755 = vmatprep.mubr.f32.mxu0 %v3721_v2  ;;  %v3422_v59 = vpack.c.bf16 %v1243_v58, %v1241_v57  ;;  %v377_v56 = vld [vmem:[%s3796_s19 + $0x148] sm:$0xff]  ;;  %v378_v57 = vld [vmem:[%s3796_s19 + $0x150] sm:$0xff] }
  0x47   : > { %v1866_v58 = vld [vmem:[%s5151_s5 + $0xe8] sm:$0xff] }
  0x48   : > { %3423 = vmatprep.subr.bf16.mxu1 %v3422_v59  ;;  %v1868_v59 = vld [vmem:[%s5151_s5 + $0xf8] sm:$0xff] }
  0x49   : > { %3313 = vmatmul.mubr.msk.f32.gmra.mrb[28].mxu0 %vm414_vm0, %v350_v5  ;;  %3425 = vmatpush1.bf16.msra.mxu1 %v3424_v63  ;;  %v1848_v5 = vld [vmem:[%s5151_s5 + $0x58] sm:$0xff]  ;;  %v3458_v60 = vpack.c.bf16 %v1868_v59, %v1866_v58 }
  0x4a   : > { %761 = vmatprep.mubr.f32.mxu0 %v3721_v2  ;;  %v3438_v8 = vpack.c.bf16 %v1848_v5, %v1846_v4  ;;  %3427 = vmatprep.subr.bf16.mxu1 %v3426_v7  ;;  %v382_v4 = vld [vmem:[%s3796_s19 + $0x170] sm:$0xff]  ;;  %v1870_v5 = vld [vmem:[%s5151_s5 + $0x108] sm:$0xff] }
  0x4b   : > { %v3462_v7 = vpack.c.bf16 %v1872_v6, %v1870_v5  ;;  %v394_v6 = vld [vmem:[%s3796_s19 + $0x1d0] sm:$0xff] }
  0x4c   : > { %3439 = vmatprep.subr.bf16.mxu0 %v3438_v8  ;;  %v1869_v8 = vld [vmem:[%s5151_s5 + $0x100] sm:$0xff] }
  0x4d   : > { %3314 = vmatmul.mubr.msk.f32.gmra.mrb[30].mxu0 %vm414_vm0, %v351_v14  ;;  %3429 = vmatpush1.bf16.msra.mxu1 %v3428_v13  ;;  %v359_v14 = vld [vmem:[%s3796_s19 + $0xb8] sm:$0xff]  ;;  %v3464_v10 = vpack.c.bf16 %v1871_v9, %v1869_v8  ;;  %v385_v13 = vld [vmem:[%s3796_s19 + $0x188] sm:$0xff] }
  0x4e   : > { %767 = vmatprep.mubr.f32.mxu0 %v3721_v2  ;;  %3441 = vmatpush1.bf16.msra.mxu0 %v3440_v12  ;;  %v384_v12 = vld [vmem:[%s3796_s19 + $0x180] sm:$0xff]  ;;  %v1884_v8 = vld [vmem:[%s5151_s5 + $0x178] sm:$0xff] }
  0x4f   : > { %3443 = vmatprep.subr.bf16.mxu0 %v3442_v20  ;;  %v1875_v20 = vld [vmem:[%s5151_s5 + $0x130] sm:$0xff] }
  0x51   : > { %3315 = vmatmul.mubr.msk.f32.gmra.mrb[32].mxu0 %vm414_vm0, %v352_v21  ;;  %v1849_v21 = vld [vmem:[%s5151_s5 + $0x60] sm:$0xff] }
  0x52   : > { %773 = vmatprep.mubr.f32.mxu0 %v3721_v2  ;;  %v3444_v23 = vpack.c.bf16 %v1851_v22, %v1849_v21 }
  0x54   : > { %3445 = vmatpush1.bf16.msra.mxu0 %v3444_v23  ;;  %v387_v23 = vld [vmem:[%s3796_s19 + $0x198] sm:$0xff] }
  0x55   : > { %3316 = vmatmul.mubr.msk.f32.gmra.mrb[34].mxu0 %vm414_vm0, %v353_v28  ;;  %v1854_v28 = vld [vmem:[%s5151_s5 + $0x88] sm:$0xff] }
  0x56   : > { %779 = vmatprep.mubr.f32.mxu0 %v3721_v2  ;;  %v3446_v30 = vpack.c.bf16 %v1856_v29, %v1854_v28  ;;  %v389_v29 = vld [vmem:[%s3796_s19 + $0x1a8] sm:$0xff] }
  0x58   : > { %3447 = vmatprep.subr.bf16.mxu0 %v3446_v30 }
  0x59   : > { %3317 = vmatmul.mubr.msk.f32.gmra.mrb[36].mxu0 %vm414_vm0, %v354_v39  ;;  %v1860_v39 = vld [vmem:[%s5151_s5 + $0xb8] sm:$0xff] }
  0x5a   : > { %785 = vmatprep.mubr.f32.mxu0 %v3721_v2  ;;  %3449 = vmatpush1.bf16.msra.mxu0 %v3448_v33  ;;  %v3450_v40 = vpack.c.bf16 %v1860_v39, %v1858_v38 }
  0x5c   : > { %3451 = vmatprep.subr.bf16.mxu0 %v3450_v40 }
  0x5d   : > { %3318 = vmatmul.mubr.msk.f32.gmra.mrb[38].mxu0 %vm414_vm0, %v355_v48  ;;  %v1862_v48 = vld [vmem:[%s5151_s5 + $0xc8] sm:$0xff] }
  0x5e   : > { %791 = vmatprep.mubr.f32.mxu0 %v3721_v2  ;;  %3453 = vmatpush1.bf16.msra.mxu0 %v3452_v43  ;;  %v3454_v50 = vpack.c.bf16 %v1864_v49, %v1862_v48  ;;  %v391_v48 = vld [vmem:[%s3796_s19 + $0x1b8] sm:$0xff] }
  0x60   : > { %3455 = vmatprep.subr.bf16.mxu0 %v3454_v50 }
  0x61   : > { %3319 = vmatmul.mubr.msk.f32.gmra.mrb[40].mxu0 %vm414_vm0, %v356_v55  ;;  %v376_v55 = vld [vmem:[%s3796_s19 + $0x140] sm:$0xff] }
  0x62   : > { %797 = vmatprep.mubr.f32.mxu0 %v3721_v2  ;;  %3457 = vmatpush1.bf16.msra.mxu0 %v3456_v53 }
  0x63   : > { %3459 = vmatprep.subr.bf16.mxu0 %v3458_v60 }
  0x65   : > { %3320 = vmatmul.mubr.msk.f32.gmra.mrb[42].mxu0 %vm414_vm0, %v357_v62  ;;  %v1867_v62 = vld [vmem:[%s5151_s5 + $0xf0] sm:$0xff] }
  0x66   : > { %803 = vmatprep.mubr.f32.mxu0 %v3721_v2  ;;  %v3460_v63 = vpack.c.bf16 %v1867_v62, %v1865_v61  ;;  %v393_v62 = vld [vmem:[%s3796_s19 + $0x1c8] sm:$0xff] }
  0x68   : > { %3461 = vmatpush1.bf16.msra.mxu0 %v3460_v63 }
  0x69   : > { %3321 = vmatmul.mubr.msk.f32.gmra.mrb[44].mxu0 %vm414_vm0, %v358_v0  ;;  %v379_v0 = vld [vmem:[%s3796_s19 + $0x158] sm:$0xff]  ;;  %3463 = vmatprep.subr.bf16.mxu0 %v3462_v7  ;;  %v1882_v7 = vld [vmem:[%s5151_s5 + $0x168] sm:$0xff] }
  0x6a   : > { %809 = vmatprep.mubr.f32.mxu0 %v3721_v2 }
  0x6c   : > { %3465 = vmatpush1.bf16.msra.mxu0 %v3464_v10 }
  0x6d   : > { %3322 = vmatmul.mubr.msk.f32.gmra.mrb[46].mxu0 %vm414_vm0, %v359_v14  ;;  %v404_v14 = vlaneseq }
  0x6e   : > { %815 = vmatprep.mubr.f32.mxu0 %v3721_v2 }
  0x6f   : > { %v405_v21 = vshrl.u32 %v404_v14, 7 }
  0x71   : > { %3323 = vmatmul.mubr.msk.f32.gmra.mrb[48].mxu0 %vm414_vm0, %v360_v15  ;;  %v386_v15 = vld [vmem:[%s3796_s19 + $0x190] sm:$0xff] }
  0x72   : > { %821 = vmatprep.mubr.f32.mxu0 %v3721_v2 }
  0x75   : > { %3324 = vmatmul.mubr.msk.f32.gmra.mrb[50].mxu0 %vm414_vm0, %v361_v16  ;;  %v1874_v16 = vld [vmem:[%s5151_s5 + $0x128] sm:$0xff] }
  0x76   : > { %827 = vmatprep.mubr.f32.mxu0 %v3721_v2  ;;  %v3466_v18 = vpack.c.bf16 %v1876_v17, %v1874_v16 }
  0x78   : > { %3467 = vmatprep.subr.bf16.mxu0 %v3466_v18 }
  0x79   : > { %3325 = vmatmul.mubr.msk.f32.gmra.mrb[52].mxu0 %vm414_vm0, %v362_v19  ;;  %v1873_v19 = vld [vmem:[%s5151_s5 + $0x120] sm:$0xff] }
  0x7a   : > { %833 = vmatprep.mubr.f32.mxu0 %v3721_v2  ;;  %v3468_v22 = vpack.c.bf16 %v1875_v20, %v1873_v19  ;;  %v395_v19 = vld [vmem:[%s3796_s19 + $0x1d8] sm:$0xff] }
  0x7c   : > { %3469 = vmatpush1.bf16.msra.mxu0 %v3468_v22 }
  0x7d   : > { %3326 = vmatmul.mubr.msk.f32.gmra.mrb[54].mxu0 %vm414_vm0, %v363_v24  ;;  %v4265_v24 = vsub.s32 0, %v405_v21 }
  0x7e   : > { %839 = vmatprep.mubr.f32.mxu0 %v3721_v2 }
  0x81   : > { %3327 = vmatmul.mubr.msk.f32.gmra.mrb[56].mxu0 %vm414_vm0, %v364_v25  ;;  %v388_v25 = vld [vmem:[%s3796_s19 + $0x1a0] sm:$0xff] }
  0x82   : > { %845 = vmatprep.mubr.f32.mxu0 %v3721_v2 }
  0x85   : > { %3328 = vmatmul.mubr.msk.f32.gmra.mrb[58].mxu0 %vm414_vm0, %v365_v26  ;;  %v402_v26 = vld [vmem:[%s5148_s2] sm:$0x3] }
  0x86   : > { %851 = vmatprep.mubr.f32.mxu0 %v3721_v2  ;;  %v4276_v28 = vrot.slane %v402_v26, %v4265_v24 }
  0x89   : > { %3329 = vmatmul.mubr.msk.f32.gmra.mrb[60].mxu0 %vm414_vm0, %v366_v27  ;;  %v4272_v27 = vsub.s32 1, %v405_v21 }
  0x8a   : > { %857 = vmatprep.mubr.f32.mxu0 %v3721_v2 }
  0x8b   : > { %v4281_v30 = vrot.slane %v402_v26, %v4272_v27 }
  0x8d   : > { %3330 = vmatmul.mubr.msk.f32.gmra.mrb[62].mxu0 %vm414_vm0, %v367_v34  ;;  %v390_v34 = vld [vmem:[%s3796_s19 + $0x1b0] sm:$0xff] }
  0x8e   : > { %863 = vmatprep.mubr.f32.mxu0 %v3721_v2 }
  0x91   : > { %3331 = vmatmul.mubr.msk.f32.gmra.mrb[64].mxu0 %vm414_vm0, %v368_v35 }
  0x92   : > { %869 = vmatprep.mubr.f32.mxu0 %v3721_v2 }
  0x95   : > { %3332 = vmatmul.mubr.msk.f32.gmra.mrb[66].mxu0 %vm414_vm0, %v369_v36  ;;  %v1878_v36 = vld [vmem:[%s5151_s5 + $0x148] sm:$0xff] }
  0x96   : > { %875 = vmatprep.mubr.f32.mxu0 %v3721_v2 }
  0x99   : > { %3333 = vmatmul.mubr.msk.f32.gmra.mrb[68].mxu0 %vm414_vm0, %v370_v37  ;;  %v1880_v37 = vld [vmem:[%s5151_s5 + $0x158] sm:$0xff] }
  0x9a   : > { %881 = vmatprep.mubr.f32.mxu0 %v3721_v2  ;;  %v3470_v40 = vpack.c.bf16 %v1880_v37, %v1878_v36  ;;  %v397_v37 = vld [vmem:[%s3796_s19 + $0x1e8] sm:$0xff] }
  0x9c   : > { %3471 = vmatprep.subr.bf16.mxu0 %v3470_v40 }
  0x9d   : > { %3334 = vmatmul.mubr.msk.f32.gmra.mrb[70].mxu0 %vm414_vm0, %v371_v44 }
  0x9e   : > { %887 = vmatprep.mubr.f32.mxu0 %v3721_v2 }
  0xa1   : > { %3335 = vmatmul.mubr.msk.f32.gmra.mrb[72].mxu0 %vm414_vm0, %v372_v45 }
  0xa2   : > { %893 = vmatprep.mubr.f32.mxu0 %v3721_v2 }
  0xa5   : > { %3336 = vmatmul.mubr.msk.f32.gmra.mrb[74].mxu0 %vm414_vm0, %v373_v46  ;;  %v3472_v46 = vpack.c.bf16 %v1879_v42, %v1877_v41 }
  0xa6   : > { %899 = vmatprep.mubr.f32.mxu0 %v3721_v2 }
  0xa7   : > { %3473 = vmatpush1.bf16.msra.mxu0 %v3472_v46  ;;  %v1888_v46 = vld [vmem:[%s5151_s5 + $0x198] sm:$0xff] }
  0xa9   : > { %3337 = vmatmul.mubr.msk.f32.gmra.mrb[76].mxu0 %vm414_vm0, %v374_v47 }
  0xaa   : > { %905 = vmatprep.mubr.f32.mxu0 %v3721_v2 }
  0xad   : > { %3338 = vmatmul.mubr.msk.f32.gmra.mrb[78].mxu0 %vm414_vm0, %v375_v54 }
  0xae   : > { %911 = vmatprep.mubr.f32.mxu0 %v3721_v2 }
  0xb1   : > { %3339 = vmatmul.mubr.msk.f32.gmra.mrb[80].mxu0 %vm414_vm0, %v376_v55  ;;  %v392_v55 = vld [vmem:[%s3796_s19 + $0x1c0] sm:$0xff] }
  0xb2   : > { %917 = vmatprep.mubr.f32.mxu0 %v3721_v2 }
  0xb5   : > { %3340 = vmatmul.mubr.msk.f32.gmra.mrb[82].mxu0 %vm414_vm0, %v377_v56 }
  0xb6   : > { %923 = vmatprep.mubr.f32.mxu0 %v3721_v2 }
  0xb9   : > { %3341 = vmatmul.mubr.msk.f32.gmra.mrb[84].mxu0 %vm414_vm0, %v378_v57 }
  0xba   : > { %929 = vmatprep.mubr.f32.mxu0 %v3721_v2 }
  0xbd   : > { %3342 = vmatmul.mubr.msk.f32.gmra.mrb[86].mxu0 %vm414_vm0, %v379_v0 }
  0xbe   : > { %935 = vmatprep.mubr.f32.mxu0 %v3721_v2 }
  0xc1   : > { %3343 = vmatmul.mubr.msk.f32.gmra.mrb[88].mxu0 %vm414_vm0, %v380_v1 }
  0xc2   : > { %941 = vmatprep.mubr.f32.mxu0 %v3721_v2 }
  0xc5   : > { %3344 = vmatmul.mubr.msk.f32.gmra.mrb[90].mxu0 %vm414_vm0, %v381_v3 }
  0xc6   : > { %947 = vmatprep.mubr.f32.mxu0 %v3721_v2 }
  0xc9   : > { %3345 = vmatmul.mubr.msk.f32.gmra.mrb[92].mxu0 %vm414_vm0, %v382_v4 }
  0xca   : > { %953 = vmatprep.mubr.f32.mxu0 %v3721_v2 }
  0xcd   : > { %3346 = vmatmul.mubr.msk.f32.gmra.mrb[94].mxu0 %vm414_vm0, %v383_v11  ;;  %v3474_v11 = vpack.c.bf16 %v1884_v8, %v1882_v7 }
  0xce   : > { %959 = vmatprep.mubr.f32.mxu0 %v3721_v2 }
  0xcf   : > { %3475 = vmatprep.subr.bf16.mxu0 %v3474_v11 }
  0xd1   : > { %3347 = vmatmul.mubr.msk.f32.gmra.mrb[96].mxu0 %vm414_vm0, %v384_v12  ;;  %v1881_v12 = vld [vmem:[%s5151_s5 + $0x160] sm:$0xff] }
  0xd2   : > { %965 = vmatprep.mubr.f32.mxu0 %v3721_v2 }
  0xd5   : > { %3348 = vmatmul.mubr.msk.f32.gmra.mrb[98].mxu0 %vm414_vm0, %v385_v13  ;;  %v1883_v13 = vld [vmem:[%s5151_s5 + $0x170] sm:$0xff] }
  0xd6   : > { %971 = vmatprep.mubr.f32.mxu0 %v3721_v2  ;;  %v3476_v17 = vpack.c.bf16 %v1883_v13, %v1881_v12  ;;  %v1890_v12 = vld [vmem:[%s5151_s5 + $0x1a8] sm:$0xff]  ;;  %v1892_v13 = vld [vmem:[%s5151_s5 + $0x1b8] sm:$0xff] }
  0xd8   : > { %3477 = vmatpush1.bf16.msra.mxu0 %v3476_v17  ;;  %v1889_v17 = vld [vmem:[%s5151_s5 + $0x1a0] sm:$0xff] }
  0xd9   : > { %3349 = vmatmul.mubr.msk.f32.gmra.mrb[100].mxu0 %vm414_vm0, %v386_v15 }
  0xda   : > { %977 = vmatprep.mubr.f32.mxu0 %v3721_v2 }
  0xdd   : > { %3350 = vmatmul.mubr.msk.f32.gmra.mrb[102].mxu0 %vm414_vm0, %v387_v23 }
  0xde   : > { %983 = vmatprep.mubr.f32.mxu0 %v3721_v2 }
  0xe1   : > { %3351 = vmatmul.mubr.msk.f32.gmra.mrb[104].mxu0 %vm414_vm0, %v388_v25 }
  0xe2   : > { %989 = vmatprep.mubr.f32.mxu0 %v3721_v2 }
  0xe4   : > { %v673_v31 = vpop.f32.mrb[0].mxu0 }
  0xe5   : > { %v674_v32 = vadd.f32 %v673_v31, %v4276_v28  ;;  %v675_v33 = vpop.f32.mrb[1].mxu0  ;;  %3352 = vmatmul.mubr.msk.f32.gmra.mrb[106].mxu0 %vm414_vm0, %v389_v29  ;;  %v396_v29 = vld [vmem:[%s3796_s19 + $0x1e0] sm:$0xff] }
  0xe6   : > { %995 = vmatprep.mubr.f32.mxu0 %v3721_v2  ;;  %v676_v35 = vadd.f32 %v675_v33, %v4281_v30 }
  0xe7   : > { %v1056_v45 = vmax.f32 %v674_v32, 0.0 }
  0xe8   : > { %v679_v38 = vpop.f32.mrb[2].mxu0  ;;  %v1057_v39 = vmax.f32 %v676_v35, 0.0 }
  0xe9   : > { %v680_v43 = vadd.f32 %v679_v38, %v4276_v28  ;;  %v681_v44 = vpop.f32.mrb[3].mxu0  ;;  %3353 = vmatmul.mubr.msk.f32.gmra.mrb[108].mxu0 %vm414_vm0, %v390_v34 }
  0xea   : > { %v682_v47 = vadd.f32 %v681_v44, %v4281_v30  ;;  %1324 = vmatprep.mubr.f32.mxu1 %v1057_v39  ;;  %1001 = vmatprep.mubr.f32.mxu0 %v3721_v2  ;;  %v398_v44 = vld [vmem:[%s3796_s19 + $0x1f0] sm:$0xff] }
  0xeb   : > { %1325 = vmatmul.mubr.f32.vlgmr.msra.gmra.mrb[0].mxu1 %v1056_v45  ;;  %v1058_v53 = vmax.f32 %v680_v43, 0.0  ;;  %v1886_v45 = vld [vmem:[%s5151_s5 + $0x188] sm:$0xff] }
  0xec   : > { %v685_v49 = vpop.f32.mrb[4].mxu0  ;;  %v1059_v50 = vmax.f32 %v682_v47, 0.0 }
  0xed   : > { %v686_v51 = vadd.f32 %v685_v49, %v4276_v28  ;;  %v687_v52 = vpop.f32.mrb[5].mxu0  ;;  %3354 = vmatmul.mubr.msk.f32.gmra.mrb[110].mxu0 %vm414_vm0, %v391_v48  ;;  %v3478_v49 = vpack.c.bf16 %v1888_v46, %v1886_v45  ;;  %v1894_v46 = vld [vmem:[%s5151_s5 + $0x1c8] sm:$0xff] }
  0xee   : > { %v688_v54 = vadd.f32 %v687_v52, %v4281_v30  ;;  %1330 = vmatprep.mubr.f32.mxu1 %v1059_v50  ;;  %1007 = vmatprep.mubr.f32.mxu0 %v3721_v2  ;;  %v1885_v50 = vld [vmem:[%s5151_s5 + $0x180] sm:$0xff] }
  0xef   : > { %1331 = vmatmul.mubr.f32.gmra.mrb[2].mxu1 %v1058_v53  ;;  %v1060_v60 = vmax.f32 %v686_v51, 0.0  ;;  %v1887_v51 = vld [vmem:[%s5151_s5 + $0x190] sm:$0xff]  ;;  %3479 = vmatprep.subr.bf16.mxu0 %v3478_v49 }
  0xf0   : > { %v691_v56 = vpop.f32.mrb[6].mxu0  ;;  %v1061_v57 = vmax.f32 %v688_v54, 0.0 }
  0xf1   : > { %v692_v58 = vadd.f32 %v691_v56, %v4276_v28  ;;  %v693_v59 = vpop.f32.mrb[7].mxu0  ;;  %3355 = vmatmul.mubr.msk.f32.gmra.mrb[112].mxu0 %vm414_vm0, %v392_v55  ;;  %v3480_v55 = vpack.c.bf16 %v1887_v51, %v1885_v50  ;;  %v1893_v51 = vld [vmem:[%s5151_s5 + $0x1c0] sm:$0xff] }
  0xf2   : > { %v694_v61 = vadd.f32 %v693_v59, %v4281_v30  ;;  %1336 = vmatprep.mubr.f32.mxu1 %v1061_v57  ;;  %1013 = vmatprep.mubr.f32.mxu0 %v3721_v2  ;;  %v399_v57 = vld [vmem:[%s3796_s19 + $0x1f8] sm:$0xff] }
  0xf3   : > { %1337 = vmatmul.mubr.f32.gmra.mrb[4].mxu1 %v1060_v60  ;;  %v1062_v4 = vmax.f32 %v692_v58, 0.0  ;;  %3481 = vmatpush1.bf16.msra.mxu0 %v3480_v55 }
  0xf4   : > { %v697_v63 = vpop.f32.mrb[8].mxu0  ;;  %v1063_v0 = vmax.f32 %v694_v61, 0.0 }
  0xf5   : > { %v698_v1 = vadd.f32 %v697_v63, %v4276_v28  ;;  %v699_v3 = vpop.f32.mrb[9].mxu0  ;;  %3356 = vmatmul.mubr.msk.f32.gmra.mrb[114].mxu0 %vm414_vm0, %v393_v62 }
  0xf6   : > { %v700_v5 = vadd.f32 %v699_v3, %v4281_v30  ;;  %1342 = vmatprep.mubr.f32.mxu1 %v1063_v0  ;;  %1019 = vmatprep.mubr.f32.mxu0 %v3721_v2 }
  0xf7   : > { %1343 = vmatmul.mubr.f32.gmra.mrb[6].mxu1 %v1062_v4  ;;  %v1064_v16 = vmax.f32 %v698_v1, 0.0 }
  0xf8   : > { %v703_v9 = vpop.f32.mrb[10].mxu0  ;;  %v1065_v10 = vmax.f32 %v700_v5, 0.0 }
  0xf9   : > { %v704_v14 = vadd.f32 %v703_v9, %v4276_v28  ;;  %v705_v15 = vpop.f32.mrb[11].mxu0  ;;  %3357 = vmatmul.mubr.msk.f32.gmra.mrb[116].mxu0 %vm414_vm0, %v394_v6 }
  0xfa   : > { %v706_v18 = vadd.f32 %v705_v15, %v4281_v30  ;;  %1348 = vmatprep.mubr.f32.mxu1 %v1065_v10  ;;  %1025 = vmatprep.mubr.f32.mxu0 %v3721_v2 }
  0xfb   : > { %1349 = vmatmul.mubr.f32.gmra.mrb[8].mxu1 %v1064_v16  ;;  %v1066_v25 = vmax.f32 %v704_v14, 0.0  ;;  %v3482_v16 = vpack.c.bf16 %v1892_v13, %v1890_v12  ;;  %v1898_v12 = vld [vmem:[%s5151_s5 + $0x1e8] sm:$0xff]  ;;  %v1900_v13 = vld [vmem:[%s5151_s5 + $0x1f8] sm:$0xff] }
  0xfc   : > { %v709_v20 = vpop.f32.mrb[12].mxu0  ;;  %v1067_v21 = vmax.f32 %v706_v18, 0.0  ;;  %v1891_v18 = vld [vmem:[%s5151_s5 + $0x1b0] sm:$0xff] }
  0xfd   : > { %v710_v22 = vadd.f32 %v709_v20, %v4276_v28  ;;  %v711_v23 = vpop.f32.mrb[13].mxu0  ;;  %3358 = vmatmul.mubr.msk.f32.gmra.mrb[118].mxu0 %vm414_vm0, %v395_v19  ;;  %3483 = vmatprep.subr.bf16.mxu0 %v3482_v16  ;;  %v3490_v16 = vpack.c.bf16 %v1900_v13, %v1898_v12 }
  0xfe   : > { %v712_v26 = vadd.f32 %v711_v23, %v4281_v30  ;;  %1354 = vmatprep.mubr.f32.mxu1 %v1067_v21  ;;  %1031 = vmatprep.mubr.f32.mxu0 %v3721_v2 }
  0xff   : > { %1355 = vmatmul.mubr.f32.gmra.mrb[10].mxu1 %v1066_v25  ;;  %v1068_v35 = vmax.f32 %v710_v22, 0.0  ;;  %v3484_v22 = vpack.c.bf16 %v1891_v18, %v1889_v17  ;;  %v1897_v17 = vld [vmem:[%s5151_s5 + $0x1e0] sm:$0xff]  ;;  %v1899_v18 = vld [vmem:[%s5151_s5 + $0x1f0] sm:$0xff] }
 0x100   : > { %v715_v31 = vpop.f32.mrb[14].mxu0  ;;  %v1069_v32 = vmax.f32 %v712_v26, 0.0 }
 0x101   : > { %v716_v33 = vadd.f32 %v715_v31, %v4276_v28  ;;  %v717_v34 = vpop.f32.mrb[15].mxu0  ;;  %3359 = vmatmul.mubr.msk.f32.gmra.mrb[120].mxu0 %vm414_vm0, %v396_v29 }
 0x102   : > { %v718_v36 = vadd.f32 %v717_v34, %v4281_v30  ;;  %1360 = vmatprep.mubr.f32.mxu1 %v1069_v32  ;;  %1037 = vmatprep.mubr.f32.mxu0 %v3721_v2 }
 0x103   : > { %1361 = vmatmul.mubr.f32.gmra.mrb[12].mxu1 %v1068_v35  ;;  %v1070_v40 = vmax.f32 %v716_v33, 0.0  ;;  %3485 = vmatpush1.bf16.msra.mxu0 %v3484_v22  ;;  %v3492_v22 = vpack.c.bf16 %v1899_v18, %v1897_v17 }
 0x104   : > { %v1071_v38 = vmax.f32 %v718_v36, 0.0  ;;  %v721_v39 = vpop.f32.mrb[16].mxu0 }
 0x105   : > { %v722_v41 = vadd.f32 %v721_v39, %v4276_v28  ;;  %v723_v42 = vpop.f32.mrb[17].mxu0  ;;  %3360 = vmatmul.mubr.msk.f32.gmra.mrb[122].mxu0 %vm414_vm0, %v397_v37 }
 0x106   : > { %v724_v43 = vadd.f32 %v723_v42, %v4281_v30  ;;  %1366 = vmatprep.mubr.f32.mxu1 %v1071_v38  ;;  %1043 = vmatprep.mubr.f32.mxu0 %v3721_v2 }
 0x107   : > { %1367 = vmatmul.mubr.f32.gmra.mrb[14].mxu1 %v1070_v40  ;;  %v1072_v52 = vmax.f32 %v722_v41, 0.0 }
 0x108   : > { %v1073_v47 = vmax.f32 %v724_v43, 0.0  ;;  %v727_v48 = vpop.f32.mrb[18].mxu0 }
 0x109   : > { %v728_v53 = vadd.f32 %v727_v48, %v4276_v28  ;;  %v729_v54 = vpop.f32.mrb[19].mxu0  ;;  %3361 = vmatmul.mubr.msk.f32.gmra.mrb[124].mxu0 %vm414_vm0, %v398_v44 }
 0x10a   : > { %v730_v56 = vadd.f32 %v729_v54, %v4281_v30  ;;  %1372 = vmatprep.mubr.f32.mxu1 %v1073_v47  ;;  %1049 = vmatprep.mubr.f32.mxu0 %v3721_v2  ;;  %v1896_v47 = vld [vmem:[%s5151_s5 + $0x1d8] sm:$0xff] }
 0x10b   : > { %1373 = vmatmul.mubr.f32.gmra.mrb[16].mxu1 %v1072_v52  ;;  %v1074_v60 = vmax.f32 %v728_v53, 0.0  ;;  %v3486_v50 = vpack.c.bf16 %v1896_v47, %v1894_v46  ;;  %v1895_v52 = vld [vmem:[%s5151_s5 + $0x1d0] sm:$0xff] }
 0x10c   : > { %v1075_v58 = vmax.f32 %v730_v56, 0.0  ;;  %v733_v59 = vpop.f32.mrb[20].mxu0  ;;  %v3488_v56 = vpack.c.bf16 %v1895_v52, %v1893_v51 }
 0x10d   : > { %v734_v61 = vadd.f32 %v733_v59, %v4276_v28  ;;  %v735_v62 = vpop.f32.mrb[21].mxu0  ;;  %3362 = vmatmul.mubr.msk.f32.gmra.mrb[126].mxu0 %vm414_vm0, %v399_v57  ;;  %3487 = vmatprep.subr.bf16.mxu0 %v3486_v50 }
 0x10e   : > { %v736_v63 = vadd.f32 %v735_v62, %v4281_v30  ;;  %1378 = vmatprep.mubr.f32.mxu1 %v1075_v58  ;;  %3489 = vmatpush1.bf16.msra.mxu0 %v3488_v56 }
 0x10f   : > { %1379 = vmatmul.mubr.f32.gmra.mrb[18].mxu1 %v1074_v60  ;;  %v1076_v3 = vmax.f32 %v734_v61, 0.0  ;;  %3491 = vmatprep.subr.bf16.mxu0 %v3490_v16 }
 0x110   : > { %v1077_v0 = vmax.f32 %v736_v63, 0.0  ;;  %v739_v1 = vpop.f32.mrb[22].mxu0 }
 0x111   : > { %v740_v2 = vadd.f32 %v739_v1, %v4276_v28  ;;  %v741_v4 = vpop.f32.mrb[23].mxu0 }
 0x112   : > { %v742_v5 = vadd.f32 %v741_v4, %v4281_v30  ;;  %1384 = vmatprep.mubr.f32.mxu1 %v1077_v0  ;;  %3493 = vmatpush1.bf16.msra.mxu0 %v3492_v22 }
 0x113   : > { %1385 = vmatmul.mubr.f32.gmra.mrb[20].mxu1 %v1076_v3  ;;  %v1078_v8 = vmax.f32 %v740_v2, 0.0 }
 0x114   : > { %v1079_v6 = vmax.f32 %v742_v5, 0.0  ;;  %v745_v7 = vpop.f32.mrb[24].mxu0 }
 0x115   : > { %v746_v9 = vadd.f32 %v745_v7, %v4276_v28  ;;  %v747_v10 = vpop.f32.mrb[25].mxu0 }
 0x116   : > { %v748_v11 = vadd.f32 %v747_v10, %v4281_v30  ;;  %1390 = vmatprep.mubr.f32.mxu1 %v1079_v6 }
 0x117   : > { %1391 = vmatmul.mubr.f32.gmra.mrb[22].mxu1 %v1078_v8  ;;  %v1080_v19 = vmax.f32 %v746_v9, 0.0 }
 0x118   : > { %v1081_v14 = vmax.f32 %v748_v11, 0.0  ;;  %v751_v15 = vpop.f32.mrb[26].mxu0 }
 0x119   : > { %v752_v20 = vadd.f32 %v751_v15, %v4276_v28  ;;  %v753_v21 = vpop.f32.mrb[27].mxu0 }
 0x11a   : > { %v754_v23 = vadd.f32 %v753_v21, %v4281_v30  ;;  %1396 = vmatprep.mubr.f32.mxu1 %v1081_v14 }
 0x11b   : > { %1397 = vmatmul.mubr.f32.gmra.mrb[24].mxu1 %v1080_v19  ;;  %v1082_v29 = vmax.f32 %v752_v20, 0.0 }
 0x11c   : > { %v1083_v25 = vmax.f32 %v754_v23, 0.0  ;;  %v757_v26 = vpop.f32.mrb[28].mxu0 }
 0x11d   : > { %v758_v31 = vadd.f32 %v757_v26, %v4276_v28  ;;  %v759_v32 = vpop.f32.mrb[29].mxu0 }
 0x11e   : > { %v760_v33 = vadd.f32 %v759_v32, %v4281_v30  ;;  %1402 = vmatprep.mubr.f32.mxu1 %v1083_v25 }
 0x11f   : > { %1403 = vmatmul.mubr.f32.gmra.mrb[26].mxu1 %v1082_v29  ;;  %v1084_v36 = vmax.f32 %v758_v31, 0.0  ;;  %v2490_v29 = vld [vmem:[%s5153_s7] sm:$0xff]  ;;  %v2491_v31 = vld [vmem:[%s5153_s7 + $0x8] sm:$0xff] }
 0x120   : > { %v1085_v34 = vmax.f32 %v760_v33, 0.0  ;;  %v763_v35 = vpop.f32.mrb[30].mxu0 }
 0x121   : > { %v764_v37 = vadd.f32 %v763_v35, %v4276_v28  ;;  %v765_v38 = vpop.f32.mrb[31].mxu0  ;;  %v3722_v35 = vmov 0.0|0.0  }
 0x122   : > { %v766_v39 = vadd.f32 %v765_v38, %v4281_v30  ;;  %1408 = vmatprep.mubr.f32.mxu1 %v1085_v34  ;;  %3542 = vmatprep.subr.bf16.mxu1 %v3722_v35 }
 0x123   : > { %1409 = vmatmul.mubr.f32.gmra.mrb[28].mxu1 %v1084_v36  ;;  %v1086_v42 = vmax.f32 %v764_v37, 0.0  ;;  %v4438_v36 = vpack.c.bf16 %v2491_v31, %v2490_v29  ;;  %3494 = vmatprep.subr.bf16.mxu0 %v3722_v35  ;;  %v2495_v29 = vld [vmem:[%s5153_s7 + $0x28] sm:$0xff] }
 0x124   : > { %v1087_v40 = vmax.f32 %v766_v39, 0.0  ;;  %v769_v41 = vpop.f32.mrb[32].mxu0 }
 0x125   : > { %v770_v43 = vadd.f32 %v769_v41, %v4276_v28  ;;  %v771_v44 = vpop.f32.mrb[33].mxu0  ;;  %3558 = vmatpush1.bf16.msra.mxu1 %v4438_v36 }
 0x126   : > { %v772_v45 = vadd.f32 %v771_v44, %v4281_v30  ;;  %1414 = vmatprep.mubr.f32.mxu1 %v1087_v40  ;;  %3543 = vmatprep.subr.bf16.mxu1 %v3722_v35 }
 0x127   : > { %1415 = vmatmul.mubr.f32.gmra.mrb[30].mxu1 %v1086_v42  ;;  %v1088_v53 = vmax.f32 %v770_v43, 0.0 }
 0x128   : > { %v1089_v48 = vmax.f32 %v772_v45, 0.0  ;;  %v775_v49 = vpop.f32.mrb[34].mxu0 }
 0x129   : > { %v776_v54 = vadd.f32 %v775_v49, %v4276_v28  ;;  %v777_v55 = vpop.f32.mrb[35].mxu0 }
 0x12a   : > { %v778_v57 = vadd.f32 %v777_v55, %v4281_v30  ;;  %1420 = vmatprep.mubr.f32.mxu1 %v1089_v48 }
 0x12b   : > { %1421 = vmatmul.mubr.f32.gmra.mrb[32].mxu1 %v1088_v53  ;;  %v1090_v60 = vmax.f32 %v776_v54, 0.0 }
 0x12c   : > { %v1091_v58 = vmax.f32 %v778_v57, 0.0  ;;  %v781_v59 = vpop.f32.mrb[36].mxu0 }
 0x12d   : > { %v782_v61 = vadd.f32 %v781_v59, %v4276_v28  ;;  %v783_v62 = vpop.f32.mrb[37].mxu0 }
 0x12e   : > { %v784_v63 = vadd.f32 %v783_v62, %v4281_v30  ;;  %1426 = vmatprep.mubr.f32.mxu1 %v1091_v58  ;;  %v2492_v62 = vld [vmem:[%s5153_s7 + $0x10] sm:$0xff] }
 0x12f   : > { %1427 = vmatmul.mubr.f32.gmra.mrb[34].mxu1 %v1090_v60  ;;  %v1092_v3 = vmax.f32 %v782_v61, 0.0 }
 0x130   : > { %v1093_v0 = vmax.f32 %v784_v63, 0.0  ;;  %v787_v1 = vpop.f32.mrb[38].mxu0  ;;  %v2493_v63 = vld [vmem:[%s5153_s7 + $0x18] sm:$0xff] }
 0x131   : > { %v788_v2 = vadd.f32 %v787_v1, %v4276_v28  ;;  %v789_v4 = vpop.f32.mrb[39].mxu0 }
 0x132   : > { %v790_v5 = vadd.f32 %v789_v4, %v4281_v30  ;;  %1432 = vmatprep.mubr.f32.mxu1 %v1093_v0  ;;  %v4458_v0 = vpack.c.bf16 %v2493_v63, %v2492_v62 }
 0x133   : > { %1433 = vmatmul.mubr.f32.gmra.mrb[36].mxu1 %v1092_v3  ;;  %v1094_v8 = vmax.f32 %v788_v2, 0.0 }
 0x134   : > { %v1095_v6 = vmax.f32 %v790_v5, 0.0  ;;  %v793_v7 = vpop.f32.mrb[40].mxu0  ;;  %3559 = vmatpush1.bf16.msra.mxu1 %v4458_v0 }
 0x135   : > { %v794_v9 = vadd.f32 %v793_v7, %v4276_v28  ;;  %v795_v10 = vpop.f32.mrb[41].mxu0  ;;  %3544 = vmatprep.subr.bf16.mxu1 %v3722_v35 }
 0x136   : > { %v796_v11 = vadd.f32 %v795_v10, %v4281_v30  ;;  %1438 = vmatprep.mubr.f32.mxu1 %v1095_v6 }
 0x137   : > { %1439 = vmatmul.mubr.f32.gmra.mrb[38].mxu1 %v1094_v8  ;;  %v1096_v19 = vmax.f32 %v794_v9, 0.0 }
 0x138   : > { %v1097_v14 = vmax.f32 %v796_v11, 0.0  ;;  %v799_v15 = vpop.f32.mrb[42].mxu0 }
 0x139   : > { %v800_v20 = vadd.f32 %v799_v15, %v4276_v28  ;;  %v801_v21 = vpop.f32.mrb[43].mxu0 }
 0x13a   : > { %v802_v23 = vadd.f32 %v801_v21, %v4281_v30  ;;  %1444 = vmatprep.mubr.f32.mxu1 %v1097_v14 }
 0x13b   : > { %1445 = vmatmul.mubr.f32.gmra.mrb[40].mxu1 %v1096_v19  ;;  %v1098_v32 = vmax.f32 %v800_v20, 0.0 }
 0x13c   : > { %v1099_v25 = vmax.f32 %v802_v23, 0.0  ;;  %v805_v26 = vpop.f32.mrb[44].mxu0 }
 0x13d   : > { %v806_v33 = vadd.f32 %v805_v26, %v4276_v28  ;;  %v807_v34 = vpop.f32.mrb[45].mxu0  ;;  %v2494_v26 = vld [vmem:[%s5153_s7 + $0x20] sm:$0xff] }
 0x13e   : > { %v808_v37 = vadd.f32 %v807_v34, %v4281_v30  ;;  %1450 = vmatprep.mubr.f32.mxu1 %v1099_v25  ;;  %v4476_v31 = vpack.c.bf16 %v2495_v29, %v2494_v26 }
 0x13f   : > { %1451 = vmatmul.mubr.f32.gmra.mrb[42].mxu1 %v1098_v32  ;;  %v1100_v40 = vmax.f32 %v806_v33, 0.0 }
 0x140   : > { %v1101_v38 = vmax.f32 %v808_v37, 0.0  ;;  %v811_v39 = vpop.f32.mrb[46].mxu0  ;;  %3560 = vmatpush1.bf16.msra.mxu1 %v4476_v31 }
 0x141   : > { %v812_v41 = vadd.f32 %v811_v39, %v4276_v28  ;;  %v813_v42 = vpop.f32.mrb[47].mxu0  ;;  %3545 = vmatprep.subr.bf16.mxu1 %v3722_v35 }
 0x142   : > { %v814_v43 = vadd.f32 %v813_v42, %v4281_v30  ;;  %1456 = vmatprep.mubr.f32.mxu1 %v1101_v38 }
 0x143   : > { %1457 = vmatmul.mubr.f32.gmra.mrb[44].mxu1 %v1100_v40  ;;  %v1102_v46 = vmax.f32 %v812_v41, 0.0 }
 0x144   : > { %v1103_v44 = vmax.f32 %v814_v43, 0.0  ;;  %v817_v45 = vpop.f32.mrb[48].mxu0 }
 0x145   : > { %v818_v47 = vadd.f32 %v817_v45, %v4276_v28  ;;  %v819_v48 = vpop.f32.mrb[49].mxu0 }
 0x146   : > { %v820_v49 = vadd.f32 %v819_v48, %v4281_v30  ;;  %1462 = vmatprep.mubr.f32.mxu1 %v1103_v44 }
 0x147   : > { %1463 = vmatmul.mubr.f32.gmra.mrb[46].mxu1 %v1102_v46  ;;  %v1104_v52 = vmax.f32 %v818_v47, 0.0 }
 0x148   : > { %v1105_v50 = vmax.f32 %v820_v49, 0.0  ;;  %v823_v51 = vpop.f32.mrb[50].mxu0 }
 0x149   : > { %v824_v53 = vadd.f32 %v823_v51, %v4276_v28  ;;  %v825_v54 = vpop.f32.mrb[51].mxu0 }
 0x14a   : > { %v826_v55 = vadd.f32 %v825_v54, %v4281_v30  ;;  %1468 = vmatprep.mubr.f32.mxu1 %v1105_v50 }
 0x14b   : > { %1469 = vmatmul.mubr.f32.gmra.mrb[48].mxu1 %v1104_v52  ;;  %v1106_v58 = vmax.f32 %v824_v53, 0.0 }
 0x14c   : > { %v1107_v56 = vmax.f32 %v826_v55, 0.0  ;;  %v829_v57 = vpop.f32.mrb[52].mxu0 }
 0x14d   : > { %v830_v59 = vadd.f32 %v829_v57, %v4276_v28  ;;  %v831_v60 = vpop.f32.mrb[53].mxu0 }
 0x14e   : > { %v832_v61 = vadd.f32 %v831_v60, %v4281_v30  ;;  %1474 = vmatprep.mubr.f32.mxu1 %v1107_v56 }
 0x14f   : > { %1475 = vmatmul.mubr.f32.gmra.mrb[50].mxu1 %v1106_v58  ;;  %v1108_v2 = vmax.f32 %v830_v59, 0.0  ;;  %v2496_v58 = vld [vmem:[%s5153_s7 + $0x30] sm:$0xff]  ;;  %v2497_v59 = vld [vmem:[%s5153_s7 + $0x38] sm:$0xff] }
 0x150   : > { %v1109_v1 = vmax.f32 %v832_v61, 0.0  ;;  %v835_v3 = vpop.f32.mrb[54].mxu0  ;;  %v4494_v60 = vpack.c.bf16 %v2497_v59, %v2496_v58 }
 0x151   : > { %v836_v4 = vadd.f32 %v835_v3, %v4276_v28  ;;  %v837_v5 = vpop.f32.mrb[55].mxu0 }
 0x152   : > { %v838_v6 = vadd.f32 %v837_v5, %v4281_v30  ;;  %1480 = vmatprep.mubr.f32.mxu1 %v1109_v1  ;;  %3561 = vmatpush1.bf16.msra.mxu1 %v4494_v60 }
 0x153   : > { %1481 = vmatmul.mubr.f32.gmra.mrb[52].mxu1 %v1108_v2  ;;  %v1110_v9 = vmax.f32 %v836_v4, 0.0  ;;  %3546 = vmatprep.subr.bf16.mxu1 %v3722_v35 }
 0x154   : > { %v1111_v7 = vmax.f32 %v838_v6, 0.0  ;;  %v841_v8 = vpop.f32.mrb[56].mxu0 }
 0x155   : > { %v842_v10 = vadd.f32 %v841_v8, %v4276_v28  ;;  %v843_v11 = vpop.f32.mrb[57].mxu0 }
 0x156   : > { %v844_v12 = vadd.f32 %v843_v11, %v4281_v30  ;;  %1486 = vmatprep.mubr.f32.mxu1 %v1111_v7 }
 0x157   : > { %1487 = vmatmul.mubr.f32.gmra.mrb[54].mxu1 %v1110_v9  ;;  %v1112_v15 = vmax.f32 %v842_v10, 0.0 }
 0x158   : > { %v1113_v13 = vmax.f32 %v844_v12, 0.0  ;;  %v847_v14 = vpop.f32.mrb[58].mxu0 }
 0x159   : > { %v848_v16 = vadd.f32 %v847_v14, %v4276_v28  ;;  %v849_v17 = vpop.f32.mrb[59].mxu0 }
 0x15a   : > { %v850_v18 = vadd.f32 %v849_v17, %v4281_v30  ;;  %1492 = vmatprep.mubr.f32.mxu1 %v1113_v13 }
 0x15b   : > { %1493 = vmatmul.mubr.f32.gmra.mrb[56].mxu1 %v1112_v15  ;;  %v1114_v21 = vmax.f32 %v848_v16, 0.0 }
 0x15c   : > { %v1115_v19 = vmax.f32 %v850_v18, 0.0  ;;  %v853_v20 = vpop.f32.mrb[60].mxu0 }
 0x15d   : > { %v854_v22 = vadd.f32 %v853_v20, %v4276_v28  ;;  %v855_v23 = vpop.f32.mrb[61].mxu0 }
 0x15e   : > { %v856_v25 = vadd.f32 %v855_v23, %v4281_v30  ;;  %1498 = vmatprep.mubr.f32.mxu1 %v1115_v19  ;;  %v2499_v23 = vld [vmem:[%s5153_s7 + $0x48] sm:$0xff] }
 0x15f   : > { %1499 = vmatmul.mubr.f32.gmra.mrb[58].mxu1 %v1114_v21  ;;  %v1116_v34 = vmax.f32 %v854_v22, 0.0  ;;  %v2498_v22 = vld [vmem:[%s5153_s7 + $0x40] sm:$0xff] }
 0x160   : > { %v1117_v32 = vmax.f32 %v856_v25, 0.0  ;;  %v859_v33 = vpop.f32.mrb[62].mxu0  ;;  %v4512_v25 = vpack.c.bf16 %v2499_v23, %v2498_v22  ;;  %v2503_v22 = vld [vmem:[%s5153_s7 + $0x68] sm:$0xff] }
 0x161   : > { %v860_v37 = vadd.f32 %v859_v33, %v4276_v28  ;;  %v861_v38 = vpop.f32.mrb[63].mxu0 }
 0x162   : > { %v862_v39 = vadd.f32 %v861_v38, %v4281_v30  ;;  %1504 = vmatprep.mubr.f32.mxu1 %v1117_v32  ;;  %3562 = vmatpush1.bf16.msra.mxu1 %v4512_v25 }
 0x163   : > { %1505 = vmatmul.mubr.f32.gmra.mrb[60].mxu1 %v1116_v34  ;;  %v1118_v42 = vmax.f32 %v860_v37, 0.0  ;;  %3547 = vmatprep.subr.bf16.mxu1 %v3722_v35 }
 0x164   : > { %v1119_v40 = vmax.f32 %v862_v39, 0.0  ;;  %v865_v41 = vpop.f32.mrb[64].mxu0 }
 0x165   : > { %v866_v43 = vadd.f32 %v865_v41, %v4276_v28  ;;  %v867_v44 = vpop.f32.mrb[65].mxu0 }
 0x166   : > { %v868_v45 = vadd.f32 %v867_v44, %v4281_v30  ;;  %1510 = vmatprep.mubr.f32.mxu1 %v1119_v40 }
 0x167   : > { %1511 = vmatmul.mubr.f32.gmra.mrb[62].mxu1 %v1118_v42  ;;  %v1120_v48 = vmax.f32 %v866_v43, 0.0 }
 0x168   : > { %v1121_v46 = vmax.f32 %v868_v45, 0.0  ;;  %v871_v47 = vpop.f32.mrb[66].mxu0 }
 0x169   : > { %v872_v49 = vadd.f32 %v871_v47, %v4276_v28  ;;  %v873_v50 = vpop.f32.mrb[67].mxu0 }
 0x16a   : > { %v874_v51 = vadd.f32 %v873_v50, %v4281_v30  ;;  %1516 = vmatprep.mubr.f32.mxu1 %v1121_v46 }
 0x16b   : > { %1517 = vmatmul.mubr.f32.gmra.mrb[64].mxu1 %v1120_v48  ;;  %v1122_v54 = vmax.f32 %v872_v49, 0.0 }
 0x16c   : > { %v1123_v52 = vmax.f32 %v874_v51, 0.0  ;;  %v877_v53 = vpop.f32.mrb[68].mxu0 }
 0x16d   : > { %v878_v55 = vadd.f32 %v877_v53, %v4276_v28  ;;  %v879_v56 = vpop.f32.mrb[69].mxu0 }
 0x16e   : > { %v880_v57 = vadd.f32 %v879_v56, %v4281_v30  ;;  %1522 = vmatprep.mubr.f32.mxu1 %v1123_v52  ;;  %v2500_v56 = vld [vmem:[%s5153_s7 + $0x50] sm:$0xff] }
 0x16f   : > { %1523 = vmatmul.mubr.f32.gmra.mrb[66].mxu1 %v1122_v54  ;;  %v1124_v63 = vmax.f32 %v878_v55, 0.0 }
 0x170   : > { %v1125_v61 = vmax.f32 %v880_v57, 0.0  ;;  %v883_v62 = vpop.f32.mrb[70].mxu0  ;;  %v2501_v57 = vld [vmem:[%s5153_s7 + $0x58] sm:$0xff] }
 0x171   : > { %v884_v1 = vadd.f32 %v883_v62, %v4276_v28  ;;  %v885_v3 = vpop.f32.mrb[71].mxu0  ;;  %v4530_v58 = vpack.c.bf16 %v2501_v57, %v2500_v56  ;;  %v2504_v56 = vld [vmem:[%s5153_s7 + $0x70] sm:$0xff]  ;;  %v2505_v57 = vld [vmem:[%s5153_s7 + $0x78] sm:$0xff] }
 0x172   : > { %v886_v2 = vadd.f32 %v885_v3, %v4281_v30  ;;  %1528 = vmatprep.mubr.f32.mxu1 %v1125_v61 }
 0x173   : > { %1529 = vmatmul.mubr.f32.gmra.mrb[68].mxu1 %v1124_v63  ;;  %v1126_v6 = vmax.f32 %v884_v1, 0.0 }
 0x174   : > { %v1127_v4 = vmax.f32 %v886_v2, 0.0  ;;  %v889_v5 = vpop.f32.mrb[72].mxu0  ;;  %3563 = vmatpush1.bf16.msra.mxu1 %v4530_v58 }
 0x175   : > { %v890_v7 = vadd.f32 %v889_v5, %v4276_v28  ;;  %v891_v8 = vpop.f32.mrb[73].mxu0  ;;  %3548 = vmatprep.subr.bf16.mxu1 %v3722_v35 }
 0x176   : > { %v892_v9 = vadd.f32 %v891_v8, %v4281_v30  ;;  %1534 = vmatprep.mubr.f32.mxu1 %v1127_v4 }
 0x177   : > { %1535 = vmatmul.mubr.f32.gmra.mrb[70].mxu1 %v1126_v6  ;;  %v1128_v12 = vmax.f32 %v890_v7, 0.0 }
 0x178   : > { %v1129_v10 = vmax.f32 %v892_v9, 0.0  ;;  %v895_v11 = vpop.f32.mrb[74].mxu0 }
 0x179   : > { %v896_v13 = vadd.f32 %v895_v11, %v4276_v28  ;;  %v897_v14 = vpop.f32.mrb[75].mxu0 }
 0x17a   : > { %v898_v15 = vadd.f32 %v897_v14, %v4281_v30  ;;  %1540 = vmatprep.mubr.f32.mxu1 %v1129_v10 }
 0x17b   : > { %1541 = vmatmul.mubr.f32.gmra.mrb[72].mxu1 %v1128_v12  ;;  %v1130_v18 = vmax.f32 %v896_v13, 0.0 }
 0x17c   : > { %v1131_v16 = vmax.f32 %v898_v15, 0.0  ;;  %v901_v17 = vpop.f32.mrb[76].mxu0 }
 0x17d   : > { %v902_v19 = vadd.f32 %v901_v17, %v4276_v28  ;;  %v903_v20 = vpop.f32.mrb[77].mxu0 }
 0x17e   : > { %v904_v21 = vadd.f32 %v903_v20, %v4281_v30  ;;  %1546 = vmatprep.mubr.f32.mxu1 %v1131_v16 }
 0x17f   : > { %1547 = vmatmul.mubr.f32.gmra.mrb[74].mxu1 %v1130_v18  ;;  %v1132_v32 = vmax.f32 %v902_v19, 0.0 }
 0x180   : > { %v1133_v26 = vmax.f32 %v904_v21, 0.0  ;;  %v907_v29 = vpop.f32.mrb[78].mxu0  ;;  %v2502_v21 = vld [vmem:[%s5153_s7 + $0x60] sm:$0xff] }
 0x181   : > { %v908_v33 = vadd.f32 %v907_v29, %v4276_v28  ;;  %v909_v34 = vpop.f32.mrb[79].mxu0  ;;  %v4548_v23 = vpack.c.bf16 %v2503_v22, %v2502_v21 }
 0x182   : > { %v910_v37 = vadd.f32 %v909_v34, %v4281_v30  ;;  %1552 = vmatprep.mubr.f32.mxu1 %v1133_v26 }
 0x183   : > { %1553 = vmatmul.mubr.f32.gmra.mrb[76].mxu1 %v1132_v32  ;;  %v1134_v40 = vmax.f32 %v908_v33, 0.0 }
 0x184   : > { %v1135_v38 = vmax.f32 %v910_v37, 0.0  ;;  %v913_v39 = vpop.f32.mrb[80].mxu0  ;;  %3564 = vmatpush1.bf16.msra.mxu1 %v4548_v23 }
 0x185   : > { %v914_v41 = vadd.f32 %v913_v39, %v4276_v28  ;;  %v915_v42 = vpop.f32.mrb[81].mxu0  ;;  %3549 = vmatprep.subr.bf16.mxu1 %v3722_v35 }
 0x186   : > { %v916_v43 = vadd.f32 %v915_v42, %v4281_v30  ;;  %1558 = vmatprep.mubr.f32.mxu1 %v1135_v38 }
 0x187   : > { %1559 = vmatmul.mubr.f32.gmra.mrb[78].mxu1 %v1134_v40  ;;  %v1136_v46 = vmax.f32 %v914_v41, 0.0 }
 0x188   : > { %v1137_v44 = vmax.f32 %v916_v43, 0.0  ;;  %v919_v45 = vpop.f32.mrb[82].mxu0 }
 0x189   : > { %v920_v47 = vadd.f32 %v919_v45, %v4276_v28  ;;  %v921_v48 = vpop.f32.mrb[83].mxu0 }
 0x18a   : > { %v922_v49 = vadd.f32 %v921_v48, %v4281_v30  ;;  %1564 = vmatprep.mubr.f32.mxu1 %v1137_v44 }
 0x18b   : > { %1565 = vmatmul.mubr.f32.gmra.mrb[80].mxu1 %v1136_v46  ;;  %v1138_v52 = vmax.f32 %v920_v47, 0.0 }
 0x18c   : > { %v1139_v50 = vmax.f32 %v922_v49, 0.0  ;;  %v925_v51 = vpop.f32.mrb[84].mxu0 }
 0x18d   : > { %v926_v53 = vadd.f32 %v925_v51, %v4276_v28  ;;  %v927_v54 = vpop.f32.mrb[85].mxu0 }
 0x18e   : > { %v928_v55 = vadd.f32 %v927_v54, %v4281_v30  ;;  %1570 = vmatprep.mubr.f32.mxu1 %v1139_v50 }
 0x18f   : > { %1571 = vmatmul.mubr.f32.gmra.mrb[82].mxu1 %v1138_v52  ;;  %v1140_v62 = vmax.f32 %v926_v53, 0.0 }
 0x190   : > { %v1141_v59 = vmax.f32 %v928_v55, 0.0  ;;  %v931_v61 = vpop.f32.mrb[86].mxu0 }
 0x191   : > { %v932_v63 = vadd.f32 %v931_v61, %v4276_v28  ;;  %v933_v1 = vpop.f32.mrb[87].mxu0 }
 0x192   : > { %v934_v3 = vadd.f32 %v933_v1, %v4281_v30  ;;  %1576 = vmatprep.mubr.f32.mxu1 %v1141_v59  ;;  %v4566_v59 = vpack.c.bf16 %v2505_v57, %v2504_v56 }
 0x193   : > { %1577 = vmatmul.mubr.f32.gmra.mrb[84].mxu1 %v1140_v62  ;;  %v1142_v5 = vmax.f32 %v932_v63, 0.0 }
 0x194   : > { %v1143_v2 = vmax.f32 %v934_v3, 0.0  ;;  %v937_v4 = vpop.f32.mrb[88].mxu0  ;;  %3565 = vmatpush1.bf16.msra.mxu1 %v4566_v59 }
 0x195   : > { %v938_v6 = vadd.f32 %v937_v4, %v4276_v28  ;;  %v939_v7 = vpop.f32.mrb[89].mxu0  ;;  %3550 = vmatprep.subr.bf16.mxu1 %v3722_v35 }
 0x196   : > { %v940_v8 = vadd.f32 %v939_v7, %v4281_v30  ;;  %1582 = vmatprep.mubr.f32.mxu1 %v1143_v2 }
 0x197   : > { %1583 = vmatmul.mubr.f32.gmra.mrb[86].mxu1 %v1142_v5  ;;  %v1144_v11 = vmax.f32 %v938_v6, 0.0 }
 0x198   : > { %v1145_v9 = vmax.f32 %v940_v8, 0.0  ;;  %v943_v10 = vpop.f32.mrb[90].mxu0 }
 0x199   : > { %v944_v12 = vadd.f32 %v943_v10, %v4276_v28  ;;  %v945_v13 = vpop.f32.mrb[91].mxu0 }
 0x19a   : > { %v946_v14 = vadd.f32 %v945_v13, %v4281_v30  ;;  %1588 = vmatprep.mubr.f32.mxu1 %v1145_v9 }
 0x19b   : > { %1589 = vmatmul.mubr.f32.gmra.mrb[88].mxu1 %v1144_v11  ;;  %v1146_v17 = vmax.f32 %v944_v12, 0.0  ;;  %v1248_v12 = vld [vmem:[%s5150_s4] sm:$0x3] }
 0x19c   : > { %v1147_v15 = vmax.f32 %v946_v14, 0.0  ;;  %v949_v16 = vpop.f32.mrb[92].mxu0 }
 0x19d   : > { %v950_v18 = vadd.f32 %v949_v16, %v4276_v28  ;;  %v951_v19 = vpop.f32.mrb[93].mxu0 }
 0x19e   : > { %v952_v20 = vadd.f32 %v951_v19, %v4281_v30  ;;  %1594 = vmatprep.mubr.f32.mxu1 %v1147_v15 }
 0x19f   : > { %1595 = vmatmul.mubr.f32.gmra.mrb[90].mxu1 %v1146_v17  ;;  %v1148_v32 = vmax.f32 %v950_v18, 0.0  ;;  %v4580_v17 = vrot.slane %v1248_v12, %v4265_v24 }
 0x1a0   : > { %v1149_v26 = vmax.f32 %v952_v20, 0.0  ;;  %v955_v29 = vpop.f32.mrb[94].mxu0  ;;  %v4583_v20 = vrot.slane %v1248_v12, %v4272_v27 }
 0x1a1   : > { %v956_v33 = vadd.f32 %v955_v29, %v4276_v28  ;;  %v957_v34 = vpop.f32.mrb[95].mxu0 }
 0x1a2   : > { %v958_v37 = vadd.f32 %v957_v34, %v4281_v30  ;;  %1600 = vmatprep.mubr.f32.mxu1 %v1149_v26  ;;  %v2507_v34 = vld [vmem:[%s5153_s7 + $0x88] sm:$0xff] }
 0x1a3   : > { %1601 = vmatmul.mubr.f32.gmra.mrb[92].mxu1 %v1148_v32  ;;  %v1150_v40 = vmax.f32 %v956_v33, 0.0  ;;  %v2506_v33 = vld [vmem:[%s5153_s7 + $0x80] sm:$0xff] }
 0x1a4   : > { %v1151_v38 = vmax.f32 %v958_v37, 0.0  ;;  %v961_v39 = vpop.f32.mrb[96].mxu0 }
 0x1a5   : > { %v962_v41 = vadd.f32 %v961_v39, %v4276_v28  ;;  %v963_v42 = vpop.f32.mrb[97].mxu0  ;;  %v4594_v39 = vpack.c.bf16 %v2507_v34, %v2506_v33  ;;  %v2509_v33 = vld [vmem:[%s5153_s7 + $0x98] sm:$0xff] }
 0x1a6   : > { %v964_v43 = vadd.f32 %v963_v42, %v4281_v30  ;;  %1606 = vmatprep.mubr.f32.mxu1 %v1151_v38 }
 0x1a7   : > { %1607 = vmatmul.mubr.f32.gmra.mrb[94].mxu1 %v1150_v40  ;;  %v1152_v46 = vmax.f32 %v962_v41, 0.0 }
 0x1a8   : > { %v1153_v44 = vmax.f32 %v964_v43, 0.0  ;;  %v967_v45 = vpop.f32.mrb[98].mxu0  ;;  %3566 = vmatpush1.bf16.msra.mxu1 %v4594_v39 }
 0x1a9   : > { %v968_v47 = vadd.f32 %v967_v45, %v4276_v28  ;;  %v969_v48 = vpop.f32.mrb[99].mxu0  ;;  %3551 = vmatprep.subr.bf16.mxu1 %v3722_v35 }
 0x1aa   : > { %v970_v49 = vadd.f32 %v969_v48, %v4281_v30  ;;  %1612 = vmatprep.mubr.f32.mxu1 %v1153_v44 }
 0x1ab   : > { %1613 = vmatmul.mubr.f32.gmra.mrb[96].mxu1 %v1152_v46  ;;  %v1154_v52 = vmax.f32 %v968_v47, 0.0 }
 0x1ac   : > { %v1155_v50 = vmax.f32 %v970_v49, 0.0  ;;  %v973_v51 = vpop.f32.mrb[100].mxu0 }
 0x1ad   : > { %v974_v53 = vadd.f32 %v973_v51, %v4276_v28  ;;  %v975_v54 = vpop.f32.mrb[101].mxu0 }
 0x1ae   : > { %v976_v55 = vadd.f32 %v975_v54, %v4281_v30  ;;  %1618 = vmatprep.mubr.f32.mxu1 %v1155_v50 }
 0x1af   : > { %1619 = vmatmul.mubr.f32.gmra.mrb[98].mxu1 %v1154_v52  ;;  %v1156_v63 = vmax.f32 %v974_v53, 0.0 }
 0x1b0   : > { %v1157_v61 = vmax.f32 %v976_v55, 0.0  ;;  %v979_v62 = vpop.f32.mrb[102].mxu0 }
 0x1b1   : > { %v980_v1 = vadd.f32 %v979_v62, %v4276_v28  ;;  %v981_v3 = vpop.f32.mrb[103].mxu0 }
 0x1b2   : > { %v982_v2 = vadd.f32 %v981_v3, %v4281_v30  ;;  %1624 = vmatprep.mubr.f32.mxu1 %v1157_v61 }
 0x1b3   : > { %1625 = vmatmul.mubr.f32.gmra.mrb[100].mxu1 %v1156_v63  ;;  %v1158_v6 = vmax.f32 %v980_v1, 0.0 }
 0x1b4   : > { %v1159_v4 = vmax.f32 %v982_v2, 0.0  ;;  %v985_v5 = vpop.f32.mrb[104].mxu0 }
 0x1b5   : > { %v986_v7 = vadd.f32 %v985_v5, %v4276_v28  ;;  %v987_v8 = vpop.f32.mrb[105].mxu0 }
 0x1b6   : > { %v988_v9 = vadd.f32 %v987_v8, %v4281_v30  ;;  %1630 = vmatprep.mubr.f32.mxu1 %v1159_v4 }
 0x1b7   : > { %1631 = vmatmul.mubr.f32.gmra.mrb[102].mxu1 %v1158_v6  ;;  %v1160_v13 = vmax.f32 %v986_v7, 0.0 }
 0x1b8   : > { %v1161_v10 = vmax.f32 %v988_v9, 0.0  ;;  %v991_v11 = vpop.f32.mrb[106].mxu0 }
 0x1b9   : > { %v992_v14 = vadd.f32 %v991_v11, %v4276_v28  ;;  %v993_v15 = vpop.f32.mrb[107].mxu0 }
 0x1ba   : > { %v994_v16 = vadd.f32 %v993_v15, %v4281_v30  ;;  %1636 = vmatprep.mubr.f32.mxu1 %v1161_v10 }
 0x1bb   : > { %1637 = vmatmul.mubr.f32.gmra.mrb[104].mxu1 %v1160_v13  ;;  %v1162_v21 = vmax.f32 %v992_v14, 0.0 }
 0x1bc   : > { %v1163_v18 = vmax.f32 %v994_v16, 0.0  ;;  %v997_v19 = vpop.f32.mrb[108].mxu0 }
 0x1bd   : > { %v998_v22 = vadd.f32 %v997_v19, %v4276_v28  ;;  %v999_v26 = vpop.f32.mrb[109].mxu0 }
 0x1be   : > { %v1000_v29 = vadd.f32 %v999_v26, %v4281_v30  ;;  %v1326_v32 = vpop.f32.mrb[0].mxu1  ;;  %1642 = vmatprep.mubr.f32.mxu1 %v1163_v18 }
 0x1bf   : > { %v1327_v37 = vadd.f32 %v1326_v32, %v4580_v17  ;;  %v1328_v38 = vpop.f32.mrb[1].mxu1  ;;  %1643 = vmatmul.mubr.f32.gmra.mrb[106].mxu1 %v1162_v21  ;;  %v1164_v43 = vmax.f32 %v998_v22, 0.0  ;;  %v2508_v32 = vld [vmem:[%s5153_s7 + $0x90] sm:$0xff] }
 0x1c0   : > { %v1165_v40 = vmax.f32 %v1000_v29, 0.0  ;;  %v1329_v41 = vadd.f32 %v1328_v38, %v4583_v20  ;;  %v1003_v42 = vpop.f32.mrb[110].mxu0 }
 0x1c1   : > { %v1004_v44 = vadd.f32 %v1003_v42, %v4276_v28  ;;  %v1005_v45 = vpop.f32.mrb[111].mxu0  ;;  %v1709_v49 = vmax.f32 %v1327_v37, 0.0 }
 0x1c2   : > { %v1710_v46 = vmax.f32 %v1329_v41, 0.0  ;;  %v1006_v47 = vadd.f32 %v1005_v45, %v4281_v30  ;;  %v1332_v48 = vpop.f32.mrb[2].mxu1  ;;  %1648 = vmatprep.mubr.f32.mxu1 %v1165_v40  ;;  %v4625_v40 = vpack.c.bf16 %v2509_v33, %v2508_v32 }
 0x1c3   : > { %v1333_v50 = vadd.f32 %v1332_v48, %v4580_v17  ;;  %v1334_v51 = vpop.f32.mrb[3].mxu1  ;;  %1649 = vmatmul.mubr.f32.gmra.mrb[108].mxu1 %v1164_v43  ;;  %v1166_v55 = vmax.f32 %v1004_v44, 0.0 }
 0x1c4   : > { %v1167_v52 = vmax.f32 %v1006_v47, 0.0  ;;  %v1335_v53 = vadd.f32 %v1334_v51, %v4583_v20  ;;  %v1009_v54 = vpop.f32.mrb[112].mxu0  ;;  %1977 = vmatprep.mubr.f32.mxu0 %v1710_v46  ;;  %3567 = vmatpush1.bf16.msra.mxu1 %v4625_v40 }
 0x1c5   : > { %v1010_v56 = vadd.f32 %v1009_v54, %v4276_v28  ;;  %v1011_v57 = vpop.f32.mrb[113].mxu0  ;;  %1978 = vmatmul.mubr.f32.vlgmr.msra.gmra.mrb[128].mxu0 %v1709_v49  ;;  %v1711_v1 = vmax.f32 %v1333_v50, 0.0  ;;  %3552 = vmatprep.subr.bf16.mxu1 %v3722_v35 }
 0x1c6   : > { %v1712_v61 = vmax.f32 %v1335_v53, 0.0  ;;  %v1012_v62 = vadd.f32 %v1011_v57, %v4281_v30  ;;  %v1338_v63 = vpop.f32.mrb[4].mxu1  ;;  %1654 = vmatprep.mubr.f32.mxu1 %v1167_v52  ;;  %3496 = vmatpush1.bf16.msra.mxu0 %v4438_v36 }
 0x1c7   : > { %v1339_v3 = vadd.f32 %v1338_v63, %v4580_v17  ;;  %v1340_v2 = vpop.f32.mrb[5].mxu1  ;;  %1655 = vmatmul.mubr.f32.gmra.mrb[110].mxu1 %v1166_v55  ;;  %3497 = vmatprep.subr.bf16.mxu0 %v3722_v35  ;;  %v1168_v7 = vmax.f32 %v1010_v56, 0.0 }
 0x1c8   : > { %v1169_v4 = vmax.f32 %v1012_v62, 0.0  ;;  %v1341_v5 = vadd.f32 %v1340_v2, %v4583_v20  ;;  %v1015_v6 = vpop.f32.mrb[114].mxu0  ;;  %1983 = vmatprep.mubr.f32.mxu0 %v1712_v61 }
 0x1c9   : > { %v1016_v8 = vadd.f32 %v1015_v6, %v4276_v28  ;;  %v1017_v9 = vpop.f32.mrb[115].mxu0  ;;  %1984 = vmatmul.mubr.f32.gmra.mrb[130].mxu0 %v1711_v1  ;;  %v1713_v12 = vmax.f32 %v1339_v3, 0.0 }
 0x1ca   : > { %v1714_v10 = vmax.f32 %v1341_v5, 0.0  ;;  %v1018_v36 = vadd.f32 %v1017_v9, %v4281_v30  ;;  %v1344_v11 = vpop.f32.mrb[6].mxu1  ;;  %1660 = vmatprep.mubr.f32.mxu1 %v1169_v4  ;;  %3499 = vmatpush1.bf16.msra.mxu0 %v4458_v0 }
 0x1cb   : > { %v1345_v13 = vadd.f32 %v1344_v11, %v4580_v17  ;;  %v1346_v14 = vpop.f32.mrb[7].mxu1  ;;  %1661 = vmatmul.mubr.f32.gmra.mrb[112].mxu1 %v1168_v7  ;;  %3500 = vmatprep.subr.bf16.mxu0 %v3722_v35  ;;  %v1170_v19 = vmax.f32 %v1016_v8, 0.0 }
 0x1cc   : > { %v1171_v15 = vmax.f32 %v1018_v36, 0.0  ;;  %v1347_v16 = vadd.f32 %v1346_v14, %v4583_v20  ;;  %v1021_v18 = vpop.f32.mrb[116].mxu0  ;;  %1989 = vmatprep.mubr.f32.mxu0 %v1714_v10 }
 0x1cd   : > { %v1022_v21 = vadd.f32 %v1021_v18, %v4276_v28  ;;  %v1023_v22 = vpop.f32.mrb[117].mxu0  ;;  %1990 = vmatmul.mubr.f32.gmra.mrb[132].mxu0 %v1713_v12  ;;  %v1715_v34 = vmax.f32 %v1345_v13, 0.0 }
 0x1ce   : > { %v1716_v26 = vmax.f32 %v1347_v16, 0.0  ;;  %v1024_v0 = vadd.f32 %v1023_v22, %v4281_v30  ;;  %v1350_v29 = vpop.f32.mrb[8].mxu1  ;;  %1666 = vmatprep.mubr.f32.mxu1 %v1171_v15  ;;  %3502 = vmatpush1.bf16.msra.mxu0 %v4476_v31 }
 0x1cf   : > { %v1351_v37 = vadd.f32 %v1350_v29, %v4580_v17  ;;  %v1352_v38 = vpop.f32.mrb[9].mxu1  ;;  %1667 = vmatmul.mubr.f32.gmra.mrb[114].mxu1 %v1170_v19  ;;  %3503 = vmatprep.subr.bf16.mxu0 %v3722_v35  ;;  %v1172_v44 = vmax.f32 %v1022_v21, 0.0 }
 0x1d0   : > { %v1173_v41 = vmax.f32 %v1024_v0, 0.0  ;;  %v1353_v42 = vadd.f32 %v1352_v38, %v4583_v20  ;;  %v1027_v43 = vpop.f32.mrb[118].mxu0  ;;  %1995 = vmatprep.mubr.f32.mxu0 %v1716_v26  ;;  %v2511_v0 = vld [vmem:[%s5153_s7 + $0xa8] sm:$0xff] }
 0x1d1   : > { %v1028_v45 = vadd.f32 %v1027_v43, %v4276_v28  ;;  %v1029_v46 = vpop.f32.mrb[119].mxu0  ;;  %1996 = vmatmul.mubr.f32.gmra.mrb[134].mxu0 %v1715_v34  ;;  %v1717_v49 = vmax.f32 %v1351_v37, 0.0 }
 0x1d2   : > { %v1718_v31 = vmax.f32 %v1353_v42, 0.0  ;;  %v1030_v47 = vadd.f32 %v1029_v46, %v4281_v30  ;;  %v1356_v48 = vpop.f32.mrb[10].mxu1  ;;  %1672 = vmatprep.mubr.f32.mxu1 %v1173_v41  ;;  %3505 = vmatpush1.bf16.msra.mxu0 %v4494_v60 }
 0x1d3   : > { %v1357_v50 = vadd.f32 %v1356_v48, %v4580_v17  ;;  %v1358_v51 = vpop.f32.mrb[11].mxu1  ;;  %1673 = vmatmul.mubr.f32.gmra.mrb[116].mxu1 %v1172_v44  ;;  %3506 = vmatprep.subr.bf16.mxu0 %v3722_v35  ;;  %v1174_v55 = vmax.f32 %v1028_v45, 0.0 }
 0x1d4   : > { %v1175_v52 = vmax.f32 %v1030_v47, 0.0  ;;  %v1359_v53 = vadd.f32 %v1358_v51, %v4583_v20  ;;  %v1033_v54 = vpop.f32.mrb[120].mxu0  ;;  %2001 = vmatprep.mubr.f32.mxu0 %v1718_v31 }
 0x1d5   : > { %v1034_v56 = vadd.f32 %v1033_v54, %v4276_v28  ;;  %v1035_v57 = vpop.f32.mrb[121].mxu0  ;;  %2002 = vmatmul.mubr.f32.gmra.mrb[136].mxu0 %v1717_v49  ;;  %v1719_v1 = vmax.f32 %v1357_v50, 0.0 }
 0x1d6   : > { %v1720_v61 = vmax.f32 %v1359_v53, 0.0  ;;  %v1036_v62 = vadd.f32 %v1035_v57, %v4281_v30  ;;  %v1362_v63 = vpop.f32.mrb[12].mxu1  ;;  %1678 = vmatprep.mubr.f32.mxu1 %v1175_v52  ;;  %3508 = vmatpush1.bf16.msra.mxu0 %v4512_v25 }
 0x1d7   : > { %v1363_v60 = vadd.f32 %v1362_v63, %v4580_v17  ;;  %v1364_v3 = vpop.f32.mrb[13].mxu1  ;;  %1679 = vmatmul.mubr.f32.gmra.mrb[118].mxu1 %v1174_v55  ;;  %3509 = vmatprep.subr.bf16.mxu0 %v3722_v35  ;;  %v1176_v6 = vmax.f32 %v1034_v56, 0.0 }
 0x1d8   : > { %v1177_v2 = vmax.f32 %v1036_v62, 0.0  ;;  %v1365_v4 = vadd.f32 %v1364_v3, %v4583_v20  ;;  %v1039_v5 = vpop.f32.mrb[122].mxu0  ;;  %2007 = vmatprep.mubr.f32.mxu0 %v1720_v61  ;;  %v2513_v3 = vld [vmem:[%s5153_s7 + $0xb8] sm:$0xff] }
 0x1d9   : > { %v1040_v7 = vadd.f32 %v1039_v5, %v4276_v28  ;;  %v1041_v8 = vpop.f32.mrb[123].mxu0  ;;  %2008 = vmatmul.mubr.f32.gmra.mrb[138].mxu0 %v1719_v1  ;;  %v1721_v11 = vmax.f32 %v1363_v60, 0.0  ;;  %v2512_v60 = vld [vmem:[%s5153_s7 + $0xb0] sm:$0xff] }
 0x1da   : > { %v1722_v9 = vmax.f32 %v1365_v4, 0.0  ;;  %v1042_v10 = vadd.f32 %v1041_v8, %v4281_v30  ;;  %v1368_v36 = vpop.f32.mrb[14].mxu1  ;;  %1684 = vmatprep.mubr.f32.mxu1 %v1177_v2  ;;  %3511 = vmatpush1.bf16.msra.mxu0 %v4530_v58  ;;  %v2510_v58 = vld [vmem:[%s5153_s7 + $0xa0] sm:$0xff]  ;;  %v3528_v5 = vpack.c.bf16 %v2513_v3, %v2512_v60 }
 0x1db   : > { %v1369_v25 = vadd.f32 %v1368_v36, %v4580_v17  ;;  %v1370_v12 = vpop.f32.mrb[15].mxu1  ;;  %1685 = vmatmul.mubr.f32.gmra.mrb[120].mxu1 %v1176_v6  ;;  %3512 = vmatprep.subr.bf16.mxu0 %v3722_v35  ;;  %v1178_v16 = vmax.f32 %v1040_v7, 0.0  ;;  %v3525_v34 = vpack.c.bf16 %v2511_v0, %v2510_v58 }
 0x1dc   : > { %v1179_v13 = vmax.f32 %v1042_v10, 0.0  ;;  %v1371_v14 = vadd.f32 %v1370_v12, %v4583_v20  ;;  %v1045_v15 = vpop.f32.mrb[124].mxu0  ;;  %2013 = vmatprep.mubr.f32.mxu0 %v1722_v9 }
 0x1dd   : > { %v1046_v18 = vadd.f32 %v1045_v15, %v4276_v28  ;;  %v1047_v19 = vpop.f32.mrb[125].mxu0  ;;  %2014 = vmatmul.mubr.f32.gmra.mrb[140].mxu0 %v1721_v11  ;;  %v1723_v29 = vmax.f32 %v1369_v25, 0.0  ;;  %3568 = vmatpush1.bf16.msra.mxu1 %v3525_v34 }
 0x1de   : > { %v1724_v21 = vmax.f32 %v1371_v14, 0.0  ;;  %v1048_v22 = vadd.f32 %v1047_v19, %v4281_v30  ;;  %v1374_v26 = vpop.f32.mrb[16].mxu1  ;;  %1690 = vmatprep.mubr.f32.mxu1 %v1179_v13  ;;  %3514 = vmatpush1.bf16.msra.mxu0 %v4548_v23 }
 0x1df   : > { %v1375_v32 = vadd.f32 %v1374_v26, %v4580_v17  ;;  %v1376_v33 = vpop.f32.mrb[17].mxu1  ;;  %1691 = vmatmul.mubr.f32.gmra.mrb[122].mxu1 %v1178_v16  ;;  %3515 = vmatprep.subr.bf16.mxu0 %v3722_v35  ;;  %v1180_v42 = vmax.f32 %v1046_v18, 0.0 }
 0x1e0   : > { %v1181_v37 = vmax.f32 %v1048_v22, 0.0  ;;  %v1377_v38 = vadd.f32 %v1376_v33, %v4583_v20  ;;  %v1051_v41 = vpop.f32.mrb[126].mxu0  ;;  %2019 = vmatprep.mubr.f32.mxu0 %v1724_v21  ;;  %3553 = vmatprep.subr.bf16.mxu1 %v3722_v35  ;;  %v2515_v33 = vld [vmem:[%s5153_s7 + $0xc8] sm:$0xff] }
 0x1e1   : > { %v1052_v43 = vadd.f32 %v1051_v41, %v4276_v28  ;;  %v1053_v44 = vpop.f32.mrb[127].mxu0  ;;  %2020 = vmatmul.mubr.f32.gmra.mrb[142].mxu0 %v1723_v29  ;;  %v1725_v23 = vmax.f32 %v1375_v32, 0.0  ;;  %3569 = vmatpush1.bf16.msra.mxu1 %v3528_v5  ;;  %v2514_v32 = vld [vmem:[%s5153_s7 + $0xc0] sm:$0xff] }
 0x1e2   : > { %v1726_v45 = vmax.f32 %v1377_v38, 0.0  ;;  %v1054_v46 = vadd.f32 %v1053_v44, %v4281_v30  ;;  %v1380_v31 = vpop.f32.mrb[18].mxu1  ;;  %1696 = vmatprep.mubr.f32.mxu1 %v1181_v37  ;;  %3517 = vmatpush1.bf16.msra.mxu0 %v4566_v59  ;;  %v3531_v41 = vpack.c.bf16 %v2515_v33, %v2514_v32 }
 0x1e3   : > { %v1381_v47 = vadd.f32 %v1380_v31, %v4580_v17  ;;  %v1382_v48 = vpop.f32.mrb[19].mxu1  ;;  %1697 = vmatmul.mubr.f32.gmra.mrb[124].mxu1 %v1180_v42  ;;  %3518 = vmatprep.subr.bf16.mxu0 %v3722_v35  ;;  %v1182_v50 = vmax.f32 %v1052_v43, 0.0 }
 0x1e4   : > { %v1183_v49 = vmax.f32 %v1054_v46, 0.0  ;;  %v1383_v28 = vadd.f32 %v1382_v48, %v4583_v20  ;;  %2025 = vmatprep.mubr.f32.mxu0 %v1726_v45  ;;  %3554 = vmatprep.subr.bf16.mxu1 %v3722_v35 }
 0x1e5   : > { %2026 = vmatmul.mubr.f32.gmra.mrb[144].mxu0 %v1725_v23  ;;  %v1727_v52 = vmax.f32 %v1381_v47, 0.0  ;;  %3570 = vmatpush1.bf16.msra.mxu1 %v3531_v41 }
 0x1e6   : > { %v1728_v30 = vmax.f32 %v1383_v28, 0.0  ;;  %v1386_v51 = vpop.f32.mrb[20].mxu1  ;;  %1702 = vmatprep.mubr.f32.mxu1 %v1183_v49  ;;  %3520 = vmatpush1.bf16.msra.mxu0 %v4594_v39 }
 0x1e7   : > { %v1387_v53 = vadd.f32 %v1386_v51, %v4580_v17  ;;  %v1388_v54 = vpop.f32.mrb[21].mxu1  ;;  %1703 = vmatmul.mubr.f32.gmra.mrb[126].mxu1 %v1182_v50  ;;  %3521 = vmatprep.subr.bf16.mxu0 %v3722_v35 }
 0x1e8   : > { %v1389_v59 = vadd.f32 %v1388_v54, %v4583_v20  ;;  %2031 = vmatprep.mubr.f32.mxu0 %v1728_v30  ;;  %3555 = vmatprep.subr.bf16.mxu1 %v3722_v35 }
 0x1e9   : > { %2032 = vmatmul.mubr.f32.gmra.mrb[146].mxu0 %v1727_v52  ;;  %v1729_v57 = vmax.f32 %v1387_v53, 0.0 }
 0x1ea   : > { %v1730_v55 = vmax.f32 %v1389_v59, 0.0  ;;  %v1392_v56 = vpop.f32.mrb[22].mxu1  ;;  %3523 = vmatpush1.bf16.msra.mxu0 %v4625_v40 }
 0x1eb   : > { %v1393_v61 = vadd.f32 %v1392_v56, %v4580_v17  ;;  %v1394_v62 = vpop.f32.mrb[23].mxu1  ;;  %3524 = vmatprep.subr.bf16.mxu0 %v3722_v35 }
 0x1ec   : > { %v1395_v63 = vadd.f32 %v1394_v62, %v4583_v20  ;;  %2037 = vmatprep.mubr.f32.mxu0 %v1730_v55  ;;  %v2517_v62 = vld [vmem:[%s5153_s7 + $0xd8] sm:$0xff] }
 0x1ed   : > { %2038 = vmatmul.mubr.f32.gmra.mrb[148].mxu0 %v1729_v57  ;;  %v1731_v2 = vmax.f32 %v1393_v61, 0.0  ;;  %v2516_v61 = vld [vmem:[%s5153_s7 + $0xd0] sm:$0xff] }
 0x1ee   : > { %v1732_v39 = vmax.f32 %v1395_v63, 0.0  ;;  %v1398_v1 = vpop.f32.mrb[24].mxu1  ;;  %3526 = vmatpush1.bf16.msra.mxu0 %v3525_v34  ;;  %v3534_v60 = vpack.c.bf16 %v2517_v62, %v2516_v61 }
 0x1ef   : > { %v1399_v4 = vadd.f32 %v1398_v1, %v4580_v17  ;;  %v1400_v40 = vpop.f32.mrb[25].mxu1  ;;  %3527 = vmatprep.subr.bf16.mxu0 %v3722_v35 }
 0x1f0   : > { %v1401_v6 = vadd.f32 %v1400_v40, %v4583_v20  ;;  %2043 = vmatprep.mubr.f32.mxu0 %v1732_v39  ;;  %3571 = vmatpush1.bf16.msra.mxu1 %v3534_v60 }
 0x1f1   : > { %2044 = vmatmul.mubr.f32.gmra.mrb[150].mxu0 %v1731_v2  ;;  %v1733_v9 = vmax.f32 %v1399_v4, 0.0  ;;  %3556 = vmatprep.subr.bf16.mxu1 %v3722_v35 }
 0x1f2   : > { %v1734_v7 = vmax.f32 %v1401_v6, 0.0  ;;  %v1404_v8 = vpop.f32.mrb[26].mxu1  ;;  %3529 = vmatpush1.bf16.msra.mxu0 %v3528_v5 }
 0x1f3   : > { %v1405_v10 = vadd.f32 %v1404_v8, %v4580_v17  ;;  %v1406_v36 = vpop.f32.mrb[27].mxu1  ;;  %3530 = vmatprep.subr.bf16.mxu0 %v3722_v35 }
 0x1f4   : > { %v1407_v11 = vadd.f32 %v1406_v36, %v4583_v20  ;;  %2049 = vmatprep.mubr.f32.mxu0 %v1734_v7 }
 0x1f5   : > { %2050 = vmatmul.mubr.f32.gmra.mrb[152].mxu0 %v1733_v9  ;;  %v1735_v13 = vmax.f32 %v1405_v10, 0.0 }
 0x1f6   : > { %v1736_v25 = vmax.f32 %v1407_v11, 0.0  ;;  %v1410_v12 = vpop.f32.mrb[28].mxu1  ;;  %3532 = vmatpush1.bf16.msra.mxu0 %v3531_v41 }
 0x1f7   : > { %v1411_v14 = vadd.f32 %v1410_v12, %v4580_v17  ;;  %v1412_v15 = vpop.f32.mrb[29].mxu1  ;;  %3533 = vmatprep.subr.bf16.mxu0 %v3722_v35 }
 0x1f8   : > { %v1413_v16 = vadd.f32 %v1412_v15, %v4583_v20  ;;  %2055 = vmatprep.mubr.f32.mxu0 %v1736_v25 }
 0x1f9   : > { %2056 = vmatmul.mubr.f32.gmra.mrb[154].mxu0 %v1735_v13  ;;  %v1737_v21 = vmax.f32 %v1411_v14, 0.0 }
 0x1fa   : > { %v1738_v18 = vmax.f32 %v1413_v16, 0.0  ;;  %v1416_v19 = vpop.f32.mrb[30].mxu1  ;;  %3535 = vmatpush1.bf16.msra.mxu0 %v3534_v60 }
 0x1fb   : > { %v1417_v22 = vadd.f32 %v1416_v19, %v4580_v17  ;;  %v1418_v26 = vpop.f32.mrb[31].mxu1  ;;  %3536 = vmatprep.subr.bf16.mxu0 %v3722_v35 }
 0x1fc   : > { %v1419_v58 = vadd.f32 %v1418_v26, %v4583_v20  ;;  %2061 = vmatprep.mubr.f32.mxu0 %v1738_v18  ;;  %v2519_v26 = vld [vmem:[%s5153_s7 + $0xe8] sm:$0xff] }
 0x1fd   : > { %2062 = vmatmul.mubr.f32.gmra.mrb[156].mxu0 %v1737_v21  ;;  %v1739_v34 = vmax.f32 %v1417_v22, 0.0  ;;  %v2518_v22 = vld [vmem:[%s5153_s7 + $0xe0] sm:$0xff] }
 0x1fe   : > { %v1740_v0 = vmax.f32 %v1419_v58, 0.0  ;;  %v1422_v29 = vpop.f32.mrb[32].mxu1  ;;  %v3537_v32 = vpack.c.bf16 %v2519_v26, %v2518_v22 }
 0x1ff   : > { %v1423_v37 = vadd.f32 %v1422_v29, %v4580_v17  ;;  %v1424_v38 = vpop.f32.mrb[33].mxu1 }
 0x200   : > { %v1425_v42 = vadd.f32 %v1424_v38, %v4583_v20  ;;  %2067 = vmatprep.mubr.f32.mxu0 %v1740_v0  ;;  %3572 = vmatpush1.bf16.msra.mxu1 %v3537_v32 }
 0x201   : > { %2068 = vmatmul.mubr.f32.gmra.mrb[158].mxu0 %v1739_v34  ;;  %v1741_v45 = vmax.f32 %v1423_v37, 0.0  ;;  %3557 = vmatprep.subr.bf16.mxu1 %v3722_v35 }
 0x202   : > { %v1742_v43 = vmax.f32 %v1425_v42, 0.0  ;;  %v1428_v44 = vpop.f32.mrb[34].mxu1  ;;  %3538 = vmatpush1.bf16.msra.mxu0 %v3537_v32 }
 0x203   : > { %v1429_v46 = vadd.f32 %v1428_v44, %v4580_v17  ;;  %v1430_v31 = vpop.f32.mrb[35].mxu1  ;;  %3539 = vmatprep.subr.bf16.mxu0 %v3722_v35 }
 0x204   : > { %v1431_v23 = vadd.f32 %v1430_v31, %v4583_v20  ;;  %2073 = vmatprep.mubr.f32.mxu0 %v1742_v43 }
 0x205   : > { %2074 = vmatmul.mubr.f32.gmra.mrb[160].mxu0 %v1741_v45  ;;  %v1743_v49 = vmax.f32 %v1429_v46, 0.0 }
 0x206   : > { %v1744_v47 = vmax.f32 %v1431_v23, 0.0  ;;  %v1434_v48 = vpop.f32.mrb[36].mxu1 }
 0x207   : > { %v1435_v28 = vadd.f32 %v1434_v48, %v4580_v17  ;;  %v1436_v50 = vpop.f32.mrb[37].mxu1 }
 0x208   : > { %v1437_v30 = vadd.f32 %v1436_v50, %v4583_v20  ;;  %2079 = vmatprep.mubr.f32.mxu0 %v1744_v47 }
 0x209   : > { %2080 = vmatmul.mubr.f32.gmra.mrb[162].mxu0 %v1743_v49  ;;  %v1745_v53 = vmax.f32 %v1435_v28, 0.0 }
 0x20a   : > { %v1746_v51 = vmax.f32 %v1437_v30, 0.0  ;;  %v1440_v52 = vpop.f32.mrb[38].mxu1 }
 0x20b   : > { %v1441_v54 = vadd.f32 %v1440_v52, %v4580_v17  ;;  %v1442_v59 = vpop.f32.mrb[39].mxu1 }
 0x20c   : > { %v1443_v55 = vadd.f32 %v1442_v59, %v4583_v20  ;;  %2085 = vmatprep.mubr.f32.mxu0 %v1746_v51 }
 0x20d   : > { %2086 = vmatmul.mubr.f32.gmra.mrb[164].mxu0 %v1745_v53  ;;  %v1747_v63 = vmax.f32 %v1441_v54, 0.0  ;;  %v2520_v53 = vld [vmem:[%s5153_s7 + $0xf0] sm:$0xff]  ;;  %v2521_v54 = vld [vmem:[%s5153_s7 + $0xf8] sm:$0xff] }
 0x20e   : > { %v1748_v56 = vmax.f32 %v1443_v55, 0.0  ;;  %v1446_v57 = vpop.f32.mrb[40].mxu1 }
 0x20f   : > { %v1447_v39 = vadd.f32 %v1446_v57, %v4580_v17  ;;  %v1448_v1 = vpop.f32.mrb[41].mxu1  ;;  %v3540_v57 = vpack.c.bf16 %v2521_v54, %v2520_v53 }
 0x210   : > { %v1449_v3 = vadd.f32 %v1448_v1, %v4583_v20  ;;  %2091 = vmatprep.mubr.f32.mxu0 %v1748_v56 }
 0x211   : > { %2092 = vmatmul.mubr.f32.gmra.mrb[166].mxu0 %v1747_v63  ;;  %v1749_v40 = vmax.f32 %v1447_v39, 0.0  ;;  %3573 = vmatpush1.bf16.msra.mxu1 %v3540_v57 }
 0x212   : > { %v1750_v2 = vmax.f32 %v1449_v3, 0.0  ;;  %v1452_v4 = vpop.f32.mrb[42].mxu1  ;;  %3541 = vmatpush1.bf16.msra.mxu0 %v3540_v57 }
 0x213   : > { %v1453_v5 = vadd.f32 %v1452_v4, %v4580_v17  ;;  %v1454_v6 = vpop.f32.mrb[43].mxu1 }
 0x214   : > { %v1455_v7 = vadd.f32 %v1454_v6, %v4583_v20  ;;  %2097 = vmatprep.mubr.f32.mxu0 %v1750_v2 }
 0x215   : > { %2098 = vmatmul.mubr.f32.gmra.mrb[168].mxu0 %v1749_v40  ;;  %v1751_v10 = vmax.f32 %v1453_v5, 0.0 }
 0x216   : > { %v1752_v8 = vmax.f32 %v1455_v7, 0.0  ;;  %v1458_v9 = vpop.f32.mrb[44].mxu1 }
 0x217   : > { %v1459_v36 = vadd.f32 %v1458_v9, %v4580_v17  ;;  %v1460_v11 = vpop.f32.mrb[45].mxu1 }
 0x218   : > { %v1461_v25 = vadd.f32 %v1460_v11, %v4583_v20  ;;  %2103 = vmatprep.mubr.f32.mxu0 %v1752_v8 }
 0x219   : > { %2104 = vmatmul.mubr.f32.gmra.mrb[170].mxu0 %v1751_v10  ;;  %v1753_v14 = vmax.f32 %v1459_v36, 0.0 }
 0x21a   : > { %v1754_v12 = vmax.f32 %v1461_v25, 0.0  ;;  %v1464_v13 = vpop.f32.mrb[46].mxu1 }
 0x21b   : > { %v1465_v15 = vadd.f32 %v1464_v13, %v4580_v17  ;;  %v1466_v16 = vpop.f32.mrb[47].mxu1 }
 0x21c   : > { %v1467_v18 = vadd.f32 %v1466_v16, %v4583_v20  ;;  %2109 = vmatprep.mubr.f32.mxu0 %v1754_v12 }
 0x21d   : > { %2110 = vmatmul.mubr.f32.gmra.mrb[172].mxu0 %v1753_v14  ;;  %v1755_v58 = vmax.f32 %v1465_v15, 0.0 }
 0x21e   : > { %v1756_v19 = vmax.f32 %v1467_v18, 0.0  ;;  %v1470_v21 = vpop.f32.mrb[48].mxu1 }
 0x21f   : > { %v1471_v0 = vadd.f32 %v1470_v21, %v4580_v17  ;;  %v1472_v29 = vpop.f32.mrb[49].mxu1 }
 0x220   : > { %v1473_v33 = vadd.f32 %v1472_v29, %v4583_v20  ;;  %2115 = vmatprep.mubr.f32.mxu0 %v1756_v19 }
 0x221   : > { %2116 = vmatmul.mubr.f32.gmra.mrb[174].mxu0 %v1755_v58  ;;  %v1757_v38 = vmax.f32 %v1471_v0, 0.0 }
 0x222   : > { %v1758_v34 = vmax.f32 %v1473_v33, 0.0  ;;  %v1476_v37 = vpop.f32.mrb[50].mxu1 }
 0x223   : > { %v1477_v41 = vadd.f32 %v1476_v37, %v4580_v17  ;;  %v1478_v42 = vpop.f32.mrb[51].mxu1 }
 0x224   : > { %v1479_v43 = vadd.f32 %v1478_v42, %v4583_v20  ;;  %2121 = vmatprep.mubr.f32.mxu0 %v1758_v34 }
 0x225   : > { %2122 = vmatmul.mubr.f32.gmra.mrb[176].mxu0 %v1757_v38  ;;  %v1759_v46 = vmax.f32 %v1477_v41, 0.0 }
 0x226   : > { %v1760_v44 = vmax.f32 %v1479_v43, 0.0  ;;  %v1482_v45 = vpop.f32.mrb[52].mxu1 }
 0x227   : > { %v1483_v31 = vadd.f32 %v1482_v45, %v4580_v17  ;;  %v1484_v23 = vpop.f32.mrb[53].mxu1 }
 0x228   : > { %v1485_v47 = vadd.f32 %v1484_v23, %v4583_v20  ;;  %2127 = vmatprep.mubr.f32.mxu0 %v1760_v44 }
 0x229   : > { %2128 = vmatmul.mubr.f32.gmra.mrb[178].mxu0 %v1759_v46  ;;  %v1761_v28 = vmax.f32 %v1483_v31, 0.0 }
 0x22a   : > { %v1762_v48 = vmax.f32 %v1485_v47, 0.0  ;;  %v1488_v49 = vpop.f32.mrb[54].mxu1 }
 0x22b   : > { %v1489_v50 = vadd.f32 %v1488_v49, %v4580_v17  ;;  %v1490_v35 = vpop.f32.mrb[55].mxu1 }
 0x22c   : > { %v1491_v30 = vadd.f32 %v1490_v35, %v4583_v20  ;;  %2133 = vmatprep.mubr.f32.mxu0 %v1762_v48 }
 0x22d   : > { %2134 = vmatmul.mubr.f32.gmra.mrb[180].mxu0 %v1761_v28  ;;  %v1763_v59 = vmax.f32 %v1489_v50, 0.0 }
 0x22e   : > { %v1764_v51 = vmax.f32 %v1491_v30, 0.0  ;;  %v1494_v52 = vpop.f32.mrb[56].mxu1 }
 0x22f   : > { %v1495_v55 = vadd.f32 %v1494_v52, %v4580_v17  ;;  %v1496_v56 = vpop.f32.mrb[57].mxu1 }
 0x230   : > { %v1497_v61 = vadd.f32 %v1496_v56, %v4583_v20  ;;  %2139 = vmatprep.mubr.f32.mxu0 %v1764_v51 }
 0x231   : > { %2140 = vmatmul.mubr.f32.gmra.mrb[182].mxu0 %v1763_v59  ;;  %v1765_v39 = vmax.f32 %v1495_v55, 0.0 }
 0x232   : > { %v1766_v62 = vmax.f32 %v1497_v61, 0.0  ;;  %v1500_v63 = vpop.f32.mrb[58].mxu1 }
 0x233   : > { %v1501_v1 = vadd.f32 %v1500_v63, %v4580_v17  ;;  %v1502_v60 = vpop.f32.mrb[59].mxu1 }
 0x234   : > { %v1503_v3 = vadd.f32 %v1502_v60, %v4583_v20  ;;  %2145 = vmatprep.mubr.f32.mxu0 %v1766_v62 }
 0x235   : > { %2146 = vmatmul.mubr.f32.gmra.mrb[184].mxu0 %v1765_v39  ;;  %v1767_v40 = vmax.f32 %v1501_v1, 0.0 }
 0x236   : > { %v1768_v2 = vmax.f32 %v1503_v3, 0.0  ;;  %v1506_v4 = vpop.f32.mrb[60].mxu1 }
 0x237   : > { %v1507_v5 = vadd.f32 %v1506_v4, %v4580_v17  ;;  %v1508_v6 = vpop.f32.mrb[61].mxu1 }
 0x238   : > { %v1509_v7 = vadd.f32 %v1508_v6, %v4583_v20  ;;  %2151 = vmatprep.mubr.f32.mxu0 %v1768_v2 }
 0x239   : > { %2152 = vmatmul.mubr.f32.gmra.mrb[186].mxu0 %v1767_v40  ;;  %v1769_v10 = vmax.f32 %v1507_v5, 0.0 }
 0x23a   : > { %v1770_v8 = vmax.f32 %v1509_v7, 0.0  ;;  %v1512_v9 = vpop.f32.mrb[62].mxu1 }
 0x23b   : > { %v1513_v36 = vadd.f32 %v1512_v9, %v4580_v17  ;;  %v1514_v11 = vpop.f32.mrb[63].mxu1 }
 0x23c   : > { %v1515_v25 = vadd.f32 %v1514_v11, %v4583_v20  ;;  %2157 = vmatprep.mubr.f32.mxu0 %v1770_v8 }
 0x23d   : > { %2158 = vmatmul.mubr.f32.gmra.mrb[188].mxu0 %v1769_v10  ;;  %v1771_v14 = vmax.f32 %v1513_v36, 0.0 }
 0x23e   : > { %v1772_v12 = vmax.f32 %v1515_v25, 0.0  ;;  %v1518_v13 = vpop.f32.mrb[64].mxu1 }
 0x23f   : > { %v1519_v15 = vadd.f32 %v1518_v13, %v4580_v17  ;;  %v1520_v16 = vpop.f32.mrb[65].mxu1 }
 0x240   : > { %v1521_v18 = vadd.f32 %v1520_v16, %v4583_v20  ;;  %2163 = vmatprep.mubr.f32.mxu0 %v1772_v12 }
 0x241   : > { %2164 = vmatmul.mubr.f32.gmra.mrb[190].mxu0 %v1771_v14  ;;  %v1773_v22 = vmax.f32 %v1519_v15, 0.0 }
 0x242   : > { %v1774_v19 = vmax.f32 %v1521_v18, 0.0  ;;  %v1524_v21 = vpop.f32.mrb[66].mxu1 }
 0x243   : > { %v1525_v26 = vadd.f32 %v1524_v21, %v4580_v17  ;;  %v1526_v58 = vpop.f32.mrb[67].mxu1 }
 0x244   : > { %v1527_v0 = vadd.f32 %v1526_v58, %v4583_v20  ;;  %2169 = vmatprep.mubr.f32.mxu0 %v1774_v19 }
 0x245   : > { %2170 = vmatmul.mubr.f32.gmra.mrb[192].mxu0 %v1773_v22  ;;  %v1775_v33 = vmax.f32 %v1525_v26, 0.0 }
 0x246   : > { %v1776_v29 = vmax.f32 %v1527_v0, 0.0  ;;  %v1530_v32 = vpop.f32.mrb[68].mxu1 }
 0x247   : > { %v1531_v34 = vadd.f32 %v1530_v32, %v4580_v17  ;;  %v1532_v37 = vpop.f32.mrb[69].mxu1 }
 0x248   : > { %v1533_v38 = vadd.f32 %v1532_v37, %v4583_v20  ;;  %2175 = vmatprep.mubr.f32.mxu0 %v1776_v29 }
 0x249   : > { %2176 = vmatmul.mubr.f32.gmra.mrb[194].mxu0 %v1775_v33  ;;  %v1777_v43 = vmax.f32 %v1531_v34, 0.0 }
 0x24a   : > { %v1778_v41 = vmax.f32 %v1533_v38, 0.0  ;;  %v1536_v42 = vpop.f32.mrb[70].mxu1 }
 0x24b   : > { %v1537_v44 = vadd.f32 %v1536_v42, %v4580_v17  ;;  %v1538_v45 = vpop.f32.mrb[71].mxu1 }
 0x24c   : > { %v1539_v46 = vadd.f32 %v1538_v45, %v4583_v20  ;;  %2181 = vmatprep.mubr.f32.mxu0 %v1778_v41 }
 0x24d   : > { %2182 = vmatmul.mubr.f32.gmra.mrb[196].mxu0 %v1777_v43  ;;  %v1779_v47 = vmax.f32 %v1537_v44, 0.0 }
 0x24e   : > { %v1780_v31 = vmax.f32 %v1539_v46, 0.0  ;;  %v1542_v23 = vpop.f32.mrb[72].mxu1 }
 0x24f   : > { %v1543_v48 = vadd.f32 %v1542_v23, %v4580_v17  ;;  %v1544_v49 = vpop.f32.mrb[73].mxu1 }
 0x250   : > { %v1545_v28 = vadd.f32 %v1544_v49, %v4583_v20  ;;  %2187 = vmatprep.mubr.f32.mxu0 %v1780_v31 }
 0x251   : > { %2188 = vmatmul.mubr.f32.gmra.mrb[198].mxu0 %v1779_v47  ;;  %v1781_v30 = vmax.f32 %v1543_v48, 0.0 }
 0x252   : > { %v1782_v50 = vmax.f32 %v1545_v28, 0.0  ;;  %v1548_v35 = vpop.f32.mrb[74].mxu1 }
 0x253   : > { %v1549_v51 = vadd.f32 %v1548_v35, %v4580_v17  ;;  %v1550_v52 = vpop.f32.mrb[75].mxu1 }
 0x254   : > { %v1551_v53 = vadd.f32 %v1550_v52, %v4583_v20  ;;  %2193 = vmatprep.mubr.f32.mxu0 %v1782_v50 }
 0x255   : > { %2194 = vmatmul.mubr.f32.gmra.mrb[200].mxu0 %v1781_v30  ;;  %v1783_v55 = vmax.f32 %v1549_v51, 0.0 }
 0x256   : > { %v1784_v54 = vmax.f32 %v1551_v53, 0.0  ;;  %v1554_v59 = vpop.f32.mrb[76].mxu1 }
 0x257   : > { %v1555_v56 = vadd.f32 %v1554_v59, %v4580_v17  ;;  %v1556_v57 = vpop.f32.mrb[77].mxu1 }
 0x258   : > { %v1557_v61 = vadd.f32 %v1556_v57, %v4583_v20  ;;  %2199 = vmatprep.mubr.f32.mxu0 %v1784_v54 }
 0x259   : > { %2200 = vmatmul.mubr.f32.gmra.mrb[202].mxu0 %v1783_v55  ;;  %v1785_v39 = vmax.f32 %v1555_v56, 0.0 }
 0x25a   : > { %v1786_v62 = vmax.f32 %v1557_v61, 0.0  ;;  %v1560_v63 = vpop.f32.mrb[78].mxu1 }
 0x25b   : > { %v1561_v1 = vadd.f32 %v1560_v63, %v4580_v17  ;;  %v1562_v60 = vpop.f32.mrb[79].mxu1 }
 0x25c   : > { %v1563_v3 = vadd.f32 %v1562_v60, %v4583_v20  ;;  %2205 = vmatprep.mubr.f32.mxu0 %v1786_v62 }
 0x25d   : > { %2206 = vmatmul.mubr.f32.gmra.mrb[204].mxu0 %v1785_v39  ;;  %v1787_v40 = vmax.f32 %v1561_v1, 0.0 }
 0x25e   : > { %v1788_v2 = vmax.f32 %v1563_v3, 0.0  ;;  %v1566_v4 = vpop.f32.mrb[80].mxu1 }
 0x25f   : > { %v1567_v5 = vadd.f32 %v1566_v4, %v4580_v17  ;;  %v1568_v6 = vpop.f32.mrb[81].mxu1 }
 0x260   : > { %v1569_v7 = vadd.f32 %v1568_v6, %v4583_v20  ;;  %2211 = vmatprep.mubr.f32.mxu0 %v1788_v2 }
 0x261   : > { %2212 = vmatmul.mubr.f32.gmra.mrb[206].mxu0 %v1787_v40  ;;  %v1789_v10 = vmax.f32 %v1567_v5, 0.0 }
 0x262   : > { %v1790_v8 = vmax.f32 %v1569_v7, 0.0  ;;  %v1572_v9 = vpop.f32.mrb[82].mxu1 }
 0x263   : > { %v1573_v36 = vadd.f32 %v1572_v9, %v4580_v17  ;;  %v1574_v11 = vpop.f32.mrb[83].mxu1 }
 0x264   : > { %v1575_v25 = vadd.f32 %v1574_v11, %v4583_v20  ;;  %2217 = vmatprep.mubr.f32.mxu0 %v1790_v8 }
 0x265   : > { %2218 = vmatmul.mubr.f32.gmra.mrb[208].mxu0 %v1789_v10  ;;  %v1791_v14 = vmax.f32 %v1573_v36, 0.0 }
 0x266   : > { %v1792_v12 = vmax.f32 %v1575_v25, 0.0  ;;  %v1578_v13 = vpop.f32.mrb[84].mxu1 }
 0x267   : > { %v1579_v15 = vadd.f32 %v1578_v13, %v4580_v17  ;;  %v1580_v16 = vpop.f32.mrb[85].mxu1 }
 0x268   : > { %v1581_v18 = vadd.f32 %v1580_v16, %v4583_v20  ;;  %2223 = vmatprep.mubr.f32.mxu0 %v1792_v12 }
 0x269   : > { %2224 = vmatmul.mubr.f32.gmra.mrb[210].mxu0 %v1791_v14  ;;  %v1793_v22 = vmax.f32 %v1579_v15, 0.0 }
 0x26a   : > { %v1794_v19 = vmax.f32 %v1581_v18, 0.0  ;;  %v1584_v21 = vpop.f32.mrb[86].mxu1 }
 0x26b   : > { %v1585_v26 = vadd.f32 %v1584_v21, %v4580_v17  ;;  %v1586_v58 = vpop.f32.mrb[87].mxu1 }
 0x26c   : > { %v1587_v0 = vadd.f32 %v1586_v58, %v4583_v20  ;;  %2229 = vmatprep.mubr.f32.mxu0 %v1794_v19 }
 0x26d   : > { %2230 = vmatmul.mubr.f32.gmra.mrb[212].mxu0 %v1793_v22  ;;  %v1795_v33 = vmax.f32 %v1585_v26, 0.0 }
 0x26e   : > { %v1796_v29 = vmax.f32 %v1587_v0, 0.0  ;;  %v1590_v32 = vpop.f32.mrb[88].mxu1 }
 0x26f   : > { %v1591_v34 = vadd.f32 %v1590_v32, %v4580_v17  ;;  %v1592_v37 = vpop.f32.mrb[89].mxu1 }
 0x270   : > { %v1593_v38 = vadd.f32 %v1592_v37, %v4583_v20  ;;  %2235 = vmatprep.mubr.f32.mxu0 %v1796_v29 }
 0x271   : > { %2236 = vmatmul.mubr.f32.gmra.mrb[214].mxu0 %v1795_v33  ;;  %v1797_v43 = vmax.f32 %v1591_v34, 0.0 }
 0x272   : > { %v1798_v41 = vmax.f32 %v1593_v38, 0.0  ;;  %v1596_v42 = vpop.f32.mrb[90].mxu1 }
 0x273   : > { %v1597_v44 = vadd.f32 %v1596_v42, %v4580_v17  ;;  %v1598_v45 = vpop.f32.mrb[91].mxu1 }
 0x274   : > { %v1599_v46 = vadd.f32 %v1598_v45, %v4583_v20  ;;  %2241 = vmatprep.mubr.f32.mxu0 %v1798_v41 }
 0x275   : > { %2242 = vmatmul.mubr.f32.gmra.mrb[216].mxu0 %v1797_v43  ;;  %v1799_v47 = vmax.f32 %v1597_v44, 0.0 }
 0x276   : > { %v1800_v31 = vmax.f32 %v1599_v46, 0.0  ;;  %v1602_v23 = vpop.f32.mrb[92].mxu1 }
 0x277   : > { %v1603_v48 = vadd.f32 %v1602_v23, %v4580_v17  ;;  %v1604_v49 = vpop.f32.mrb[93].mxu1 }
 0x278   : > { %v1605_v28 = vadd.f32 %v1604_v49, %v4583_v20  ;;  %2247 = vmatprep.mubr.f32.mxu0 %v1800_v31 }
 0x279   : > { %2248 = vmatmul.mubr.f32.gmra.mrb[218].mxu0 %v1799_v47  ;;  %v1801_v30 = vmax.f32 %v1603_v48, 0.0 }
 0x27a   : > { %v1802_v50 = vmax.f32 %v1605_v28, 0.0  ;;  %v1608_v35 = vpop.f32.mrb[94].mxu1 }
 0x27b   : > { %v1609_v51 = vadd.f32 %v1608_v35, %v4580_v17  ;;  %v1610_v52 = vpop.f32.mrb[95].mxu1 }
 0x27c   : > { %v1611_v53 = vadd.f32 %v1610_v52, %v4583_v20  ;;  %2253 = vmatprep.mubr.f32.mxu0 %v1802_v50 }
 0x27d   : > { %2254 = vmatmul.mubr.f32.gmra.mrb[220].mxu0 %v1801_v30  ;;  %v1803_v55 = vmax.f32 %v1609_v51, 0.0 }
 0x27e   : > { %v1804_v54 = vmax.f32 %v1611_v53, 0.0  ;;  %v1614_v59 = vpop.f32.mrb[96].mxu1 }
 0x27f   : > { %v1615_v56 = vadd.f32 %v1614_v59, %v4580_v17  ;;  %v1616_v57 = vpop.f32.mrb[97].mxu1 }
 0x280   : > { %v1617_v61 = vadd.f32 %v1616_v57, %v4583_v20  ;;  %2259 = vmatprep.mubr.f32.mxu0 %v1804_v54 }
 0x281   : > { %2260 = vmatmul.mubr.f32.gmra.mrb[222].mxu0 %v1803_v55  ;;  %v1805_v39 = vmax.f32 %v1615_v56, 0.0 }
 0x282   : > { %v1806_v62 = vmax.f32 %v1617_v61, 0.0  ;;  %v1620_v63 = vpop.f32.mrb[98].mxu1 }
 0x283   : > { %v1621_v1 = vadd.f32 %v1620_v63, %v4580_v17  ;;  %v1622_v60 = vpop.f32.mrb[99].mxu1 }
 0x284   : > { %v1623_v3 = vadd.f32 %v1622_v60, %v4583_v20  ;;  %2265 = vmatprep.mubr.f32.mxu0 %v1806_v62 }
 0x285   : > { %2266 = vmatmul.mubr.f32.gmra.mrb[224].mxu0 %v1805_v39  ;;  %v1807_v40 = vmax.f32 %v1621_v1, 0.0 }
 0x286   : > { %v1808_v2 = vmax.f32 %v1623_v3, 0.0  ;;  %v1626_v4 = vpop.f32.mrb[100].mxu1 }
 0x287   : > { %v1627_v5 = vadd.f32 %v1626_v4, %v4580_v17  ;;  %v1628_v6 = vpop.f32.mrb[101].mxu1 }
 0x288   : > { %v1629_v7 = vadd.f32 %v1628_v6, %v4583_v20  ;;  %2271 = vmatprep.mubr.f32.mxu0 %v1808_v2 }
 0x289   : > { %2272 = vmatmul.mubr.f32.gmra.mrb[226].mxu0 %v1807_v40  ;;  %v1809_v10 = vmax.f32 %v1627_v5, 0.0 }
 0x28a   : > { %v1810_v8 = vmax.f32 %v1629_v7, 0.0  ;;  %v1632_v9 = vpop.f32.mrb[102].mxu1 }
 0x28b   : > { %v1633_v36 = vadd.f32 %v1632_v9, %v4580_v17  ;;  %v1634_v11 = vpop.f32.mrb[103].mxu1 }
 0x28c   : > { %v1635_v25 = vadd.f32 %v1634_v11, %v4583_v20  ;;  %2277 = vmatprep.mubr.f32.mxu0 %v1810_v8 }
 0x28d   : > { %2278 = vmatmul.mubr.f32.gmra.mrb[228].mxu0 %v1809_v10  ;;  %v1811_v14 = vmax.f32 %v1633_v36, 0.0 }
 0x28e   : > { %v1812_v12 = vmax.f32 %v1635_v25, 0.0  ;;  %v1638_v13 = vpop.f32.mrb[104].mxu1 }
 0x28f   : > { %v1639_v15 = vadd.f32 %v1638_v13, %v4580_v17  ;;  %v1640_v16 = vpop.f32.mrb[105].mxu1 }
 0x290   : > { %v1641_v18 = vadd.f32 %v1640_v16, %v4583_v20  ;;  %2283 = vmatprep.mubr.f32.mxu0 %v1812_v12 }
 0x291   : > { %2284 = vmatmul.mubr.f32.gmra.mrb[230].mxu0 %v1811_v14  ;;  %v1813_v22 = vmax.f32 %v1639_v15, 0.0 }
 0x292   : > { %v1814_v19 = vmax.f32 %v1641_v18, 0.0  ;;  %v1644_v21 = vpop.f32.mrb[106].mxu1  ;;  %v1901_v18 = vld [vmem:[%s5152_s6] sm:$0x3] }
 0x293   : > { %v1645_v26 = vadd.f32 %v1644_v21, %v4580_v17  ;;  %v1646_v58 = vpop.f32.mrb[107].mxu1 }
 0x294   : > { %v1647_v0 = vadd.f32 %v1646_v58, %v4583_v20  ;;  %2289 = vmatprep.mubr.f32.mxu0 %v1814_v19 }
 0x295   : > { %2290 = vmatmul.mubr.f32.gmra.mrb[232].mxu0 %v1813_v22  ;;  %v1815_v33 = vmax.f32 %v1645_v26, 0.0 }
 0x296   : > { %v1816_v29 = vmax.f32 %v1647_v0, 0.0  ;;  %v1650_v32 = vpop.f32.mrb[108].mxu1  ;;  %v4845_v0 = vrot.slane %v1901_v18, %v4265_v24 }
 0x297   : > { %v1651_v34 = vadd.f32 %v1650_v32, %v4580_v17  ;;  %v1652_v37 = vpop.f32.mrb[109].mxu1 }
 0x298   : > { %v1653_v38 = vadd.f32 %v1652_v37, %v4583_v20  ;;  %v4801_v41 = vpop.f32.mrb[128].mxu0  ;;  %2295 = vmatprep.mubr.f32.mxu0 %v1816_v29 }
 0x299   : > { %v4803_v42 = vpop.f32.mrb[129].mxu0  ;;  %2296 = vmatmul.mubr.f32.gmra.mrb[234].mxu0 %v1815_v33  ;;  %v1817_v45 = vmax.f32 %v1651_v34, 0.0  ;;  %v4849_v34 = vrot.slane %v1901_v18, %v4272_v27 }
 0x29a   : > { %v1818_v43 = vmax.f32 %v1653_v38, 0.0  ;;  %v1656_v44 = vpop.f32.mrb[110].mxu1 }
 0x29b   : > { %v1657_v46 = vadd.f32 %v1656_v44, %v4580_v17  ;;  %v1658_v31 = vpop.f32.mrb[111].mxu1 }
 0x29c   : > { %v1659_v23 = vadd.f32 %v1658_v31, %v4583_v20  ;;  %v4807_v47 = vpop.f32.mrb[130].mxu0  ;;  %2301 = vmatprep.mubr.f32.mxu0 %v1818_v43 }
 0x29d   : > { %v4809_v48 = vpop.f32.mrb[131].mxu0  ;;  %2302 = vmatmul.mubr.f32.gmra.mrb[236].mxu0 %v1817_v45  ;;  %v1819_v50 = vmax.f32 %v1657_v46, 0.0 }
 0x29e   : > { %v1820_v49 = vmax.f32 %v1659_v23, 0.0  ;;  %v1662_v28 = vpop.f32.mrb[112].mxu1 }
 0x29f   : > { %v1663_v35 = vadd.f32 %v1662_v28, %v4580_v17  ;;  %v1664_v30 = vpop.f32.mrb[113].mxu1 }
 0x2a0   : > { %v1665_v51 = vadd.f32 %v1664_v30, %v4583_v20  ;;  %v4813_v52 = vpop.f32.mrb[132].mxu0  ;;  %2307 = vmatprep.mubr.f32.mxu0 %v1820_v49 }
 0x2a1   : > { %v4815_v53 = vpop.f32.mrb[133].mxu0  ;;  %2308 = vmatmul.mubr.f32.gmra.mrb[238].mxu0 %v1819_v50  ;;  %v1821_v55 = vmax.f32 %v1663_v35, 0.0 }
 0x2a2   : > { %v1822_v54 = vmax.f32 %v1665_v51, 0.0  ;;  %v1668_v59 = vpop.f32.mrb[114].mxu1 }
 0x2a3   : > { %v1669_v56 = vadd.f32 %v1668_v59, %v4580_v17  ;;  %v1670_v57 = vpop.f32.mrb[115].mxu1 }
 0x2a4   : > { %v1671_v61 = vadd.f32 %v1670_v57, %v4583_v20  ;;  %v4819_v62 = vpop.f32.mrb[134].mxu0  ;;  %2313 = vmatprep.mubr.f32.mxu0 %v1822_v54 }
 0x2a5   : > { %v4821_v63 = vpop.f32.mrb[135].mxu0  ;;  %2314 = vmatmul.mubr.f32.gmra.mrb[240].mxu0 %v1821_v55  ;;  %v1823_v60 = vmax.f32 %v1669_v56, 0.0 }
 0x2a6   : > { %v1824_v39 = vmax.f32 %v1671_v61, 0.0  ;;  %v1674_v1 = vpop.f32.mrb[116].mxu1 }
 0x2a7   : > { %v1675_v3 = vadd.f32 %v1674_v1, %v4580_v17  ;;  %v1676_v2 = vpop.f32.mrb[117].mxu1 }
 0x2a8   : > { %v1677_v4 = vadd.f32 %v1676_v2, %v4583_v20  ;;  %v4825_v40 = vpop.f32.mrb[136].mxu0  ;;  %2319 = vmatprep.mubr.f32.mxu0 %v1824_v39  ;;  %v1982_v39 = vadd.f32 %v4803_v42, %v4849_v34 }
 0x2a9   : > { %v4827_v5 = vpop.f32.mrb[137].mxu0  ;;  %2320 = vmatmul.mubr.f32.gmra.mrb[242].mxu0 %v1823_v60  ;;  %v1825_v8 = vmax.f32 %v1675_v3, 0.0 }
 0x2aa   : > { %v1826_v6 = vmax.f32 %v1677_v4, 0.0  ;;  %v1680_v7 = vpop.f32.mrb[118].mxu1  ;;  %v2363_v42 = vmax.f32 %v1982_v39, 0.0 }
 0x2ab   : > { %v1681_v9 = vadd.f32 %v1680_v7, %v4580_v17  ;;  %v1682_v10 = vpop.f32.mrb[119].mxu1 }
 0x2ac   : > { %v1683_v36 = vadd.f32 %v1682_v10, %v4583_v20  ;;  %v4831_v11 = vpop.f32.mrb[138].mxu0  ;;  %2325 = vmatprep.mubr.f32.mxu0 %v1826_v6 }
 0x2ad   : > { %v4833_v25 = vpop.f32.mrb[139].mxu0  ;;  %2326 = vmatmul.mubr.f32.gmra.mrb[244].mxu0 %v1825_v8  ;;  %v1827_v14 = vmax.f32 %v1681_v9, 0.0 }
 0x2ae   : > { %v1828_v12 = vmax.f32 %v1683_v36, 0.0  ;;  %v1686_v13 = vpop.f32.mrb[120].mxu1 }
 0x2af   : > { %v1687_v15 = vadd.f32 %v1686_v13, %v4580_v17  ;;  %v1688_v16 = vpop.f32.mrb[121].mxu1 }
 0x2b0   : > { %v1689_v19 = vadd.f32 %v1688_v16, %v4583_v20  ;;  %v4840_v21 = vpop.f32.mrb[140].mxu0  ;;  %2331 = vmatprep.mubr.f32.mxu0 %v1828_v12 }
 0x2b1   : > { %v4842_v22 = vpop.f32.mrb[141].mxu0  ;;  %2332 = vmatmul.mubr.f32.gmra.mrb[246].mxu0 %v1827_v14  ;;  %v1829_v29 = vmax.f32 %v1687_v15, 0.0 }
 0x2b2   : > { %v1830_v26 = vmax.f32 %v1689_v19, 0.0  ;;  %v1692_v58 = vpop.f32.mrb[122].mxu1 }
 0x2b3   : > { %v1693_v32 = vadd.f32 %v1692_v58, %v4580_v17  ;;  %v1694_v33 = vpop.f32.mrb[123].mxu1 }
 0x2b4   : > { %v1695_v37 = vadd.f32 %v1694_v33, %v4583_v20  ;;  %v2021_v38 = vpop.f32.mrb[142].mxu0  ;;  %2337 = vmatprep.mubr.f32.mxu0 %v1830_v26 }
 0x2b5   : > { %v2022_v43 = vadd.f32 %v2021_v38, %v4845_v0  ;;  %v2023_v44 = vpop.f32.mrb[143].mxu0  ;;  %2338 = vmatmul.mubr.f32.gmra.mrb[248].mxu0 %v1829_v29  ;;  %v1831_v31 = vmax.f32 %v1693_v32, 0.0 }
 0x2b6   : > { %v1832_v45 = vmax.f32 %v1695_v37, 0.0  ;;  %v2024_v46 = vadd.f32 %v2023_v44, %v4849_v34  ;;  %v1698_v24 = vpop.f32.mrb[124].mxu1 }
 0x2b7   : > { %v1699_v23 = vadd.f32 %v1698_v24, %v4580_v17  ;;  %v1700_v49 = vpop.f32.mrb[125].mxu1  ;;  %v2376_v35 = vmax.f32 %v2022_v43, 0.0 }
 0x2b8   : > { %v2377_v28 = vmax.f32 %v2024_v46, 0.0  ;;  %v1701_v27 = vadd.f32 %v1700_v49, %v4583_v20  ;;  %v2027_v50 = vpop.f32.mrb[144].mxu0  ;;  %2343 = vmatprep.mubr.f32.mxu0 %v1832_v45 }
 0x2b9   : > { %v2028_v30 = vadd.f32 %v2027_v50, %v4845_v0  ;;  %v2029_v51 = vpop.f32.mrb[145].mxu0  ;;  %2344 = vmatmul.mubr.f32.gmra.mrb[250].mxu0 %v1831_v31  ;;  %v1833_v56 = vmax.f32 %v1699_v23, 0.0 }
 0x2ba   : > { %v1834_v54 = vmax.f32 %v1701_v27, 0.0  ;;  %v2030_v59 = vadd.f32 %v2029_v51, %v4849_v34  ;;  %v1704_v55 = vpop.f32.mrb[126].mxu1  ;;  %2628 = vmatprep.mubr.f32.mxu1 %v2377_v28 }
 0x2bb   : > { %v1705_v57 = vadd.f32 %v1704_v55, %v4580_v17  ;;  %v1706_v61 = vpop.f32.mrb[127].mxu1  ;;  %2629 = vmatmul.mubr.f32.vlgmr.msra.gmra.mrb[128].mxu1 %v2376_v35  ;;  %v2378_v2 = vmax.f32 %v2028_v30, 0.0  ;;  %v1980_v17 = vadd.f32 %v4801_v41, %v4845_v0  ;;  %v1986_v41 = vadd.f32 %v4807_v47, %v4845_v0 }
 0x2bc   : > { %v2379_v1 = vmax.f32 %v2030_v59, 0.0  ;;  %v1707_v60 = vadd.f32 %v1706_v61, %v4583_v20  ;;  %v2033_v3 = vpop.f32.mrb[146].mxu0  ;;  %2349 = vmatprep.mubr.f32.mxu0 %v1834_v54  ;;  %v1988_v20 = vadd.f32 %v4809_v48, %v4849_v34  ;;  %v1994_v48 = vadd.f32 %v4815_v53, %v4849_v34 }
 0x2bd   : > { %v2034_v4 = vadd.f32 %v2033_v3, %v4845_v0  ;;  %v2035_v6 = vpop.f32.mrb[147].mxu0  ;;  %2350 = vmatmul.mubr.f32.gmra.mrb[252].mxu0 %v1833_v56  ;;  %v1835_v9 = vmax.f32 %v1705_v57, 0.0  ;;  %v2362_v16 = vmax.f32 %v1980_v17, 0.0  ;;  %v2364_v37 = vmax.f32 %v1986_v41, 0.0 }
 0x2be   : > { %v1836_v7 = vmax.f32 %v1707_v60, 0.0  ;;  %v2036_v8 = vadd.f32 %v2035_v6, %v4849_v34  ;;  %2633 = vmatprep.mubr.f32.mxu1 %v2379_v1  ;;  %v2365_v18 = vmax.f32 %v1988_v20, 0.0  ;;  %v1992_v47 = vadd.f32 %v4813_v52, %v4845_v0 }
 0x2bf   : > { %2634 = vmatmul.mubr.f32.gmra.mrb[130].mxu1 %v2378_v2  ;;  %v2380_v12 = vmax.f32 %v2034_v4, 0.0  ;;  %v2367_v38 = vmax.f32 %v1994_v48, 0.0  ;;  %v2000_v53 = vadd.f32 %v4821_v63, %v4849_v34  ;;  %v1998_v52 = vadd.f32 %v4819_v62, %v4845_v0 }
 0x2c0   : > { %v2381_v10 = vmax.f32 %v2036_v8, 0.0  ;;  %v2039_v36 = vpop.f32.mrb[148].mxu0  ;;  %2355 = vmatprep.mubr.f32.mxu0 %v1836_v7  ;;  %v2366_v23 = vmax.f32 %v1992_v47, 0.0  ;;  %v2006_v63 = vadd.f32 %v4827_v5, %v4849_v34  ;;  %v2004_v62 = vadd.f32 %v4825_v40, %v4845_v0 }
 0x2c1   : > { %v2040_v13 = vadd.f32 %v2039_v36, %v4845_v0  ;;  %v2041_v14 = vpop.f32.mrb[149].mxu0  ;;  %2356 = vmatmul.mubr.f32.gmra.mrb[254].mxu0 %v1835_v9  ;;  %v2369_v49 = vmax.f32 %v2000_v53, 0.0  ;;  %v2368_v54 = vmax.f32 %v1998_v52, 0.0  ;;  %v2012_v5 = vadd.f32 %v4833_v25, %v4849_v34 }
 0x2c2   : > { %v2042_v15 = vadd.f32 %v2041_v14, %v4849_v34  ;;  %2593 = vmatprep.mubr.f32.mxu0 %v2363_v42  ;;  %2638 = vmatprep.mubr.f32.mxu1 %v2381_v10  ;;  %v2371_v59 = vmax.f32 %v2006_v63, 0.0  ;;  %v2370_v60 = vmax.f32 %v2004_v62, 0.0  ;;  %v2010_v40 = vadd.f32 %v4831_v11, %v4845_v0 }
 0x2c3   : > { %2639 = vmatmul.mubr.f32.gmra.mrb[132].mxu1 %v2380_v12  ;;  %v2382_v58 = vmax.f32 %v2040_v13, 0.0  ;;  %v2373_v3 = vmax.f32 %v2012_v5, 0.0  ;;  %v2018_v25 = vadd.f32 %v4842_v22, %v4849_v34  ;;  %v2016_v11 = vadd.f32 %v4840_v21, %v4845_v0 }
 0x2c4   : > { %v2383_v19 = vmax.f32 %v2042_v15, 0.0  ;;  %v2045_v26 = vpop.f32.mrb[150].mxu0  ;;  %v2372_v9 = vmax.f32 %v2010_v40, 0.0 }
 0x2c5   : > { %v2046_v29 = vadd.f32 %v2045_v26, %v4845_v0  ;;  %v2047_v32 = vpop.f32.mrb[151].mxu0  ;;  %2594 = vmatmul.mubr.f32.vlgmr.msra.gmra.mrb[0].mxu0 %v2362_v16  ;;  %v2375_v42 = vmax.f32 %v2018_v25, 0.0  ;;  %v2374_v14 = vmax.f32 %v2016_v11, 0.0 }
 0x2c6   : > { %v2048_v33 = vadd.f32 %v2047_v32, %v4849_v34  ;;  %2598 = vmatprep.mubr.f32.mxu0 %v2365_v18  ;;  %2643 = vmatprep.mubr.f32.mxu1 %v2383_v19 }
 0x2c7   : > { %2644 = vmatmul.mubr.f32.gmra.mrb[134].mxu1 %v2382_v58  ;;  %v2384_v45 = vmax.f32 %v2046_v29, 0.0 }
 0x2c8   : > { %v2385_v43 = vmax.f32 %v2048_v33, 0.0  ;;  %v2051_v44 = vpop.f32.mrb[152].mxu0 }
 0x2c9   : > { %v2052_v46 = vadd.f32 %v2051_v44, %v4845_v0  ;;  %v2053_v24 = vpop.f32.mrb[153].mxu0  ;;  %2599 = vmatmul.mubr.f32.gmra.mrb[2].mxu0 %v2364_v37 }
 0x2ca   : > { %v2054_v31 = vadd.f32 %v2053_v24, %v4849_v34  ;;  %2603 = vmatprep.mubr.f32.mxu0 %v2367_v38  ;;  %2648 = vmatprep.mubr.f32.mxu1 %v2385_v43 }
 0x2cb   : > { %2649 = vmatmul.mubr.f32.gmra.mrb[136].mxu1 %v2384_v45  ;;  %v2386_v50 = vmax.f32 %v2052_v46, 0.0 }
 0x2cc   : > { %v2387_v28 = vmax.f32 %v2054_v31, 0.0  ;;  %v2057_v27 = vpop.f32.mrb[154].mxu0 }
 0x2cd   : > { %v2058_v35 = vadd.f32 %v2057_v27, %v4845_v0  ;;  %v2059_v30 = vpop.f32.mrb[155].mxu0  ;;  %2604 = vmatmul.mubr.f32.gmra.mrb[4].mxu0 %v2366_v23 }
 0x2ce   : > { %v2060_v51 = vadd.f32 %v2059_v30, %v4849_v34  ;;  %2608 = vmatprep.mubr.f32.mxu0 %v2369_v49  ;;  %2653 = vmatprep.mubr.f32.mxu1 %v2387_v28 }
 0x2cf   : > { %2654 = vmatmul.mubr.f32.gmra.mrb[138].mxu1 %v2386_v50  ;;  %v2388_v57 = vmax.f32 %v2058_v35, 0.0 }
 0x2d0   : > { %v2389_v55 = vmax.f32 %v2060_v51, 0.0  ;;  %v2063_v56 = vpop.f32.mrb[156].mxu0 }
 0x2d1   : > { %v2064_v61 = vadd.f32 %v2063_v56, %v4845_v0  ;;  %v2065_v39 = vpop.f32.mrb[157].mxu0  ;;  %2609 = vmatmul.mubr.f32.gmra.mrb[6].mxu0 %v2368_v54 }
 0x2d2   : > { %v2066_v1 = vadd.f32 %v2065_v39, %v4849_v34  ;;  %2613 = vmatprep.mubr.f32.mxu0 %v2371_v59  ;;  %2658 = vmatprep.mubr.f32.mxu1 %v2389_v55 }
 0x2d3   : > { %2659 = vmatmul.mubr.f32.gmra.mrb[140].mxu1 %v2388_v57  ;;  %v2390_v6 = vmax.f32 %v2064_v61, 0.0 }
 0x2d4   : > { %v2391_v2 = vmax.f32 %v2066_v1, 0.0  ;;  %v2069_v4 = vpop.f32.mrb[158].mxu0 }
 0x2d5   : > { %v2070_v7 = vadd.f32 %v2069_v4, %v4845_v0  ;;  %v2071_v8 = vpop.f32.mrb[159].mxu0  ;;  %2614 = vmatmul.mubr.f32.gmra.mrb[8].mxu0 %v2370_v60 }
 0x2d6   : > { %v2072_v17 = vadd.f32 %v2071_v8, %v4849_v34  ;;  %2618 = vmatprep.mubr.f32.mxu0 %v2373_v3  ;;  %2663 = vmatprep.mubr.f32.mxu1 %v2391_v2 }
 0x2d7   : > { %2664 = vmatmul.mubr.f32.gmra.mrb[142].mxu1 %v2390_v6  ;;  %v2392_v22 = vmax.f32 %v2070_v7, 0.0 }
 0x2d8   : > { %v2393_v20 = vmax.f32 %v2072_v17, 0.0  ;;  %v2075_v10 = vpop.f32.mrb[160].mxu0 }
 0x2d9   : > { %v2076_v36 = vadd.f32 %v2075_v10, %v4845_v0  ;;  %v2077_v12 = vpop.f32.mrb[161].mxu0  ;;  %2619 = vmatmul.mubr.f32.gmra.mrb[10].mxu0 %v2372_v9 }
 0x2da   : > { %v2078_v13 = vadd.f32 %v2077_v12, %v4849_v34  ;;  %2623 = vmatprep.mubr.f32.mxu0 %v2375_v42  ;;  %2668 = vmatprep.mubr.f32.mxu1 %v2393_v20 }
 0x2db   : > { %2669 = vmatmul.mubr.f32.gmra.mrb[144].mxu1 %v2392_v22  ;;  %v2394_v41 = vmax.f32 %v2076_v36, 0.0 }
 0x2dc   : > { %v2395_v15 = vmax.f32 %v2078_v13, 0.0  ;;  %v2081_v16 = vpop.f32.mrb[162].mxu0 }
 0x2dd   : > { %v2082_v21 = vadd.f32 %v2081_v16, %v4845_v0  ;;  %v2083_v18 = vpop.f32.mrb[163].mxu0  ;;  %2624 = vmatmul.mubr.f32.gmra.mrb[12].mxu0 %v2374_v14 }
 0x2de   : > { %v2084_v48 = vadd.f32 %v2083_v18, %v4849_v34  ;;  %2673 = vmatprep.mubr.f32.mxu1 %v2395_v15 }
 0x2df   : > { %2674 = vmatmul.mubr.f32.gmra.mrb[146].mxu1 %v2394_v41  ;;  %v2396_v58 = vmax.f32 %v2082_v21, 0.0 }
 0x2e0   : > { %v2397_v19 = vmax.f32 %v2084_v48, 0.0  ;;  %v2087_v26 = vpop.f32.mrb[164].mxu0 }
 0x2e1   : > { %v2088_v29 = vadd.f32 %v2087_v26, %v4845_v0  ;;  %v2089_v32 = vpop.f32.mrb[165].mxu0 }
 0x2e2   : > { %v2090_v33 = vadd.f32 %v2089_v32, %v4849_v34  ;;  %2678 = vmatprep.mubr.f32.mxu1 %v2397_v19 }
 0x2e3   : > { %2679 = vmatmul.mubr.f32.gmra.mrb[148].mxu1 %v2396_v58  ;;  %v2398_v38 = vmax.f32 %v2088_v29, 0.0 }
 0x2e4   : > { %v2399_v37 = vmax.f32 %v2090_v33, 0.0  ;;  %v2093_v47 = vpop.f32.mrb[166].mxu0 }
 0x2e5   : > { %v2094_v53 = vadd.f32 %v2093_v47, %v4845_v0  ;;  %v2095_v43 = vpop.f32.mrb[167].mxu0 }
 0x2e6   : > { %v2096_v44 = vadd.f32 %v2095_v43, %v4849_v34  ;;  %2683 = vmatprep.mubr.f32.mxu1 %v2399_v37 }
 0x2e7   : > { %2684 = vmatmul.mubr.f32.gmra.mrb[150].mxu1 %v2398_v38  ;;  %v2400_v24 = vmax.f32 %v2094_v53, 0.0 }
 0x2e8   : > { %v2401_v45 = vmax.f32 %v2096_v44, 0.0  ;;  %v2099_v46 = vpop.f32.mrb[168].mxu0 }
 0x2e9   : > { %v2100_v31 = vadd.f32 %v2099_v46, %v4845_v0  ;;  %v2101_v23 = vpop.f32.mrb[169].mxu0 }
 0x2ea   : > { %v2102_v52 = vadd.f32 %v2101_v23, %v4849_v34  ;;  %2688 = vmatprep.mubr.f32.mxu1 %v2401_v45 }
 0x2eb   : > { %2689 = vmatmul.mubr.f32.gmra.mrb[152].mxu1 %v2400_v24  ;;  %v2402_v28 = vmax.f32 %v2100_v31, 0.0 }
 0x2ec   : > { %v2403_v49 = vmax.f32 %v2102_v52, 0.0  ;;  %v2105_v63 = vpop.f32.mrb[170].mxu0 }
 0x2ed   : > { %v2106_v27 = vadd.f32 %v2105_v63, %v4845_v0  ;;  %v2107_v50 = vpop.f32.mrb[171].mxu0 }
 0x2ee   : > { %v2108_v35 = vadd.f32 %v2107_v50, %v4849_v34  ;;  %2693 = vmatprep.mubr.f32.mxu1 %v2403_v49 }
 0x2ef   : > { %2694 = vmatmul.mubr.f32.gmra.mrb[154].mxu1 %v2402_v28  ;;  %v2404_v54 = vmax.f32 %v2106_v27, 0.0 }
 0x2f0   : > { %v2405_v30 = vmax.f32 %v2108_v35, 0.0  ;;  %v2111_v51 = vpop.f32.mrb[172].mxu0 }
 0x2f1   : > { %v2112_v62 = vadd.f32 %v2111_v51, %v4845_v0  ;;  %v2113_v59 = vpop.f32.mrb[173].mxu0 }
 0x2f2   : > { %v2114_v5 = vadd.f32 %v2113_v59, %v4849_v34  ;;  %2698 = vmatprep.mubr.f32.mxu1 %v2405_v30 }
 0x2f3   : > { %2699 = vmatmul.mubr.f32.gmra.mrb[156].mxu1 %v2404_v54  ;;  %v2406_v57 = vmax.f32 %v2112_v62, 0.0 }
 0x2f4   : > { %v2407_v55 = vmax.f32 %v2114_v5, 0.0  ;;  %v2117_v56 = vpop.f32.mrb[174].mxu0 }
 0x2f5   : > { %v2118_v61 = vadd.f32 %v2117_v56, %v4845_v0  ;;  %v2119_v39 = vpop.f32.mrb[175].mxu0 }
 0x2f6   : > { %v2120_v1 = vadd.f32 %v2119_v39, %v4849_v34  ;;  %2703 = vmatprep.mubr.f32.mxu1 %v2407_v55 }
 0x2f7   : > { %2704 = vmatmul.mubr.f32.gmra.mrb[158].mxu1 %v2406_v57  ;;  %v2408_v3 = vmax.f32 %v2118_v61, 0.0 }
 0x2f8   : > { %v2409_v60 = vmax.f32 %v2120_v1, 0.0  ;;  %v2123_v40 = vpop.f32.mrb[176].mxu0 }
 0x2f9   : > { %v2124_v25 = vadd.f32 %v2123_v40, %v4845_v0  ;;  %v2125_v2 = vpop.f32.mrb[177].mxu0 }
 0x2fa   : > { %v2126_v4 = vadd.f32 %v2125_v2, %v4849_v34  ;;  %2708 = vmatprep.mubr.f32.mxu1 %v2409_v60 }
 0x2fb   : > { %2709 = vmatmul.mubr.f32.gmra.mrb[160].mxu1 %v2408_v3  ;;  %v2410_v8 = vmax.f32 %v2124_v25, 0.0 }
 0x2fc   : > { %v2411_v6 = vmax.f32 %v2126_v4, 0.0  ;;  %v2129_v7 = vpop.f32.mrb[178].mxu0 }
 0x2fd   : > { %v2130_v17 = vadd.f32 %v2129_v7, %v4845_v0  ;;  %v2131_v9 = vpop.f32.mrb[179].mxu0 }
 0x2fe   : > { %v2132_v11 = vadd.f32 %v2131_v9, %v4849_v34  ;;  %2713 = vmatprep.mubr.f32.mxu1 %v2411_v6 }
 0x2ff   : > { %2714 = vmatmul.mubr.f32.gmra.mrb[162].mxu1 %v2410_v8  ;;  %v2412_v10 = vmax.f32 %v2130_v17, 0.0 }
 0x300   : > { %v2413_v42 = vmax.f32 %v2132_v11, 0.0  ;;  %v2135_v20 = vpop.f32.mrb[180].mxu0 }
 0x301   : > { %v2136_v22 = vadd.f32 %v2135_v20, %v4845_v0  ;;  %v2137_v36 = vpop.f32.mrb[181].mxu0 }
 0x302   : > { %v2138_v12 = vadd.f32 %v2137_v36, %v4849_v34  ;;  %2718 = vmatprep.mubr.f32.mxu1 %v2413_v42 }
 0x303   : > { %2719 = vmatmul.mubr.f32.gmra.mrb[164].mxu1 %v2412_v10  ;;  %v2414_v15 = vmax.f32 %v2136_v22, 0.0 }
 0x304   : > { %v2415_v13 = vmax.f32 %v2138_v12, 0.0  ;;  %v2141_v14 = vpop.f32.mrb[182].mxu0 }
 0x305   : > { %v2142_v16 = vadd.f32 %v2141_v14, %v4845_v0  ;;  %v2143_v41 = vpop.f32.mrb[183].mxu0 }
 0x306   : > { %v2144_v21 = vadd.f32 %v2143_v41, %v4849_v34  ;;  %2723 = vmatprep.mubr.f32.mxu1 %v2415_v13 }
 0x307   : > { %2724 = vmatmul.mubr.f32.gmra.mrb[166].mxu1 %v2414_v15  ;;  %v2416_v19 = vmax.f32 %v2142_v16, 0.0 }
 0x308   : > { %v2417_v18 = vmax.f32 %v2144_v21, 0.0  ;;  %v2147_v48 = vpop.f32.mrb[184].mxu0 }
 0x309   : > { %v2148_v26 = vadd.f32 %v2147_v48, %v4845_v0  ;;  %v2149_v58 = vpop.f32.mrb[185].mxu0 }
 0x30a   : > { %v2150_v29 = vadd.f32 %v2149_v58, %v4849_v34  ;;  %2728 = vmatprep.mubr.f32.mxu1 %v2417_v18 }
 0x30b   : > { %2729 = vmatmul.mubr.f32.gmra.mrb[168].mxu1 %v2416_v19  ;;  %v2418_v37 = vmax.f32 %v2148_v26, 0.0 }
 0x30c   : > { %v2419_v32 = vmax.f32 %v2150_v29, 0.0  ;;  %v2153_v33 = vpop.f32.mrb[186].mxu0 }
 0x30d   : > { %v2154_v47 = vadd.f32 %v2153_v33, %v4845_v0  ;;  %v2155_v38 = vpop.f32.mrb[187].mxu0 }
 0x30e   : > { %v2156_v53 = vadd.f32 %v2155_v38, %v4849_v34  ;;  %2733 = vmatprep.mubr.f32.mxu1 %v2419_v32 }
 0x30f   : > { %2734 = vmatmul.mubr.f32.gmra.mrb[170].mxu1 %v2418_v37  ;;  %v2420_v45 = vmax.f32 %v2154_v47, 0.0 }
 0x310   : > { %v2421_v43 = vmax.f32 %v2156_v53, 0.0  ;;  %v2159_v44 = vpop.f32.mrb[188].mxu0 }
 0x311   : > { %v2160_v46 = vadd.f32 %v2159_v44, %v4845_v0  ;;  %v2161_v24 = vpop.f32.mrb[189].mxu0 }
 0x312   : > { %v2162_v31 = vadd.f32 %v2161_v24, %v4849_v34  ;;  %2738 = vmatprep.mubr.f32.mxu1 %v2421_v43 }
 0x313   : > { %2739 = vmatmul.mubr.f32.gmra.mrb[172].mxu1 %v2420_v45  ;;  %v2422_v49 = vmax.f32 %v2160_v46, 0.0 }
 0x314   : > { %v2423_v23 = vmax.f32 %v2162_v31, 0.0  ;;  %v2165_v52 = vpop.f32.mrb[190].mxu0 }
 0x315   : > { %v2166_v63 = vadd.f32 %v2165_v52, %v4845_v0  ;;  %v2167_v28 = vpop.f32.mrb[191].mxu0 }
 0x316   : > { %v2168_v27 = vadd.f32 %v2167_v28, %v4849_v34  ;;  %2743 = vmatprep.mubr.f32.mxu1 %v2423_v23 }
 0x317   : > { %2744 = vmatmul.mubr.f32.gmra.mrb[174].mxu1 %v2422_v49  ;;  %v2424_v30 = vmax.f32 %v2166_v63, 0.0 }
 0x318   : > { %v2425_v50 = vmax.f32 %v2168_v27, 0.0  ;;  %v2171_v35 = vpop.f32.mrb[192].mxu0 }
 0x319   : > { %v2172_v51 = vadd.f32 %v2171_v35, %v4845_v0  ;;  %v2173_v54 = vpop.f32.mrb[193].mxu0 }
 0x31a   : > { %v2174_v62 = vadd.f32 %v2173_v54, %v4849_v34  ;;  %2748 = vmatprep.mubr.f32.mxu1 %v2425_v50 }
 0x31b   : > { %2749 = vmatmul.mubr.f32.gmra.mrb[176].mxu1 %v2424_v30  ;;  %v2426_v55 = vmax.f32 %v2172_v51, 0.0 }
 0x31c   : > { %v2427_v59 = vmax.f32 %v2174_v62, 0.0  ;;  %v2177_v5 = vpop.f32.mrb[194].mxu0 }
 0x31d   : > { %v2178_v56 = vadd.f32 %v2177_v5, %v4845_v0  ;;  %v2179_v57 = vpop.f32.mrb[195].mxu0 }
 0x31e   : > { %v2180_v61 = vadd.f32 %v2179_v57, %v4849_v34  ;;  %2753 = vmatprep.mubr.f32.mxu1 %v2427_v59 }
 0x31f   : > { %2754 = vmatmul.mubr.f32.gmra.mrb[178].mxu1 %v2426_v55  ;;  %v2428_v60 = vmax.f32 %v2178_v56, 0.0 }
 0x320   : > { %v2429_v39 = vmax.f32 %v2180_v61, 0.0  ;;  %v2183_v1 = vpop.f32.mrb[196].mxu0 }
 0x321   : > { %v2184_v40 = vadd.f32 %v2183_v1, %v4845_v0  ;;  %v2185_v3 = vpop.f32.mrb[197].mxu0 }
 0x322   : > { %v2186_v25 = vadd.f32 %v2185_v3, %v4849_v34  ;;  %2758 = vmatprep.mubr.f32.mxu1 %v2429_v39 }
 0x323   : > { %2759 = vmatmul.mubr.f32.gmra.mrb[180].mxu1 %v2428_v60  ;;  %v2430_v6 = vmax.f32 %v2184_v40, 0.0 }
 0x324   : > { %v2431_v2 = vmax.f32 %v2186_v25, 0.0  ;;  %v2189_v4 = vpop.f32.mrb[198].mxu0 }
 0x325   : > { %v2190_v7 = vadd.f32 %v2189_v4, %v4845_v0  ;;  %v2191_v8 = vpop.f32.mrb[199].mxu0 }
 0x326   : > { %v2192_v17 = vadd.f32 %v2191_v8, %v4849_v34  ;;  %2763 = vmatprep.mubr.f32.mxu1 %v2431_v2 }
 0x327   : > { %2764 = vmatmul.mubr.f32.gmra.mrb[182].mxu1 %v2430_v6  ;;  %v2432_v42 = vmax.f32 %v2190_v7, 0.0 }
 0x328   : > { %v2433_v9 = vmax.f32 %v2192_v17, 0.0  ;;  %v2195_v11 = vpop.f32.mrb[200].mxu0 }
 0x329   : > { %v2196_v20 = vadd.f32 %v2195_v11, %v4845_v0  ;;  %v2197_v10 = vpop.f32.mrb[201].mxu0 }
 0x32a   : > { %v2198_v22 = vadd.f32 %v2197_v10, %v4849_v34  ;;  %2768 = vmatprep.mubr.f32.mxu1 %v2433_v9 }
 0x32b   : > { %2769 = vmatmul.mubr.f32.gmra.mrb[184].mxu1 %v2432_v42  ;;  %v2434_v13 = vmax.f32 %v2196_v20, 0.0 }
 0x32c   : > { %v2435_v36 = vmax.f32 %v2198_v22, 0.0  ;;  %v2201_v12 = vpop.f32.mrb[202].mxu0 }
 0x32d   : > { %v2202_v14 = vadd.f32 %v2201_v12, %v4845_v0  ;;  %v2203_v15 = vpop.f32.mrb[203].mxu0 }
 0x32e   : > { %v2204_v16 = vadd.f32 %v2203_v15, %v4849_v34  ;;  %2773 = vmatprep.mubr.f32.mxu1 %v2435_v36 }
 0x32f   : > { %2774 = vmatmul.mubr.f32.gmra.mrb[186].mxu1 %v2434_v13  ;;  %v2436_v18 = vmax.f32 %v2202_v14, 0.0 }
 0x330   : > { %v2437_v41 = vmax.f32 %v2204_v16, 0.0  ;;  %v2207_v21 = vpop.f32.mrb[204].mxu0 }
 0x331   : > { %v2208_v48 = vadd.f32 %v2207_v21, %v4845_v0  ;;  %v2209_v19 = vpop.f32.mrb[205].mxu0 }
 0x332   : > { %v2210_v26 = vadd.f32 %v2209_v19, %v4849_v34  ;;  %2778 = vmatprep.mubr.f32.mxu1 %v2437_v41 }
 0x333   : > { %2779 = vmatmul.mubr.f32.gmra.mrb[188].mxu1 %v2436_v18  ;;  %v2438_v32 = vmax.f32 %v2208_v48, 0.0 }
 0x334   : > { %v2439_v58 = vmax.f32 %v2210_v26, 0.0  ;;  %v2213_v29 = vpop.f32.mrb[206].mxu0 }
 0x335   : > { %v2214_v33 = vadd.f32 %v2213_v29, %v4845_v0  ;;  %v2215_v37 = vpop.f32.mrb[207].mxu0 }
 0x336   : > { %v2216_v47 = vadd.f32 %v2215_v37, %v4849_v34  ;;  %2783 = vmatprep.mubr.f32.mxu1 %v2439_v58 }
 0x337   : > { %2784 = vmatmul.mubr.f32.gmra.mrb[190].mxu1 %v2438_v32  ;;  %v2440_v43 = vmax.f32 %v2214_v33, 0.0 }
 0x338   : > { %v2441_v38 = vmax.f32 %v2216_v47, 0.0  ;;  %v2219_v53 = vpop.f32.mrb[208].mxu0 }
 0x339   : > { %v2220_v44 = vadd.f32 %v2219_v53, %v4845_v0  ;;  %v2221_v45 = vpop.f32.mrb[209].mxu0 }
 0x33a   : > { %v2222_v46 = vadd.f32 %v2221_v45, %v4849_v34  ;;  %2788 = vmatprep.mubr.f32.mxu1 %v2441_v38 }
 0x33b   : > { %2789 = vmatmul.mubr.f32.gmra.mrb[192].mxu1 %v2440_v43  ;;  %v2442_v23 = vmax.f32 %v2220_v44, 0.0 }
 0x33c   : > { %v2443_v24 = vmax.f32 %v2222_v46, 0.0  ;;  %v2225_v31 = vpop.f32.mrb[210].mxu0 }
 0x33d   : > { %v2226_v52 = vadd.f32 %v2225_v31, %v4845_v0  ;;  %v2227_v49 = vpop.f32.mrb[211].mxu0 }
 0x33e   : > { %v2228_v63 = vadd.f32 %v2227_v49, %v4849_v34  ;;  %2793 = vmatprep.mubr.f32.mxu1 %v2443_v24 }
 0x33f   : > { %2794 = vmatmul.mubr.f32.gmra.mrb[194].mxu1 %v2442_v23  ;;  %v2444_v50 = vmax.f32 %v2226_v52, 0.0 }
 0x340   : > { %v2445_v28 = vmax.f32 %v2228_v63, 0.0  ;;  %v2231_v27 = vpop.f32.mrb[212].mxu0 }
 0x341   : > { %v2232_v35 = vadd.f32 %v2231_v27, %v4845_v0  ;;  %v2233_v30 = vpop.f32.mrb[213].mxu0 }
 0x342   : > { %v2234_v51 = vadd.f32 %v2233_v30, %v4849_v34  ;;  %2798 = vmatprep.mubr.f32.mxu1 %v2445_v28 }
 0x343   : > { %2799 = vmatmul.mubr.f32.gmra.mrb[196].mxu1 %v2444_v50  ;;  %v2446_v59 = vmax.f32 %v2232_v35, 0.0 }
 0x344   : > { %v2447_v54 = vmax.f32 %v2234_v51, 0.0  ;;  %v2237_v62 = vpop.f32.mrb[214].mxu0 }
 0x345   : > { %v2238_v5 = vadd.f32 %v2237_v62, %v4845_v0  ;;  %v2239_v55 = vpop.f32.mrb[215].mxu0 }
 0x346   : > { %v2240_v56 = vadd.f32 %v2239_v55, %v4849_v34  ;;  %2803 = vmatprep.mubr.f32.mxu1 %v2447_v54 }
 0x347   : > { %2804 = vmatmul.mubr.f32.gmra.mrb[198].mxu1 %v2446_v59  ;;  %v2448_v39 = vmax.f32 %v2238_v5, 0.0 }
 0x348   : > { %v2449_v57 = vmax.f32 %v2240_v56, 0.0  ;;  %v2243_v61 = vpop.f32.mrb[216].mxu0 }
 0x349   : > { %v2244_v1 = vadd.f32 %v2243_v61, %v4845_v0  ;;  %v2245_v60 = vpop.f32.mrb[217].mxu0 }
 0x34a   : > { %v2246_v40 = vadd.f32 %v2245_v60, %v4849_v34  ;;  %2808 = vmatprep.mubr.f32.mxu1 %v2449_v57 }
 0x34b   : > { %2809 = vmatmul.mubr.f32.gmra.mrb[200].mxu1 %v2448_v39  ;;  %v2450_v2 = vmax.f32 %v2244_v1, 0.0 }
 0x34c   : > { %v2451_v3 = vmax.f32 %v2246_v40, 0.0  ;;  %v2249_v25 = vpop.f32.mrb[218].mxu0 }
 0x34d   : > { %v2250_v4 = vadd.f32 %v2249_v25, %v4845_v0  ;;  %v2251_v6 = vpop.f32.mrb[219].mxu0 }
 0x34e   : > { %v2252_v7 = vadd.f32 %v2251_v6, %v4849_v34  ;;  %2813 = vmatprep.mubr.f32.mxu1 %v2451_v3 }
 0x34f   : > { %2814 = vmatmul.mubr.f32.gmra.mrb[202].mxu1 %v2450_v2  ;;  %v2452_v9 = vmax.f32 %v2250_v4, 0.0 }
 0x350   : > { %v2453_v8 = vmax.f32 %v2252_v7, 0.0  ;;  %v2255_v17 = vpop.f32.mrb[220].mxu0 }
 0x351   : > { %v2256_v11 = vadd.f32 %v2255_v17, %v4845_v0  ;;  %v2257_v42 = vpop.f32.mrb[221].mxu0 }
 0x352   : > { %v2258_v20 = vadd.f32 %v2257_v42, %v4849_v34  ;;  %2818 = vmatprep.mubr.f32.mxu1 %v2453_v8 }
 0x353   : > { %2819 = vmatmul.mubr.f32.gmra.mrb[204].mxu1 %v2452_v9  ;;  %v2454_v36 = vmax.f32 %v2256_v11, 0.0 }
 0x354   : > { %v2455_v10 = vmax.f32 %v2258_v20, 0.0  ;;  %v2261_v22 = vpop.f32.mrb[222].mxu0 }
 0x355   : > { %v2262_v12 = vadd.f32 %v2261_v22, %v4845_v0  ;;  %v2263_v13 = vpop.f32.mrb[223].mxu0 }
 0x356   : > { %v2264_v14 = vadd.f32 %v2263_v13, %v4849_v34  ;;  %2823 = vmatprep.mubr.f32.mxu1 %v2455_v10 }
 0x357   : > { %2824 = vmatmul.mubr.f32.gmra.mrb[206].mxu1 %v2454_v36  ;;  %v2456_v41 = vmax.f32 %v2262_v12, 0.0 }
 0x358   : > { %v2457_v15 = vmax.f32 %v2264_v14, 0.0  ;;  %v2267_v16 = vpop.f32.mrb[224].mxu0 }
 0x359   : > { %v2268_v21 = vadd.f32 %v2267_v16, %v4845_v0  ;;  %v2269_v18 = vpop.f32.mrb[225].mxu0 }
 0x35a   : > { %v2270_v48 = vadd.f32 %v2269_v18, %v4849_v34  ;;  %2828 = vmatprep.mubr.f32.mxu1 %v2457_v15 }
 0x35b   : > { %2829 = vmatmul.mubr.f32.gmra.mrb[208].mxu1 %v2456_v41  ;;  %v2458_v58 = vmax.f32 %v2268_v21, 0.0 }
 0x35c   : > { %v2459_v19 = vmax.f32 %v2270_v48, 0.0  ;;  %v2273_v26 = vpop.f32.mrb[226].mxu0 }
 0x35d   : > { %v2274_v29 = vadd.f32 %v2273_v26, %v4845_v0  ;;  %v2275_v32 = vpop.f32.mrb[227].mxu0 }
 0x35e   : > { %v2276_v33 = vadd.f32 %v2275_v32, %v4849_v34  ;;  %2833 = vmatprep.mubr.f32.mxu1 %v2459_v19 }
 0x35f   : > { %2834 = vmatmul.mubr.f32.gmra.mrb[210].mxu1 %v2458_v58  ;;  %v2460_v38 = vmax.f32 %v2274_v29, 0.0 }
 0x360   : > { %v2461_v37 = vmax.f32 %v2276_v33, 0.0  ;;  %v2279_v47 = vpop.f32.mrb[228].mxu0 }
 0x361   : > { %v2280_v53 = vadd.f32 %v2279_v47, %v4845_v0  ;;  %v2281_v43 = vpop.f32.mrb[229].mxu0 }
 0x362   : > { %v2282_v44 = vadd.f32 %v2281_v43, %v4849_v34  ;;  %2838 = vmatprep.mubr.f32.mxu1 %v2461_v37 }
 0x363   : > { %2839 = vmatmul.mubr.f32.gmra.mrb[212].mxu1 %v2460_v38  ;;  %v2462_v24 = vmax.f32 %v2280_v53, 0.0 }
 0x364   : > { %v2463_v45 = vmax.f32 %v2282_v44, 0.0  ;;  %v2285_v46 = vpop.f32.mrb[230].mxu0 }
 0x365   : > { %v2286_v31 = vadd.f32 %v2285_v46, %v4845_v0  ;;  %v2287_v23 = vpop.f32.mrb[231].mxu0 }
 0x366   : > { %v2288_v52 = vadd.f32 %v2287_v23, %v4849_v34  ;;  %2843 = vmatprep.mubr.f32.mxu1 %v2463_v45  ;;  %v4995_v45 = vld [vmem:[%s5154_s8] ss:$0 sm:$0xff] }
 0x367   : > { %2844 = vmatmul.mubr.f32.gmra.mrb[214].mxu1 %v2462_v24  ;;  %v2464_v28 = vmax.f32 %v2286_v31, 0.0 }
 0x368   : > { %v2465_v49 = vmax.f32 %v2288_v52, 0.0  ;;  %v2291_v63 = vpop.f32.mrb[232].mxu0 }
 0x369   : > { %v2292_v27 = vadd.f32 %v2291_v63, %v4845_v0  ;;  %v2293_v50 = vpop.f32.mrb[233].mxu0 }
 0x36a   : > { %v2294_v35 = vadd.f32 %v2293_v50, %v4849_v34  ;;  %2848 = vmatprep.mubr.f32.mxu1 %v2465_v49 }
 0x36b   : > { %2849 = vmatmul.mubr.f32.gmra.mrb[216].mxu1 %v2464_v28  ;;  %v2466_v54 = vmax.f32 %v2292_v27, 0.0 }
 0x36c   : > { %v2467_v30 = vmax.f32 %v2294_v35, 0.0  ;;  %v2297_v51 = vpop.f32.mrb[234].mxu0 }
 0x36d   : > { %v2298_v62 = vadd.f32 %v2297_v51, %v4845_v0  ;;  %v2299_v59 = vpop.f32.mrb[235].mxu0 }
 0x36e   : > { %v2300_v5 = vadd.f32 %v2299_v59, %v4849_v34  ;;  %2853 = vmatprep.mubr.f32.mxu1 %v2467_v30 }
 0x36f   : > { %2854 = vmatmul.mubr.f32.gmra.mrb[218].mxu1 %v2466_v54  ;;  %v2468_v57 = vmax.f32 %v2298_v62, 0.0 }
 0x370   : > { %v2469_v55 = vmax.f32 %v2300_v5, 0.0  ;;  %v2303_v56 = vpop.f32.mrb[236].mxu0 }
 0x371   : > { %v2304_v61 = vadd.f32 %v2303_v56, %v4845_v0  ;;  %v2305_v39 = vpop.f32.mrb[237].mxu0 }
 0x372   : > { %v2306_v1 = vadd.f32 %v2305_v39, %v4849_v34  ;;  %2858 = vmatprep.mubr.f32.mxu1 %v2469_v55 }
 0x373   : > { %2859 = vmatmul.mubr.f32.gmra.mrb[220].mxu1 %v2468_v57  ;;  %v2470_v3 = vmax.f32 %v2304_v61, 0.0 }
 0x374   : > { %v2471_v60 = vmax.f32 %v2306_v1, 0.0  ;;  %v2309_v40 = vpop.f32.mrb[238].mxu0 }
 0x375   : > { %v2310_v25 = vadd.f32 %v2309_v40, %v4845_v0  ;;  %v2311_v2 = vpop.f32.mrb[239].mxu0 }
 0x376   : > { %v2312_v4 = vadd.f32 %v2311_v2, %v4849_v34  ;;  %2863 = vmatprep.mubr.f32.mxu1 %v2471_v60 }
 0x377   : > { %2864 = vmatmul.mubr.f32.gmra.mrb[222].mxu1 %v2470_v3  ;;  %v2472_v8 = vmax.f32 %v2310_v25, 0.0 }
 0x378   : > { %v2473_v6 = vmax.f32 %v2312_v4, 0.0  ;;  %v2315_v7 = vpop.f32.mrb[240].mxu0 }
 0x379   : > { %v2316_v17 = vadd.f32 %v2315_v7, %v4845_v0  ;;  %v2317_v9 = vpop.f32.mrb[241].mxu0 }
 0x37a   : > { %v2318_v11 = vadd.f32 %v2317_v9, %v4849_v34  ;;  %2868 = vmatprep.mubr.f32.mxu1 %v2473_v6 }
 0x37b   : > { %2869 = vmatmul.mubr.f32.gmra.mrb[224].mxu1 %v2472_v8  ;;  %v2474_v10 = vmax.f32 %v2316_v17, 0.0 }
 0x37c   : > { %v2475_v42 = vmax.f32 %v2318_v11, 0.0  ;;  %v2321_v20 = vpop.f32.mrb[242].mxu0 }
 0x37d   : > { %v2322_v22 = vadd.f32 %v2321_v20, %v4845_v0  ;;  %v2323_v36 = vpop.f32.mrb[243].mxu0 }
 0x37e   : > { %v2324_v12 = vadd.f32 %v2323_v36, %v4849_v34  ;;  %2873 = vmatprep.mubr.f32.mxu1 %v2475_v42 }
 0x37f   : > { %2874 = vmatmul.mubr.f32.gmra.mrb[226].mxu1 %v2474_v10  ;;  %v2476_v15 = vmax.f32 %v2322_v22, 0.0 }
 0x380   : > { %v2477_v13 = vmax.f32 %v2324_v12, 0.0  ;;  %v2327_v14 = vpop.f32.mrb[244].mxu0 }
 0x381   : > { %v2328_v16 = vadd.f32 %v2327_v14, %v4845_v0  ;;  %v2329_v41 = vpop.f32.mrb[245].mxu0 }
 0x382   : > { %v2330_v21 = vadd.f32 %v2329_v41, %v4849_v34  ;;  %2878 = vmatprep.mubr.f32.mxu1 %v2477_v13 }
 0x383   : > { %2879 = vmatmul.mubr.f32.gmra.mrb[228].mxu1 %v2476_v15  ;;  %v2478_v19 = vmax.f32 %v2328_v16, 0.0 }
 0x384   : > { %v2479_v18 = vmax.f32 %v2330_v21, 0.0  ;;  %v2333_v48 = vpop.f32.mrb[246].mxu0 }
 0x385   : > { %v2334_v26 = vadd.f32 %v2333_v48, %v4845_v0  ;;  %v2335_v58 = vpop.f32.mrb[247].mxu0 }
 0x386   : > { %v2336_v29 = vadd.f32 %v2335_v58, %v4849_v34  ;;  %2883 = vmatprep.mubr.f32.mxu1 %v2479_v18 }
 0x387   : > { %2884 = vmatmul.mubr.f32.gmra.mrb[230].mxu1 %v2478_v19  ;;  %v2480_v37 = vmax.f32 %v2334_v26, 0.0 }
 0x388   : > { %v2481_v32 = vmax.f32 %v2336_v29, 0.0  ;;  %v2339_v33 = vpop.f32.mrb[248].mxu0 }
 0x389   : > { %v2340_v47 = vadd.f32 %v2339_v33, %v4845_v0  ;;  %v2341_v38 = vpop.f32.mrb[249].mxu0 }
 0x38a   : > { %v2342_v53 = vadd.f32 %v2341_v38, %v4849_v34  ;;  %2888 = vmatprep.mubr.f32.mxu1 %v2481_v32 }
 0x38b   : > { %2889 = vmatmul.mubr.f32.gmra.mrb[232].mxu1 %v2480_v37  ;;  %v2482_v46 = vmax.f32 %v2340_v47, 0.0 }
 0x38c   : > { %v2483_v43 = vmax.f32 %v2342_v53, 0.0  ;;  %v2345_v44 = vpop.f32.mrb[250].mxu0 }
 0x38d   : > { %v2346_v24 = vadd.f32 %v2345_v44, %v4845_v0  ;;  %v2347_v31 = vpop.f32.mrb[251].mxu0 }
 0x38e   : > { %v2348_v23 = vadd.f32 %v2347_v31, %v4849_v34  ;;  %v2630_v52 = vpop.f32.mrb[128].mxu1  ;;  %2893 = vmatprep.mubr.f32.mxu1 %v2483_v43 }
 0x38f   : > { %v2631_v49 = vadd.f32 %v4995_v45, %v2630_v52  ;;  %v2632_v63 = vpop.f32.mrb[129].mxu1  ;;  %2894 = vmatmul.mubr.f32.gmra.mrb[234].mxu1 %v2482_v46  ;;  %v2484_v50 = vmax.f32 %v2346_v24, 0.0 }
 0x390   : > { %v2485_v28 = vmax.f32 %v2348_v23, 0.0  ;;  %v2351_v27 = vpop.f32.mrb[252].mxu0 }
 0x391   : > { %v2921_v35 = vmul.f32 0.5, %v2631_v49  ;;  %v2352_v30 = vadd.f32 %v2351_v27, %v4845_v0  ;;  %v2353_v51 = vpop.f32.mrb[253].mxu0 }
 0x392   : > { %v2354_v54 = vadd.f32 %v2353_v51, %v4849_v34  ;;  %v2635_v62 = vpop.f32.mrb[130].mxu1  ;;  %2898 = vmatprep.mubr.f32.mxu1 %v2485_v28 }
 0x393   : > { %3584 = vtanh.f32 %v2921_v35  ;;  %v2636_v59 = vadd.f32 %v4995_v45, %v2635_v62  ;;  %v2637_v5 = vpop.f32.mrb[131].mxu1  ;;  %2899 = vmatmul.mubr.f32.gmra.mrb[236].mxu1 %v2484_v50  ;;  %v2486_v57 = vmax.f32 %v2352_v30, 0.0 }
 0x394   : > { %v2487_v55 = vmax.f32 %v2354_v54, 0.0  ;;  %v2357_v56 = vpop.f32.mrb[254].mxu0 }
 0x395   : > { %v2922_v61 = vmul.f32 0.5, %v2636_v59  ;;  %v2358_v39 = vadd.f32 %v2357_v56, %v4845_v0  ;;  %v2359_v1 = vpop.f32.mrb[255].mxu0 }
 0x396   : > { %v2360_v60 = vadd.f32 %v2359_v1, %v4849_v34  ;;  %v2640_v40 = vpop.f32.mrb[132].mxu1  ;;  %2903 = vmatprep.mubr.f32.mxu1 %v2487_v55 }
 0x397   : > { %3586 = vtanh.f32 %v2922_v61  ;;  %v2641_v3 = vadd.f32 %v4995_v45, %v2640_v40  ;;  %v2642_v25 = vpop.f32.mrb[133].mxu1  ;;  %2904 = vmatmul.mubr.f32.gmra.mrb[238].mxu1 %v2486_v57  ;;  %v2488_v6 = vmax.f32 %v2358_v39, 0.0 }
 0x398   : > { %v2489_v2 = vmax.f32 %v2360_v60, 0.0  ;;  %v2595_v4 = vpop.f32.mrb[0].mxu0 }
 0x399   : > { %v2923_v7 = vmul.f32 0.5, %v2641_v3  ;;  %v2596_v8 = vadd.f32 %v4995_v45, %v2595_v4  ;;  %v2597_v17 = vpop.f32.mrb[1].mxu0 }
 0x39a   : > { %v2645_v9 = vpop.f32.mrb[134].mxu1  ;;  %2908 = vmatprep.mubr.f32.mxu1 %v2489_v2 }
 0x39b   : > { %3588 = vtanh.f32 %v2923_v7  ;;  %v2914_v0 = vmul.f32 0.5, %v2596_v8  ;;  %v2646_v34 = vadd.f32 %v4995_v45, %v2645_v9  ;;  %v2647_v11 = vpop.f32.mrb[135].mxu1  ;;  %2909 = vmatmul.mubr.f32.gmra.mrb[240].mxu1 %v2488_v6 }
 0x39c   : > { %v2600_v42 = vpop.f32.mrb[2].mxu0 }
 0x39d   : > { %v3585_v20 = vpop.eup %3584  ;;  %3590 = vtanh.f32 %v2914_v0  ;;  %v2924_v10 = vmul.f32 0.5, %v2646_v34  ;;  %v2601_v22 = vadd.f32 %v4995_v45, %v2600_v42  ;;  %v2602_v36 = vpop.f32.mrb[3].mxu0 }
 0x39e   : > { %v3049_v12 = vadd.f32 1.0, %v3585_v20  ;;  %v2650_v13 = vpop.f32.mrb[136].mxu1 }
 0x39f   : > { %3592 = vtanh.f32 %v2924_v10  ;;  %v2915_v14 = vmul.f32 0.5, %v2601_v22  ;;  %v2651_v15 = vadd.f32 %v4995_v45, %v2650_v13  ;;  %v2652_v16 = vpop.f32.mrb[137].mxu1 }
 0x3a0   : > { %v3113_v41 = vmul.f32 0.5, %v3049_v12  ;;  %v2605_v21 = vpop.f32.mrb[4].mxu0 }
 0x3a1   : > { %v3587_v18 = vpop.eup %3586  ;;  %3594 = vtanh.f32 %v2915_v14  ;;  %v2925_v48 = vmul.f32 0.5, %v2651_v15  ;;  %v2606_v19 = vadd.f32 %v4995_v45, %v2605_v21  ;;  %v2607_v26 = vpop.f32.mrb[5].mxu0 }
 0x3a2   : > { %3177 = vst [vmem:[%s5014_s21 + $0x38] sm:$0xff] %v3113_v41  ;;  %v3050_v58 = vadd.f32 1.0, %v3587_v18  ;;  %v2655_v29 = vpop.f32.mrb[138].mxu1 }
 0x3a3   : > { %3596 = vtanh.f32 %v2925_v48  ;;  %v2916_v32 = vmul.f32 0.5, %v2606_v19  ;;  %v2656_v33 = vadd.f32 %v4995_v45, %v2655_v29  ;;  %v2657_v37 = vpop.f32.mrb[139].mxu1 }
 0x3a4   : > { %v3114_v47 = vmul.f32 0.5, %v3050_v58  ;;  %v2610_v38 = vpop.f32.mrb[6].mxu0 }
 0x3a5   : > { %v3589_v53 = vpop.eup %3588  ;;  %3598 = vtanh.f32 %v2916_v32  ;;  %v2926_v43 = vmul.f32 0.5, %v2656_v33  ;;  %v2611_v44 = vadd.f32 %v4995_v45, %v2610_v38  ;;  %v2612_v46 = vpop.f32.mrb[7].mxu0 }
 0x3a6   : > { %3178 = vst [vmem:[%s5014_s21 + $0x40] sm:$0xff] %v3114_v47  ;;  %v3051_v24 = vadd.f32 1.0, %v3589_v53  ;;  %v2660_v31 = vpop.f32.mrb[140].mxu1 }
 0x3a7   : > { %v3591_v23 = vpop.eup %3590  ;;  %3600 = vtanh.f32 %v2926_v43  ;;  %v2917_v52 = vmul.f32 0.5, %v2611_v44  ;;  %v2661_v49 = vadd.f32 %v4995_v45, %v2660_v31  ;;  %v2662_v63 = vpop.f32.mrb[141].mxu1 }
 0x3a8   : > { %v3115_v28 = vmul.f32 0.5, %v3051_v24  ;;  %v3042_v27 = vadd.f32 1.0, %v3591_v23  ;;  %v2615_v50 = vpop.f32.mrb[8].mxu0 }
 0x3a9   : > { %v3593_v35 = vpop.eup %3592  ;;  %3602 = vtanh.f32 %v2917_v52  ;;  %v2927_v30 = vmul.f32 0.5, %v2661_v49  ;;  %v2616_v51 = vadd.f32 %v4995_v45, %v2615_v50  ;;  %v2617_v54 = vpop.f32.mrb[9].mxu0 }
 0x3aa   : > { %3179 = vst [vmem:[%s5014_s21 + $0x48] sm:$0xff] %v3115_v28  ;;  %v3106_v62 = vmul.f32 0.5, %v3042_v27  ;;  %v3052_v59 = vadd.f32 1.0, %v3593_v35  ;;  %v2665_v5 = vpop.f32.mrb[142].mxu1 }
 0x3ab   : > { %v3595_v55 = vpop.eup %3594  ;;  %3604 = vtanh.f32 %v2927_v30  ;;  %v2918_v56 = vmul.f32 0.5, %v2616_v51  ;;  %v2666_v57 = vadd.f32 %v4995_v45, %v2665_v5  ;;  %v2667_v61 = vpop.f32.mrb[143].mxu1 }
 0x3ac   : > { %3170 = vst [vmem:[%s5014_s21] sm:$0xff] %v3106_v62  ;;  %v3116_v39 = vmul.f32 0.5, %v3052_v59  ;;  %v3043_v1 = vadd.f32 1.0, %v3595_v55  ;;  %v2620_v60 = vpop.f32.mrb[10].mxu0 }
 0x3ad   : > { %v3597_v40 = vpop.eup %3596  ;;  %3606 = vtanh.f32 %v2918_v56  ;;  %v2928_v3 = vmul.f32 0.5, %v2666_v57  ;;  %v2621_v25 = vadd.f32 %v4995_v45, %v2620_v60  ;;  %v2622_v2 = vpop.f32.mrb[11].mxu0 }
 0x3ae   : > { %3180 = vst [vmem:[%s5014_s21 + $0x50] sm:$0xff] %v3116_v39  ;;  %v3107_v4 = vmul.f32 0.5, %v3043_v1  ;;  %v3053_v6 = vadd.f32 1.0, %v3597_v40  ;;  %v2670_v7 = vpop.f32.mrb[144].mxu1 }
 0x3af   : > { %v3599_v8 = vpop.eup %3598  ;;  %3608 = vtanh.f32 %v2928_v3  ;;  %v2919_v17 = vmul.f32 0.5, %v2621_v25  ;;  %v2671_v9 = vadd.f32 %v4995_v45, %v2670_v7  ;;  %v2672_v0 = vpop.f32.mrb[145].mxu1 }
 0x3b0   : > { %3171 = vst [vmem:[%s5014_s21 + $0x8] sm:$0xff] %v3107_v4  ;;  %v3117_v34 = vmul.f32 0.5, %v3053_v6  ;;  %v3044_v11 = vadd.f32 1.0, %v3599_v8  ;;  %v2625_v42 = vpop.f32.mrb[12].mxu0 }
 0x3b1   : > { %v3601_v20 = vpop.eup %3600  ;;  %3610 = vtanh.f32 %v2919_v17  ;;  %v2929_v10 = vmul.f32 0.5, %v2671_v9  ;;  %v2626_v22 = vadd.f32 %v4995_v45, %v2625_v42  ;;  %v2627_v36 = vpop.f32.mrb[13].mxu0 }
 0x3b2   : > { %3181 = vst [vmem:[%s5014_s21 + $0x58] sm:$0xff] %v3117_v34  ;;  %v3108_v12 = vmul.f32 0.5, %v3044_v11  ;;  %v3054_v13 = vadd.f32 1.0, %v3601_v20  ;;  %v2675_v14 = vpop.f32.mrb[146].mxu1 }
 0x3b3   : > { %v3603_v15 = vpop.eup %3602  ;;  %3612 = vtanh.f32 %v2929_v10  ;;  %v2920_v16 = vmul.f32 0.5, %v2626_v22  ;;  %v2676_v41 = vadd.f32 %v4995_v45, %v2675_v14  ;;  %v2677_v21 = vpop.f32.mrb[147].mxu1 }
 0x3b4   : > { %3172 = vst [vmem:[%s5014_s21 + $0x10] sm:$0xff] %v3108_v12  ;;  %v3118_v18 = vmul.f32 0.5, %v3054_v13  ;;  %v3045_v48 = vadd.f32 1.0, %v3603_v15 }
 0x3b5   : > { %v3605_v19 = vpop.eup %3604  ;;  %3614 = vtanh.f32 %v2920_v16  ;;  %v2930_v26 = vmul.f32 0.5, %v2676_v41 }
 0x3b6   : > { %3182 = vst [vmem:[%s5014_s21 + $0x60] sm:$0xff] %v3118_v18  ;;  %v3109_v58 = vmul.f32 0.5, %v3045_v48  ;;  %v3055_v29 = vadd.f32 1.0, %v3605_v19  ;;  %v2680_v32 = vpop.f32.mrb[148].mxu1 }
 0x3b7   : > { %v3607_v33 = vpop.eup %3606  ;;  %3616 = vtanh.f32 %v2930_v26  ;;  %v2681_v37 = vadd.f32 %v4995_v45, %v2680_v32  ;;  %v2682_v47 = vpop.f32.mrb[149].mxu1 }
 0x3b8   : > { %3173 = vst [vmem:[%s5014_s21 + $0x18] sm:$0xff] %v3109_v58  ;;  %v3119_v38 = vmul.f32 0.5, %v3055_v29  ;;  %v3046_v53 = vadd.f32 1.0, %v3607_v33 }
 0x3b9   : > { %v3609_v43 = vpop.eup %3608  ;;  %v2931_v44 = vmul.f32 0.5, %v2681_v37 }
 0x3ba   : > { %3183 = vst [vmem:[%s5014_s21 + $0x68] sm:$0xff] %v3119_v38  ;;  %v3110_v46 = vmul.f32 0.5, %v3046_v53  ;;  %v3056_v24 = vadd.f32 1.0, %v3609_v43  ;;  %v2685_v31 = vpop.f32.mrb[150].mxu1 }
 0x3bb   : > { %v3611_v23 = vpop.eup %3610  ;;  %3618 = vtanh.f32 %v2931_v44  ;;  %v2686_v52 = vadd.f32 %v4995_v45, %v2685_v31  ;;  %v2687_v49 = vpop.f32.mrb[151].mxu1 }
 0x3bc   : > { %3174 = vst [vmem:[%s5014_s21 + $0x20] sm:$0xff] %v3110_v46  ;;  %v3120_v63 = vmul.f32 0.5, %v3056_v24  ;;  %v3047_v28 = vadd.f32 1.0, %v3611_v23 }
 0x3bd   : > { %v3613_v27 = vpop.eup %3612  ;;  %v2932_v50 = vmul.f32 0.5, %v2686_v52 }
 0x3be   : > { %3184 = vst [vmem:[%s5014_s21 + $0x70] sm:$0xff] %v3120_v63  ;;  %v3111_v35 = vmul.f32 0.5, %v3047_v28  ;;  %v3057_v30 = vadd.f32 1.0, %v3613_v27  ;;  %v2690_v51 = vpop.f32.mrb[152].mxu1 }
 0x3bf   : > { %v3615_v54 = vpop.eup %3614  ;;  %3620 = vtanh.f32 %v2932_v50  ;;  %v2691_v62 = vadd.f32 %v4995_v45, %v2690_v51  ;;  %v2692_v59 = vpop.f32.mrb[153].mxu1 }
 0x3c0   : > { %3175 = vst [vmem:[%s5014_s21 + $0x28] sm:$0xff] %v3111_v35  ;;  %v3121_v5 = vmul.f32 0.5, %v3057_v30  ;;  %v3048_v55 = vadd.f32 1.0, %v3615_v54 }
 0x3c1   : > { %v3617_v56 = vpop.eup %3616  ;;  %v2933_v57 = vmul.f32 0.5, %v2691_v62 }
 0x3c2   : > { %3185 = vst [vmem:[%s5014_s21 + $0x78] sm:$0xff] %v3121_v5  ;;  %v3112_v61 = vmul.f32 0.5, %v3048_v55  ;;  %v3058_v39 = vadd.f32 1.0, %v3617_v56  ;;  %v2695_v1 = vpop.f32.mrb[154].mxu1 }
 0x3c3   : > { %3622 = vtanh.f32 %v2933_v57  ;;  %v2696_v60 = vadd.f32 %v4995_v45, %v2695_v1  ;;  %v2697_v40 = vpop.f32.mrb[155].mxu1 }
 0x3c4   : > { %3176 = vst [vmem:[%s5014_s21 + $0x30] sm:$0xff] %v3112_v61  ;;  %v3122_v3 = vmul.f32 0.5, %v3058_v39 }
 0x3c5   : > { %v3619_v25 = vpop.eup %3618  ;;  %v2934_v2 = vmul.f32 0.5, %v2696_v60 }
 0x3c6   : > { %3186 = vst [vmem:[%s5014_s21 + $0x80] sm:$0xff] %v3122_v3  ;;  %v3059_v4 = vadd.f32 1.0, %v3619_v25  ;;  %v2700_v6 = vpop.f32.mrb[156].mxu1 }
 0x3c7   : > { %3624 = vtanh.f32 %v2934_v2  ;;  %v2701_v7 = vadd.f32 %v4995_v45, %v2700_v6  ;;  %v2702_v8 = vpop.f32.mrb[157].mxu1 }
 0x3c8   : > { %v3123_v17 = vmul.f32 0.5, %v3059_v4 }
 0x3c9   : > { %v3621_v9 = vpop.eup %3620  ;;  %v2935_v0 = vmul.f32 0.5, %v2701_v7 }
 0x3ca   : > { %3187 = vst [vmem:[%s5014_s21 + $0x88] sm:$0xff] %v3123_v17  ;;  %v3060_v34 = vadd.f32 1.0, %v3621_v9  ;;  %v2705_v11 = vpop.f32.mrb[158].mxu1 }
 0x3cb   : > { %3626 = vtanh.f32 %v2935_v0  ;;  %v2706_v42 = vadd.f32 %v4995_v45, %v2705_v11  ;;  %v2707_v20 = vpop.f32.mrb[159].mxu1 }
 0x3cc   : > { %v3124_v10 = vmul.f32 0.5, %v3060_v34 }
 0x3cd   : > { %v3623_v22 = vpop.eup %3622  ;;  %v2936_v36 = vmul.f32 0.5, %v2706_v42 }
 0x3ce   : > { %3188 = vst [vmem:[%s5014_s21 + $0x90] sm:$0xff] %v3124_v10  ;;  %v3061_v12 = vadd.f32 1.0, %v3623_v22  ;;  %v2710_v13 = vpop.f32.mrb[160].mxu1 }
 0x3cf   : > { %3628 = vtanh.f32 %v2936_v36  ;;  %v2711_v14 = vadd.f32 %v4995_v45, %v2710_v13  ;;  %v2712_v15 = vpop.f32.mrb[161].mxu1 }
 0x3d0   : > { %v3125_v16 = vmul.f32 0.5, %v3061_v12 }
 0x3d1   : > { %v3625_v41 = vpop.eup %3624  ;;  %v2937_v21 = vmul.f32 0.5, %v2711_v14 }
 0x3d2   : > { %3189 = vst [vmem:[%s5014_s21 + $0x98] sm:$0xff] %v3125_v16  ;;  %v3062_v18 = vadd.f32 1.0, %v3625_v41  ;;  %v2715_v48 = vpop.f32.mrb[162].mxu1 }
 0x3d3   : > { %3630 = vtanh.f32 %v2937_v21  ;;  %v2716_v19 = vadd.f32 %v4995_v45, %v2715_v48  ;;  %v2717_v26 = vpop.f32.mrb[163].mxu1 }
 0x3d4   : > { %v3126_v58 = vmul.f32 0.5, %v3062_v18 }
 0x3d5   : > { %v3627_v29 = vpop.eup %3626  ;;  %v2938_v32 = vmul.f32 0.5, %v2716_v19 }
 0x3d6   : > { %3190 = vst [vmem:[%s5014_s21 + $0xa0] sm:$0xff] %v3126_v58  ;;  %v3063_v33 = vadd.f32 1.0, %v3627_v29  ;;  %v2720_v37 = vpop.f32.mrb[164].mxu1 }
 0x3d7   : > { %3632 = vtanh.f32 %v2938_v32  ;;  %v2721_v47 = vadd.f32 %v4995_v45, %v2720_v37  ;;  %v2722_v38 = vpop.f32.mrb[165].mxu1 }
 0x3d8   : > { %v3127_v53 = vmul.f32 0.5, %v3063_v33 }
 0x3d9   : > { %v3629_v43 = vpop.eup %3628  ;;  %v2939_v44 = vmul.f32 0.5, %v2721_v47 }
 0x3da   : > { %3191 = vst [vmem:[%s5014_s21 + $0xa8] sm:$0xff] %v3127_v53  ;;  %v3064_v46 = vadd.f32 1.0, %v3629_v43  ;;  %v2725_v24 = vpop.f32.mrb[166].mxu1 }
 0x3db   : > { %3634 = vtanh.f32 %v2939_v44  ;;  %v2726_v31 = vadd.f32 %v4995_v45, %v2725_v24  ;;  %v2727_v23 = vpop.f32.mrb[167].mxu1 }
 0x3dc   : > { %v3128_v52 = vmul.f32 0.5, %v3064_v46 }
 0x3dd   : > { %v3631_v49 = vpop.eup %3630  ;;  %v2940_v63 = vmul.f32 0.5, %v2726_v31 }
 0x3de   : > { %3192 = vst [vmem:[%s5014_s21 + $0xb0] sm:$0xff] %v3128_v52  ;;  %v3065_v28 = vadd.f32 1.0, %v3631_v49  ;;  %v2730_v27 = vpop.f32.mrb[168].mxu1 }
 0x3df   : > { %3636 = vtanh.f32 %v2940_v63  ;;  %v2731_v50 = vadd.f32 %v4995_v45, %v2730_v27  ;;  %v2732_v35 = vpop.f32.mrb[169].mxu1 }
 0x3e0   : > { %v3129_v30 = vmul.f32 0.5, %v3065_v28 }
 0x3e1   : > { %v3633_v51 = vpop.eup %3632  ;;  %v2941_v54 = vmul.f32 0.5, %v2731_v50 }
 0x3e2   : > { %3193 = vst [vmem:[%s5014_s21 + $0xb8] sm:$0xff] %v3129_v30  ;;  %v3066_v62 = vadd.f32 1.0, %v3633_v51  ;;  %v2735_v59 = vpop.f32.mrb[170].mxu1 }
 0x3e3   : > { %3638 = vtanh.f32 %v2941_v54  ;;  %v2736_v5 = vadd.f32 %v4995_v45, %v2735_v59  ;;  %v2737_v55 = vpop.f32.mrb[171].mxu1 }
 0x3e4   : > { %v3130_v56 = vmul.f32 0.5, %v3066_v62 }
 0x3e5   : > { %v3635_v57 = vpop.eup %3634  ;;  %v2942_v61 = vmul.f32 0.5, %v2736_v5 }
 0x3e6   : > { %3194 = vst [vmem:[%s5014_s21 + $0xc0] sm:$0xff] %v3130_v56  ;;  %v3067_v39 = vadd.f32 1.0, %v3635_v57  ;;  %v2740_v1 = vpop.f32.mrb[172].mxu1 }
 0x3e7   : > { %3640 = vtanh.f32 %v2942_v61  ;;  %v2741_v60 = vadd.f32 %v4995_v45, %v2740_v1  ;;  %v2742_v40 = vpop.f32.mrb[173].mxu1 }
 0x3e8   : > { %v3131_v3 = vmul.f32 0.5, %v3067_v39 }
 0x3e9   : > { %v3637_v25 = vpop.eup %3636  ;;  %v2943_v2 = vmul.f32 0.5, %v2741_v60 }
 0x3ea   : > { %3195 = vst [vmem:[%s5014_s21 + $0xc8] sm:$0xff] %v3131_v3  ;;  %v3068_v4 = vadd.f32 1.0, %v3637_v25  ;;  %v2745_v6 = vpop.f32.mrb[174].mxu1 }
 0x3eb   : > { %3642 = vtanh.f32 %v2943_v2  ;;  %v2746_v7 = vadd.f32 %v4995_v45, %v2745_v6  ;;  %v2747_v8 = vpop.f32.mrb[175].mxu1 }
 0x3ec   : > { %v3132_v17 = vmul.f32 0.5, %v3068_v4 }
 0x3ed   : > { %v3639_v9 = vpop.eup %3638  ;;  %v2944_v0 = vmul.f32 0.5, %v2746_v7 }
 0x3ee   : > { %3196 = vst [vmem:[%s5014_s21 + $0xd0] sm:$0xff] %v3132_v17  ;;  %v3069_v34 = vadd.f32 1.0, %v3639_v9  ;;  %v2750_v11 = vpop.f32.mrb[176].mxu1 }
 0x3ef   : > { %3644 = vtanh.f32 %v2944_v0  ;;  %v2751_v42 = vadd.f32 %v4995_v45, %v2750_v11  ;;  %v2752_v20 = vpop.f32.mrb[177].mxu1 }
 0x3f0   : > { %v3133_v10 = vmul.f32 0.5, %v3069_v34 }
 0x3f1   : > { %v3641_v22 = vpop.eup %3640  ;;  %v2945_v36 = vmul.f32 0.5, %v2751_v42 }
 0x3f2   : > { %3197 = vst [vmem:[%s5014_s21 + $0xd8] sm:$0xff] %v3133_v10  ;;  %v3070_v12 = vadd.f32 1.0, %v3641_v22  ;;  %v2755_v13 = vpop.f32.mrb[178].mxu1 }
 0x3f3   : > { %3646 = vtanh.f32 %v2945_v36  ;;  %v2756_v14 = vadd.f32 %v4995_v45, %v2755_v13  ;;  %v2757_v15 = vpop.f32.mrb[179].mxu1 }
 0x3f4   : > { %v3134_v16 = vmul.f32 0.5, %v3070_v12 }
 0x3f5   : > { %v3643_v41 = vpop.eup %3642  ;;  %v2946_v21 = vmul.f32 0.5, %v2756_v14 }
 0x3f6   : > { %3198 = vst [vmem:[%s5014_s21 + $0xe0] sm:$0xff] %v3134_v16  ;;  %v3071_v18 = vadd.f32 1.0, %v3643_v41  ;;  %v2760_v48 = vpop.f32.mrb[180].mxu1 }
 0x3f7   : > { %3648 = vtanh.f32 %v2946_v21  ;;  %v2761_v19 = vadd.f32 %v4995_v45, %v2760_v48  ;;  %v2762_v26 = vpop.f32.mrb[181].mxu1 }
 0x3f8   : > { %v3135_v58 = vmul.f32 0.5, %v3071_v18 }
 0x3f9   : > { %v3645_v29 = vpop.eup %3644  ;;  %v2947_v32 = vmul.f32 0.5, %v2761_v19 }
 0x3fa   : > { %3199 = vst [vmem:[%s5014_s21 + $0xe8] sm:$0xff] %v3135_v58  ;;  %v3072_v33 = vadd.f32 1.0, %v3645_v29  ;;  %v2765_v37 = vpop.f32.mrb[182].mxu1 }
 0x3fb   : > { %3650 = vtanh.f32 %v2947_v32  ;;  %v2766_v47 = vadd.f32 %v4995_v45, %v2765_v37  ;;  %v2767_v38 = vpop.f32.mrb[183].mxu1 }
 0x3fc   : > { %v3136_v53 = vmul.f32 0.5, %v3072_v33 }
 0x3fd   : > { %v3647_v43 = vpop.eup %3646  ;;  %v2948_v44 = vmul.f32 0.5, %v2766_v47 }
 0x3fe   : > { %3200 = vst [vmem:[%s5014_s21 + $0xf0] sm:$0xff] %v3136_v53  ;;  %v3073_v46 = vadd.f32 1.0, %v3647_v43  ;;  %v2770_v24 = vpop.f32.mrb[184].mxu1 }
 0x3ff   : > { %3652 = vtanh.f32 %v2948_v44  ;;  %v2771_v31 = vadd.f32 %v4995_v45, %v2770_v24  ;;  %v2772_v23 = vpop.f32.mrb[185].mxu1 }
 0x400   : > { %v3137_v52 = vmul.f32 0.5, %v3073_v46 }
 0x401   : > { %v3649_v49 = vpop.eup %3648  ;;  %v2949_v63 = vmul.f32 0.5, %v2771_v31 }
 0x402   : > { %3201 = vst [vmem:[%s5014_s21 + $0xf8] sm:$0xff] %v3137_v52  ;;  %v3074_v28 = vadd.f32 1.0, %v3649_v49  ;;  %v2775_v27 = vpop.f32.mrb[186].mxu1 }
 0x403   : > { %3654 = vtanh.f32 %v2949_v63  ;;  %v2776_v50 = vadd.f32 %v4995_v45, %v2775_v27  ;;  %v2777_v35 = vpop.f32.mrb[187].mxu1 }
 0x404   : > { %v3138_v30 = vmul.f32 0.5, %v3074_v28 }
 0x405   : > { %v3651_v51 = vpop.eup %3650  ;;  %v2950_v54 = vmul.f32 0.5, %v2776_v50 }
 0x406   : > { %3202 = vst [vmem:[%s5014_s21 + $0x100] sm:$0xff] %v3138_v30  ;;  %v3075_v62 = vadd.f32 1.0, %v3651_v51  ;;  %v2780_v59 = vpop.f32.mrb[188].mxu1 }
 0x407   : > { %3656 = vtanh.f32 %v2950_v54  ;;  %v2781_v5 = vadd.f32 %v4995_v45, %v2780_v59  ;;  %v2782_v55 = vpop.f32.mrb[189].mxu1 }
 0x408   : > { %v3139_v56 = vmul.f32 0.5, %v3075_v62 }
 0x409   : > { %v3653_v57 = vpop.eup %3652  ;;  %v2951_v61 = vmul.f32 0.5, %v2781_v5 }
 0x40a   : > { %3203 = vst [vmem:[%s5014_s21 + $0x108] sm:$0xff] %v3139_v56  ;;  %v3076_v39 = vadd.f32 1.0, %v3653_v57  ;;  %v2785_v1 = vpop.f32.mrb[190].mxu1 }
 0x40b   : > { %3658 = vtanh.f32 %v2951_v61  ;;  %v2786_v60 = vadd.f32 %v4995_v45, %v2785_v1  ;;  %v2787_v40 = vpop.f32.mrb[191].mxu1 }
 0x40c   : > { %v3140_v3 = vmul.f32 0.5, %v3076_v39 }
 0x40d   : > { %v3655_v25 = vpop.eup %3654  ;;  %v2952_v2 = vmul.f32 0.5, %v2786_v60 }
 0x40e   : > { %3204 = vst [vmem:[%s5014_s21 + $0x110] sm:$0xff] %v3140_v3  ;;  %v3077_v4 = vadd.f32 1.0, %v3655_v25  ;;  %v2790_v6 = vpop.f32.mrb[192].mxu1 }
 0x40f   : > { %3660 = vtanh.f32 %v2952_v2  ;;  %v2791_v7 = vadd.f32 %v4995_v45, %v2790_v6  ;;  %v2792_v8 = vpop.f32.mrb[193].mxu1 }
 0x410   : > { %v3141_v17 = vmul.f32 0.5, %v3077_v4 }
 0x411   : > { %v3657_v9 = vpop.eup %3656  ;;  %v2953_v0 = vmul.f32 0.5, %v2791_v7 }
 0x412   : > { %3205 = vst [vmem:[%s5014_s21 + $0x118] sm:$0xff] %v3141_v17  ;;  %v3078_v34 = vadd.f32 1.0, %v3657_v9  ;;  %v2795_v11 = vpop.f32.mrb[194].mxu1 }
 0x413   : > { %3662 = vtanh.f32 %v2953_v0  ;;  %v2796_v42 = vadd.f32 %v4995_v45, %v2795_v11  ;;  %v2797_v20 = vpop.f32.mrb[195].mxu1 }
 0x414   : > { %v3142_v10 = vmul.f32 0.5, %v3078_v34 }
 0x415   : > { %v3659_v22 = vpop.eup %3658  ;;  %v2954_v36 = vmul.f32 0.5, %v2796_v42 }
 0x416   : > { %3206 = vst [vmem:[%s5014_s21 + $0x120] sm:$0xff] %v3142_v10  ;;  %v3079_v12 = vadd.f32 1.0, %v3659_v22  ;;  %v2800_v13 = vpop.f32.mrb[196].mxu1 }
 0x417   : > { %3664 = vtanh.f32 %v2954_v36  ;;  %v2801_v14 = vadd.f32 %v4995_v45, %v2800_v13  ;;  %v2802_v15 = vpop.f32.mrb[197].mxu1 }
 0x418   : > { %v3143_v16 = vmul.f32 0.5, %v3079_v12 }
 0x419   : > { %v3661_v41 = vpop.eup %3660  ;;  %v2955_v21 = vmul.f32 0.5, %v2801_v14 }
 0x41a   : > { %3207 = vst [vmem:[%s5014_s21 + $0x128] sm:$0xff] %v3143_v16  ;;  %v3080_v18 = vadd.f32 1.0, %v3661_v41  ;;  %v2805_v48 = vpop.f32.mrb[198].mxu1 }
 0x41b   : > { %3666 = vtanh.f32 %v2955_v21  ;;  %v2806_v19 = vadd.f32 %v4995_v45, %v2805_v48  ;;  %v2807_v26 = vpop.f32.mrb[199].mxu1 }
 0x41c   : > { %v3144_v58 = vmul.f32 0.5, %v3080_v18 }
 0x41d   : > { %v3663_v29 = vpop.eup %3662  ;;  %v2956_v32 = vmul.f32 0.5, %v2806_v19 }
 0x41e   : > { %3208 = vst [vmem:[%s5014_s21 + $0x130] sm:$0xff] %v3144_v58  ;;  %v3081_v33 = vadd.f32 1.0, %v3663_v29  ;;  %v2810_v37 = vpop.f32.mrb[200].mxu1 }
 0x41f   : > { %3668 = vtanh.f32 %v2956_v32  ;;  %v2811_v47 = vadd.f32 %v4995_v45, %v2810_v37  ;;  %v2812_v38 = vpop.f32.mrb[201].mxu1 }
 0x420   : > { %v3145_v53 = vmul.f32 0.5, %v3081_v33 }
 0x421   : > { %v3665_v43 = vpop.eup %3664  ;;  %v2957_v44 = vmul.f32 0.5, %v2811_v47 }
 0x422   : > { %3209 = vst [vmem:[%s5014_s21 + $0x138] sm:$0xff] %v3145_v53  ;;  %v3082_v46 = vadd.f32 1.0, %v3665_v43  ;;  %v2815_v24 = vpop.f32.mrb[202].mxu1 }
 0x423   : > { %3670 = vtanh.f32 %v2957_v44  ;;  %v2816_v31 = vadd.f32 %v4995_v45, %v2815_v24  ;;  %v2817_v23 = vpop.f32.mrb[203].mxu1 }
 0x424   : > { %v3146_v52 = vmul.f32 0.5, %v3082_v46 }
 0x425   : > { %v3667_v49 = vpop.eup %3666  ;;  %v2958_v63 = vmul.f32 0.5, %v2816_v31 }
 0x426   : > { %3210 = vst [vmem:[%s5014_s21 + $0x140] sm:$0xff] %v3146_v52  ;;  %v3083_v28 = vadd.f32 1.0, %v3667_v49  ;;  %v2820_v27 = vpop.f32.mrb[204].mxu1 }
 0x427   : > { %3672 = vtanh.f32 %v2958_v63  ;;  %v2821_v50 = vadd.f32 %v4995_v45, %v2820_v27  ;;  %v2822_v35 = vpop.f32.mrb[205].mxu1 }
 0x428   : > { %v3147_v30 = vmul.f32 0.5, %v3083_v28 }
 0x429   : > { %v3669_v51 = vpop.eup %3668  ;;  %v2959_v54 = vmul.f32 0.5, %v2821_v50 }
 0x42a   : > { %3211 = vst [vmem:[%s5014_s21 + $0x148] sm:$0xff] %v3147_v30  ;;  %v3084_v62 = vadd.f32 1.0, %v3669_v51  ;;  %v2825_v59 = vpop.f32.mrb[206].mxu1 }
 0x42b   : > { %3674 = vtanh.f32 %v2959_v54  ;;  %v2826_v5 = vadd.f32 %v4995_v45, %v2825_v59  ;;  %v2827_v55 = vpop.f32.mrb[207].mxu1 }
 0x42c   : > { %v3148_v56 = vmul.f32 0.5, %v3084_v62 }
 0x42d   : > { %v3671_v57 = vpop.eup %3670  ;;  %v2960_v61 = vmul.f32 0.5, %v2826_v5 }
 0x42e   : > { %3212 = vst [vmem:[%s5014_s21 + $0x150] sm:$0xff] %v3148_v56  ;;  %v3085_v39 = vadd.f32 1.0, %v3671_v57  ;;  %v2830_v1 = vpop.f32.mrb[208].mxu1 }
 0x42f   : > { %3676 = vtanh.f32 %v2960_v61  ;;  %v2831_v60 = vadd.f32 %v4995_v45, %v2830_v1  ;;  %v2832_v40 = vpop.f32.mrb[209].mxu1 }
 0x430   : > { %v3149_v3 = vmul.f32 0.5, %v3085_v39 }
 0x431   : > { %v3673_v25 = vpop.eup %3672  ;;  %v2961_v2 = vmul.f32 0.5, %v2831_v60  ;;  %v5121_v60 = vld [vmem:[%s5154_s8] ss:$0 sm:$0xff] }
 0x432   : > { %3213 = vst [vmem:[%s5014_s21 + $0x158] sm:$0xff] %v3149_v3  ;;  %v3086_v4 = vadd.f32 1.0, %v3673_v25  ;;  %v2835_v6 = vpop.f32.mrb[210].mxu1 }
 0x433   : > { %3678 = vtanh.f32 %v2961_v2  ;;  %v2836_v7 = vadd.f32 %v4995_v45, %v2835_v6  ;;  %v2837_v8 = vpop.f32.mrb[211].mxu1 }
 0x434   : > { %v3150_v17 = vmul.f32 0.5, %v3086_v4 }
 0x435   : > { %v3675_v9 = vpop.eup %3674  ;;  %v2962_v0 = vmul.f32 0.5, %v2836_v7 }
 0x436   : > { %3214 = vst [vmem:[%s5014_s21 + $0x160] sm:$0xff] %v3150_v17  ;;  %v3087_v34 = vadd.f32 1.0, %v3675_v9  ;;  %v2840_v11 = vpop.f32.mrb[212].mxu1 }
 0x437   : > { %3680 = vtanh.f32 %v2962_v0  ;;  %v2841_v42 = vadd.f32 %v4995_v45, %v2840_v11  ;;  %v2842_v20 = vpop.f32.mrb[213].mxu1 }
 0x438   : > { %v3151_v10 = vmul.f32 0.5, %v3087_v34 }
 0x439   : > { %v3677_v22 = vpop.eup %3676  ;;  %v2963_v36 = vmul.f32 0.5, %v2841_v42 }
 0x43a   : > { %3215 = vst [vmem:[%s5014_s21 + $0x168] sm:$0xff] %v3151_v10  ;;  %v3088_v12 = vadd.f32 1.0, %v3677_v22  ;;  %v2845_v13 = vpop.f32.mrb[214].mxu1 }
 0x43b   : > { %3682 = vtanh.f32 %v2963_v36  ;;  %v2846_v14 = vadd.f32 %v4995_v45, %v2845_v13  ;;  %v2847_v15 = vpop.f32.mrb[215].mxu1 }
 0x43c   : > { %v3152_v16 = vmul.f32 0.5, %v3088_v12 }
 0x43d   : > { %v3679_v41 = vpop.eup %3678  ;;  %v2964_v21 = vmul.f32 0.5, %v2846_v14 }
 0x43e   : > { %3216 = vst [vmem:[%s5014_s21 + $0x170] sm:$0xff] %v3152_v16  ;;  %v3089_v18 = vadd.f32 1.0, %v3679_v41  ;;  %v2850_v48 = vpop.f32.mrb[216].mxu1 }
 0x43f   : > { %3684 = vtanh.f32 %v2964_v21  ;;  %v2851_v19 = vadd.f32 %v4995_v45, %v2850_v48  ;;  %v2852_v26 = vpop.f32.mrb[217].mxu1 }
 0x440   : > { %v3153_v58 = vmul.f32 0.5, %v3089_v18 }
 0x441   : > { %v3681_v29 = vpop.eup %3680  ;;  %v2965_v32 = vmul.f32 0.5, %v2851_v19 }
 0x442   : > { %3217 = vst [vmem:[%s5014_s21 + $0x178] sm:$0xff] %v3153_v58  ;;  %v3090_v33 = vadd.f32 1.0, %v3681_v29  ;;  %v2855_v37 = vpop.f32.mrb[218].mxu1 }
 0x443   : > { %3686 = vtanh.f32 %v2965_v32  ;;  %v2856_v47 = vadd.f32 %v4995_v45, %v2855_v37  ;;  %v2857_v38 = vpop.f32.mrb[219].mxu1 }
 0x444   : > { %v3154_v53 = vmul.f32 0.5, %v3090_v33 }
 0x445   : > { %v3683_v43 = vpop.eup %3682  ;;  %v2966_v44 = vmul.f32 0.5, %v2856_v47 }
 0x446   : > { %3218 = vst [vmem:[%s5014_s21 + $0x180] sm:$0xff] %v3154_v53  ;;  %v3091_v46 = vadd.f32 1.0, %v3683_v43  ;;  %v2860_v24 = vpop.f32.mrb[220].mxu1 }
 0x447   : > { %3688 = vtanh.f32 %v2966_v44  ;;  %v2861_v31 = vadd.f32 %v4995_v45, %v2860_v24  ;;  %v2862_v23 = vpop.f32.mrb[221].mxu1 }
 0x448   : > { %v3155_v52 = vmul.f32 0.5, %v3091_v46 }
 0x449   : > { %v3685_v49 = vpop.eup %3684  ;;  %v2967_v63 = vmul.f32 0.5, %v2861_v31 }
 0x44a   : > { %3219 = vst [vmem:[%s5014_s21 + $0x188] sm:$0xff] %v3155_v52  ;;  %v3092_v28 = vadd.f32 1.0, %v3685_v49  ;;  %v2865_v27 = vpop.f32.mrb[222].mxu1 }
 0x44b   : > { %3690 = vtanh.f32 %v2967_v63  ;;  %v2866_v50 = vadd.f32 %v4995_v45, %v2865_v27  ;;  %v2867_v35 = vpop.f32.mrb[223].mxu1 }
 0x44c   : > { %v3156_v30 = vmul.f32 0.5, %v3092_v28 }
 0x44d   : > { %v3687_v51 = vpop.eup %3686  ;;  %v2968_v54 = vmul.f32 0.5, %v2866_v50 }
 0x44e   : > { %3220 = vst [vmem:[%s5014_s21 + $0x190] sm:$0xff] %v3156_v30  ;;  %v3093_v62 = vadd.f32 1.0, %v3687_v51  ;;  %v2870_v59 = vpop.f32.mrb[224].mxu1 }
 0x44f   : > { %3692 = vtanh.f32 %v2968_v54  ;;  %v2871_v5 = vadd.f32 %v4995_v45, %v2870_v59  ;;  %v2872_v55 = vpop.f32.mrb[225].mxu1 }
 0x450   : > { %v3157_v56 = vmul.f32 0.5, %v3093_v62 }
 0x451   : > { %v3689_v57 = vpop.eup %3688  ;;  %v2969_v61 = vmul.f32 0.5, %v2871_v5 }
 0x452   : > { %3221 = vst [vmem:[%s5014_s21 + $0x198] sm:$0xff] %v3157_v56  ;;  %v3094_v39 = vadd.f32 1.0, %v3689_v57  ;;  %v2875_v1 = vpop.f32.mrb[226].mxu1 }
 0x453   : > { %3694 = vtanh.f32 %v2969_v61  ;;  %v2876_v40 = vadd.f32 %v5121_v60, %v2875_v1  ;;  %v2877_v3 = vpop.f32.mrb[227].mxu1 }
 0x454   : > { %v3158_v25 = vmul.f32 0.5, %v3094_v39 }
 0x455   : > { %v3691_v2 = vpop.eup %3690  ;;  %v2970_v45 = vmul.f32 0.5, %v2876_v40 }
 0x456   : > { %3222 = vst [vmem:[%s5014_s21 + $0x1a0] sm:$0xff] %v3158_v25  ;;  %v3095_v4 = vadd.f32 1.0, %v3691_v2  ;;  %v2880_v6 = vpop.f32.mrb[228].mxu1 }
 0x457   : > { %3696 = vtanh.f32 %v2970_v45  ;;  %v2881_v7 = vadd.f32 %v5121_v60, %v2880_v6  ;;  %v2882_v8 = vpop.f32.mrb[229].mxu1 }
 0x458   : > { %v3159_v17 = vmul.f32 0.5, %v3095_v4 }
 0x459   : > { %v3693_v9 = vpop.eup %3692  ;;  %v2971_v0 = vmul.f32 0.5, %v2881_v7 }
 0x45a   : > { %3223 = vst [vmem:[%s5014_s21 + $0x1a8] sm:$0xff] %v3159_v17  ;;  %v3096_v34 = vadd.f32 1.0, %v3693_v9  ;;  %v2885_v11 = vpop.f32.mrb[230].mxu1 }
 0x45b   : > { %3698 = vtanh.f32 %v2971_v0  ;;  %v2886_v42 = vadd.f32 %v5121_v60, %v2885_v11  ;;  %v2887_v20 = vpop.f32.mrb[231].mxu1 }
 0x45c   : > { %v3160_v10 = vmul.f32 0.5, %v3096_v34 }
 0x45d   : > { %v3695_v22 = vpop.eup %3694  ;;  %v2972_v36 = vmul.f32 0.5, %v2886_v42 }
 0x45e   : > { %3224 = vst [vmem:[%s5014_s21 + $0x1b0] sm:$0xff] %v3160_v10  ;;  %v3097_v12 = vadd.f32 1.0, %v3695_v22  ;;  %v2890_v13 = vpop.f32.mrb[232].mxu1 }
 0x45f   : > { %3700 = vtanh.f32 %v2972_v36  ;;  %v2891_v14 = vadd.f32 %v5121_v60, %v2890_v13  ;;  %v2892_v15 = vpop.f32.mrb[233].mxu1 }
 0x460   : > { %v3161_v16 = vmul.f32 0.5, %v3097_v12 }
 0x461   : > { %v3697_v41 = vpop.eup %3696  ;;  %v2973_v21 = vmul.f32 0.5, %v2891_v14 }
 0x462   : > { %3225 = vst [vmem:[%s5014_s21 + $0x1b8] sm:$0xff] %v3161_v16  ;;  %v3098_v18 = vadd.f32 1.0, %v3697_v41  ;;  %v2895_v48 = vpop.f32.mrb[234].mxu1 }
 0x463   : > { %3702 = vtanh.f32 %v2973_v21  ;;  %v2896_v19 = vadd.f32 %v5121_v60, %v2895_v48  ;;  %v2897_v26 = vpop.f32.mrb[235].mxu1 }
 0x464   : > { %v3162_v58 = vmul.f32 0.5, %v3098_v18 }
 0x465   : > { %v3699_v29 = vpop.eup %3698  ;;  %v2974_v32 = vmul.f32 0.5, %v2896_v19 }
 0x466   : > { %3226 = vst [vmem:[%s5014_s21 + $0x1c0] sm:$0xff] %v3162_v58  ;;  %v3099_v33 = vadd.f32 1.0, %v3699_v29  ;;  %v2900_v37 = vpop.f32.mrb[236].mxu1 }
 0x467   : > { %3704 = vtanh.f32 %v2974_v32  ;;  %v2901_v47 = vadd.f32 %v5121_v60, %v2900_v37  ;;  %v2902_v38 = vpop.f32.mrb[237].mxu1 }
 0x468   : > { %v3163_v53 = vmul.f32 0.5, %v3099_v33 }
 0x469   : > { %v3701_v43 = vpop.eup %3700  ;;  %v2975_v44 = vmul.f32 0.5, %v2901_v47 }
 0x46a   : > { %3227 = vst [vmem:[%s5014_s21 + $0x1c8] sm:$0xff] %v3163_v53  ;;  %v3100_v46 = vadd.f32 1.0, %v3701_v43  ;;  %v2905_v24 = vpop.f32.mrb[238].mxu1 }
 0x46b   : > { %3706 = vtanh.f32 %v2975_v44  ;;  %v2906_v31 = vadd.f32 %v5121_v60, %v2905_v24  ;;  %v2907_v23 = vpop.f32.mrb[239].mxu1 }
 0x46c   : > { %v3164_v52 = vmul.f32 0.5, %v3100_v46 }
 0x46d   : > { %v3703_v49 = vpop.eup %3702  ;;  %v2976_v63 = vmul.f32 0.5, %v2906_v31 }
 0x46e   : > { %3228 = vst [vmem:[%s5014_s21 + $0x1d0] sm:$0xff] %v3164_v52  ;;  %v3101_v28 = vadd.f32 1.0, %v3703_v49  ;;  %v2910_v27 = vpop.f32.mrb[240].mxu1 }
 0x46f   : > { %3708 = vtanh.f32 %v2976_v63  ;;  %v2911_v50 = vadd.f32 %v5121_v60, %v2910_v27  ;;  %v2912_v35 = vpop.f32.mrb[241].mxu1 }
 0x470   : > { %v3165_v30 = vmul.f32 0.5, %v3101_v28 }
 0x471   : > { %v3705_v51 = vpop.eup %3704  ;;  %v2977_v54 = vmul.f32 0.5, %v2911_v50 }
 0x472   : > { %3229 = vst [vmem:[%s5014_s21 + $0x1d8] sm:$0xff] %v3165_v30  ;;  %v3102_v62 = vadd.f32 1.0, %v3705_v51 }
 0x473   : > { %3710 = vtanh.f32 %v2977_v54 }
 0x474   : > { %v3166_v59 = vmul.f32 0.5, %v3102_v62 }
 0x475   : > { %v3707_v5 = vpop.eup %3706 }
 0x476   : > { %3230 = vst [vmem:[%s5014_s21 + $0x1e0] sm:$0xff] %v3166_v59  ;;  %v3103_v55 = vadd.f32 1.0, %v3707_v5 }
 0x478   : > { %v3167_v56 = vmul.f32 0.5, %v3103_v55 }
 0x479   : > { %v3709_v57 = vpop.eup %3708 }
 0x47a   : > { %3231 = vst [vmem:[%s5014_s21 + $0x1e8] sm:$0xff] %v3167_v56  ;;  %v3104_v61 = vadd.f32 1.0, %v3709_v57 }
 0x47c   : > { %v3168_v39 = vmul.f32 0.5, %v3104_v61 }
 0x47d   : > { %v3711_v1 = vpop.eup %3710 }
 0x47e   : > { %3232 = vst [vmem:[%s5014_s21 + $0x1f0] sm:$0xff] %v3168_v39  ;;  %v3105_v60 = vadd.f32 1.0, %v3711_v1 }
 0x480   : > { %v3169_v40 = vmul.f32 0.5, %v3105_v60 }
 0x482   : > { %3233 = vst [vmem:[%s5014_s21 + $0x1f8] sm:$0xff] %v3169_v40 }
 0x483 PF: > { %s19_s30 = sadd.s32 1, %s3719_s30  }
 0x484   : > { %p16_p4 = scmp.ge.s32.totalorder %s19_s30, 4  }
 0x486   :  { %18 = sbr.rel (!%p16_p4) target bundleno = 1 (0x1), region = 86 }

</bundles_post_ra>
